<compile_context>
chip_gen: v7x
topology: tpu7x:2x2x1
jax: 0.10.0
libtpu: 0.0.40
codegen_flags: <defaults>
</compile_context>

<pallas_src>
import functools

import jax
import jax.numpy as jnp
from jax.experimental import pallas as pl
from jax.experimental.pallas import tpu as pltpu


def _round_up(n, m):
    return ((n + m - 1) // m) * m


def _lstm_head_kernel(T, Bp, Hp,
                      x_ref,                        # (T*Bp, Dp)   bf16, time-major rows
                      wih0_ref, whh0_ref, b0_ref,   # (Dp,4Hp) bf16, (Hp,4Hp) bf16, (1,4Hp) f32
                      wih1_ref, whh1_ref, b1_ref,   # (Hp,4Hp) bf16, (Hp,4Hp) bf16, (1,4Hp) f32
                      bn_scale_ref, bn_shift_ref,   # (1, Hp) f32
                      w1_ref, fb1_ref,              # (Hp, Hp) bf16, (1, Hp) f32
                      w2_ref, fb2_ref,              # (Hp, Op) bf16, (1, Op) f32
                      out_ref,                      # (Bp, Op) f32
                      xw0_ref):                     # scratch: (T*Bp, 4Hp) f32
    f32 = jnp.float32
    bf16 = jnp.bfloat16
    H3 = 3 * Hp

    # Layer-0 input projection as ONE large MXU GEMM (bias folded in once).
    xw0_ref[...] = (jnp.dot(x_ref[...], wih0_ref[...],
                            preferred_element_type=f32) + b0_ref[...])

    # Layer-1 bias broadcast hoisted out of the loop (no per-step broadcast).
    bias1 = jnp.broadcast_to(b1_ref[...], (Bp, 4 * Hp))

    def cell(gates, c_prev):
        # Gates pre-ordered as (i, f, o, g): one sigmoid over [:, :3Hp] and one
        # tanh over [:, 3Hp:]; all slices are 128-lane aligned.
        s = jax.nn.sigmoid(gates[:, :H3])
        g = jnp.tanh(gates[:, H3:])
        i_g = s[:, :Hp]
        f_g = s[:, Hp:2 * Hp]
        o_g = s[:, 2 * Hp:]
        c_new = f_g * c_prev + i_g * g
        h_new = o_g * jnp.tanh(c_new)
        return h_new, c_new

    h0 = jnp.zeros((Bp, Hp), f32)
    c0 = jnp.zeros((Bp, Hp), f32)
    h1 = jnp.zeros((Bp, Hp), f32)
    c1 = jnp.zeros((Bp, Hp), f32)

    # Both LSTM layers fused into a single, fully-unrolled loop over T.
    for t in range(T):
        g0 = (xw0_ref[t * Bp:(t + 1) * Bp, :]
              + jnp.dot(h0.astype(bf16), whh0_ref[...],
                        preferred_element_type=f32))
        h0, c0 = cell(g0, c0)

        g1 = (jnp.dot(h0.astype(bf16), wih1_ref[...],
                      preferred_element_type=f32)
              + jnp.dot(h1.astype(bf16), whh1_ref[...],
                        preferred_element_type=f32)
              + bias1)
        h1, c1 = cell(g1, c1)
    # TODO(synk): LSTM inter-layer dropout(p=0.5) applies only in train mode;
    # eval-mode forward implemented here.

    # Head: last hidden state -> BatchNorm1d (eval, folded) -> fc1+ReLU -> fc2.
    y = h1 * bn_scale_ref[...] + bn_shift_ref[...]
    z = jnp.maximum(
        jnp.dot(y.astype(bf16), w1_ref[...], preferred_element_type=f32)
        + fb1_ref[...], 0.0)
    out_ref[...] = (jnp.dot(z.astype(bf16), w2_ref[...],
                            preferred_element_type=f32) + fb2_ref[...])


def _pack_gate_matrix(w, in_dim_pad, Hp):
    """PyTorch (4H, Din) LSTM weight -> (in_dim_pad, 4*Hp), gates reordered to
    (i, f, o, g), each gate block zero-padded to Hp lanes, rows padded."""
    fourH, Din = w.shape
    H = fourH // 4
    blocks = (w[0:H], w[H:2 * H], w[3 * H:4 * H], w[2 * H:3 * H])  # i, f, o, g
    cols = [jnp.pad(blk.T, ((0, in_dim_pad - Din), (0, Hp - H))) for blk in blocks]
    return jnp.concatenate(cols, axis=1)


def _pack_gate_bias(b, Hp):
    fourH = b.shape[0]
    H = fourH // 4
    blocks = (b[0:H], b[H:2 * H], b[3 * H:4 * H], b[2 * H:3 * H])  # i, f, o, g
    return jnp.concatenate([jnp.pad(v, (0, Hp - H)) for v in blocks])[None, :]


def lstm_mean_atten_forward(x_btd, params):
    """Forward pass of LSTMnet_MeanAtten (eval mode, num_layers=2).
    x_btd: (B, T, input_dim), batch_first like PyTorch."""
    (wih0, whh0, bih0, bhh0,
     wih1, whh1, bih1, bhh1,
     bn_gamma, bn_beta, bn_mean, bn_var,
     fc1_w, fc1_b, fc2_w, fc2_b) = params

    B, T, D = x_btd.shape
    H = whh0.shape[1]
    O = fc2_w.shape[0]
    eps = 1e-5

    Bp = _round_up(B, 8)      # sublane multiple
    Dp = _round_up(D, 128)    # lane multiple
    Hp = _round_up(H, 128)    # per-gate lane block
    Op = _round_up(O, 128)    # lane-dense output

    # Time-major, batch/lane padded input as one 2-D slab: rows
    # [t*Bp, (t+1)*Bp) hold timestep t.
    x_pad = jnp.pad(x_btd.astype(jnp.float32),
                    ((0, Bp - B), (0, 0), (0, Dp - D)))          # (Bp, T, Dp)
    x_2d = (jnp.transpose(x_pad, (1, 0, 2))
            .reshape(T * Bp, Dp).astype(jnp.bfloat16))           # (T*Bp, Dp)

    # LSTM weights: transposed, gate-reordered, per-gate padded, bf16 operands.
    wih0_p = _pack_gate_matrix(wih0, Dp, Hp).astype(jnp.bfloat16)
    whh0_p = _pack_gate_matrix(whh0, Hp, Hp).astype(jnp.bfloat16)
    b0 = _pack_gate_bias(bih0 + bhh0, Hp).astype(jnp.float32)
    wih1_p = _pack_gate_matrix(wih1, Hp, Hp).astype(jnp.bfloat16)
    whh1_p = _pack_gate_matrix(whh1, Hp, Hp).astype(jnp.bfloat16)
    b1 = _pack_gate_bias(bih1 + bhh1, Hp).astype(jnp.float32)

    # BatchNorm1d (eval): fold running stats into scale/shift, zero-padded.
    inv_std = bn_gamma / jnp.sqrt(bn_var + eps)
    bn_scale = jnp.pad(inv_std, (0, Hp - H))[None, :].astype(jnp.float32)
    bn_shift = jnp.pad(bn_beta - bn_mean * inv_std,
                       (0, Hp - H))[None, :].astype(jnp.float32)

    # FC head, padded to lane-dense tiles.
    w1_p = jnp.pad(fc1_w.T, ((0, Hp - H), (0, Hp - H))).astype(jnp.bfloat16)
    fb1 = jnp.pad(fc1_b, (0, Hp - H))[None, :].astype(jnp.float32)
    w2_p = jnp.pad(fc2_w.T, ((0, Hp - H), (0, Op - O))).astype(jnp.bfloat16)
    fb2 = jnp.pad(fc2_b, (0, Op - O))[None, :].astype(jnp.float32)

    kernel = functools.partial(_lstm_head_kernel, T, Bp, Hp)
    n_inputs = 13

    out_padded = pl.pallas_call(
        kernel,
        out_shape=jax.ShapeDtypeStruct((Bp, Op), jnp.float32),
        in_specs=[pl.BlockSpec(memory_space=pltpu.MemorySpace.VMEM)] * n_inputs,
        out_specs=pl.BlockSpec(memory_space=pltpu.MemorySpace.VMEM),
        scratch_shapes=[
            pltpu.VMEM((T * Bp, 4 * Hp), jnp.float32),  # hoisted layer-0 input GEMM
        ],
    )(x_2d, wih0_p, whh0_p, b0, wih1_p, whh1_p, b1,
      bn_scale, bn_shift, w1_p, fb1, w2_p, fb2)

    return out_padded[:B, :O]


def init_params(key, input_dim, hidden_dim, output_dim):
    """Deterministic synthetic parameters with PyTorch-like shapes."""
    H = hidden_dim
    k = 1.0 / jnp.sqrt(jnp.float32(H))
    keys = jax.random.split(key, 16)
    u = lambda kk, shape: jax.random.uniform(kk, shape, jnp.float32, -k, k)

    wih0 = u(keys[0], (4 * H, input_dim))
    whh0 = u(keys[1], (4 * H, H))
    bih0 = u(keys[2], (4 * H,))
    bhh0 = u(keys[3], (4 * H,))
    wih1 = u(keys[4], (4 * H, H))
    whh1 = u(keys[5], (4 * H, H))
    bih1 = u(keys[6], (4 * H,))
    bhh1 = u(keys[7], (4 * H,))

    bn_gamma = 1.0 + 0.1 * jax.random.normal(keys[8], (H,), jnp.float32)
    bn_beta = 0.1 * jax.random.normal(keys[9], (H,), jnp.float32)
    bn_mean = 0.05 * jax.random.normal(keys[10], (H,), jnp.float32)
    bn_var = 1.0 + 0.1 * jax.random.uniform(keys[11], (H,), jnp.float32)

    fc1_w = u(keys[12], (H, H))
    fc1_b = u(keys[13], (H,))
    fc2_w = u(keys[14], (output_dim, H))
    fc2_b = u(keys[15], (output_dim,))

    return (wih0, whh0, bih0, bhh0,
            wih1, whh1, bih1, bhh1,
            bn_gamma, bn_beta, bn_mean, bn_var,
            fc1_w, fc1_b, fc2_w, fc2_b)


if __name__ == "__main__":
    B, T = 4, 8
    input_dim, hidden_dim, output_dim, num_layers = 16, 32, 8, 2

    key = jax.random.PRNGKey(0)
    kx, kp = jax.random.split(key)
    x = jax.random.normal(kx, (B, T, input_dim), jnp.float32)  # batch_first
    params = init_params(kp, input_dim, hidden_dim, output_dim)

    out = lstm_mean_atten_forward(x, params)
    out = jax.block_until_ready(out)
    assert out.shape == (B, output_dim)
    assert jnp.all(jnp.isfinite(out))
    print("KERNEL_OK")
</pallas_src>

<mosaic_0001>
module attributes {stable_mosaic.version = 11 : i64} {
  func.func @_lstm_head_kernel(%arg0: memref<64x128xbf16, #tpu.memory_space<vmem>>, %arg1: memref<128x512xbf16, #tpu.memory_space<vmem>>, %arg2: memref<128x512xbf16, #tpu.memory_space<vmem>>, %arg3: memref<1x512xf32, #tpu.memory_space<vmem>>, %arg4: memref<128x512xbf16, #tpu.memory_space<vmem>>, %arg5: memref<128x512xbf16, #tpu.memory_space<vmem>>, %arg6: memref<1x512xf32, #tpu.memory_space<vmem>>, %arg7: memref<1x128xf32, #tpu.memory_space<vmem>>, %arg8: memref<1x128xf32, #tpu.memory_space<vmem>>, %arg9: memref<128x128xbf16, #tpu.memory_space<vmem>>, %arg10: memref<1x128xf32, #tpu.memory_space<vmem>>, %arg11: memref<128x128xbf16, #tpu.memory_space<vmem>>, %arg12: memref<1x128xf32, #tpu.memory_space<vmem>>, %arg13: memref<8x128xf32, #tpu.memory_space<vmem>>, %arg14: memref<64x512xf32, #tpu.memory_space<vmem>>) attributes {dimension_semantics = [], scalar_prefetch = 0 : i64, scratch_operands = 1 : i64, tpu.core_type = #tpu.core_type<tc>} {
    %c0 = arith.constant 0 : index
    %c0_0 = arith.constant 0 : index
    %0 = vector.load %arg0[%c0, %c0_0] : memref<64x128xbf16, #tpu.memory_space<vmem>>, vector<64x128xbf16>
    %c0_1 = arith.constant 0 : index
    %c0_2 = arith.constant 0 : index
    %1 = vector.load %arg1[%c0_1, %c0_2] : memref<128x512xbf16, #tpu.memory_space<vmem>>, vector<128x512xbf16>
    %cst = arith.constant dense<0.000000e+00> : vector<64x512xf32>
    %2 = tpu.matmul %0, %1, %cst {dimension_numbers = #tpu.dot_dimension_numbers<[1], [0], [0], [1], [0, 0, 1, 1], [], []>} : vector<64x128xbf16>, vector<128x512xbf16>, vector<64x512xf32> -> vector<64x512xf32>
    %c0_3 = arith.constant 0 : index
    %c0_4 = arith.constant 0 : index
    %3 = vector.load %arg3[%c0_3, %c0_4] : memref<1x512xf32, #tpu.memory_space<vmem>>, vector<1x512xf32>
    %4 = vector.broadcast %3 : vector<1x512xf32> to vector<64x512xf32>
    %5 = arith.addf %2, %4 : vector<64x512xf32>
    %c0_5 = arith.constant 0 : index
    %c0_6 = arith.constant 0 : index
    %6 = vector.load %arg14[%c0_5, %c0_6] : memref<64x512xf32, #tpu.memory_space<vmem>>, vector<64x512xf32>
    tpu.vector_store %arg14[%c0_5, %c0_6], %5 {strides = array<i32>} : memref<64x512xf32, #tpu.memory_space<vmem>>, vector<64x512xf32>,
    %c0_7 = arith.constant 0 : index
    %c0_8 = arith.constant 0 : index
    %7 = vector.load %arg6[%c0_7, %c0_8] : memref<1x512xf32, #tpu.memory_space<vmem>>, vector<1x512xf32>
    %8 = vector.shape_cast %7 : vector<1x512xf32> to vector<1x512xf32>
    %9 = vector.broadcast %8 : vector<1x512xf32> to vector<8x512xf32>
    %cst_9 = arith.constant 0.000000e+00 : f32
    %10 = vector.broadcast %cst_9 : f32 to vector<8x128xf32>
    %cst_10 = arith.constant 0.000000e+00 : f32
    %11 = vector.broadcast %cst_10 : f32 to vector<8x128xf32>
    %cst_11 = arith.constant 0.000000e+00 : f32
    %12 = vector.broadcast %cst_11 : f32 to vector<8x128xf32>
    %cst_12 = arith.constant 0.000000e+00 : f32
    %13 = vector.broadcast %cst_12 : f32 to vector<8x128xf32>
    %c0_13 = arith.constant 0 : index
    %c0_14 = arith.constant 0 : index
    %14 = vector.load %arg14[%c0_13, %c0_14] : memref<64x512xf32, #tpu.memory_space<vmem>>, vector<8x512xf32>
    %15 = arith.truncf %10 : vector<8x128xf32> to vector<8x128xbf16>
    %c0_15 = arith.constant 0 : index
    %c0_16 = arith.constant 0 : index
    %16 = vector.load %arg2[%c0_15, %c0_16] : memref<128x512xbf16, #tpu.memory_space<vmem>>, vector<128x512xbf16>
    %cst_17 = arith.constant dense<0.000000e+00> : vector<8x512xf32>
    %17 = tpu.matmul %15, %16, %cst_17 {dimension_numbers = #tpu.dot_dimension_numbers<[1], [0], [0], [1], [0, 0, 1, 1], [], []>} : vector<8x128xbf16>, vector<128x512xbf16>, vector<8x512xf32> -> vector<8x512xf32>
    %18 = arith.addf %14, %17 : vector<8x512xf32>
    %19 = vector.extract_strided_slice %18 {offsets = [0, 0], sizes = [8, 384], strides = [1, 1]} : vector<8x512xf32> to vector<8x384xf32>
    %20 = arith.negf %19 : vector<8x384xf32>
    %21 = math.exp %20 : vector<8x384xf32>
    %cst_18 = arith.constant 1.000000e+00 : f32
    %22 = vector.broadcast %cst_18 : f32 to vector<8x384xf32>
    %23 = arith.addf %22, %21 : vector<8x384xf32>
    %24 = arith.divf %22, %23 : vector<8x384xf32>
    %25 = vector.extract_strided_slice %18 {offsets = [0, 384], sizes = [8, 128], strides = [1, 1]} : vector<8x512xf32> to vector<8x128xf32>
    %26 = math.tanh %25 : vector<8x128xf32>
    %27 = vector.extract_strided_slice %24 {offsets = [0, 0], sizes = [8, 128], strides = [1, 1]} : vector<8x384xf32> to vector<8x128xf32>
    %28 = vector.extract_strided_slice %24 {offsets = [0, 128], sizes = [8, 128], strides = [1, 1]} : vector<8x384xf32> to vector<8x128xf32>
    %29 = vector.extract_strided_slice %24 {offsets = [0, 256], sizes = [8, 128], strides = [1, 1]} : vector<8x384xf32> to vector<8x128xf32>
    %30 = arith.mulf %28, %11 : vector<8x128xf32>
    %31 = arith.mulf %27, %26 : vector<8x128xf32>
    %32 = arith.addf %30, %31 : vector<8x128xf32>
    %33 = math.tanh %32 : vector<8x128xf32>
    %34 = arith.mulf %29, %33 : vector<8x128xf32>
    %35 = arith.truncf %34 : vector<8x128xf32> to vector<8x128xbf16>
    %c0_19 = arith.constant 0 : index
    %c0_20 = arith.constant 0 : index
    %36 = vector.load %arg4[%c0_19, %c0_20] : memref<128x512xbf16, #tpu.memory_space<vmem>>, vector<128x512xbf16>
    %cst_21 = arith.constant dense<0.000000e+00> : vector<8x512xf32>
    %37 = tpu.matmul %35, %36, %cst_21 {dimension_numbers = #tpu.dot_dimension_numbers<[1], [0], [0], [1], [0, 0, 1, 1], [], []>} : vector<8x128xbf16>, vector<128x512xbf16>, vector<8x512xf32> -> vector<8x512xf32>
    %38 = arith.truncf %12 : vector<8x128xf32> to vector<8x128xbf16>
    %c0_22 = arith.constant 0 : index
    %c0_23 = arith.constant 0 : index
    %39 = vector.load %arg5[%c0_22, %c0_23] : memref<128x512xbf16, #tpu.memory_space<vmem>>, vector<128x512xbf16>
    %cst_24 = arith.constant dense<0.000000e+00> : vector<8x512xf32>
    %40 = tpu.matmul %38, %39, %cst_24 {dimension_numbers = #tpu.dot_dimension_numbers<[1], [0], [0], [1], [0, 0, 1, 1], [], []>} : vector<8x128xbf16>, vector<128x512xbf16>, vector<8x512xf32> -> vector<8x512xf32>
    %41 = arith.addf %37, %40 : vector<8x512xf32>
    %42 = arith.addf %41, %9 : vector<8x512xf32>
    %43 = vector.extract_strided_slice %42 {offsets = [0, 0], sizes = [8, 384], strides = [1, 1]} : vector<8x512xf32> to vector<8x384xf32>
    %44 = arith.negf %43 : vector<8x384xf32>
    %45 = math.exp %44 : vector<8x384xf32>
    %cst_25 = arith.constant 1.000000e+00 : f32
    %46 = vector.broadcast %cst_25 : f32 to vector<8x384xf32>
    %47 = arith.addf %46, %45 : vector<8x384xf32>
    %48 = arith.divf %46, %47 : vector<8x384xf32>
    %49 = vector.extract_strided_slice %42 {offsets = [0, 384], sizes = [8, 128], strides = [1, 1]} : vector<8x512xf32> to vector<8x128xf32>
    %50 = math.tanh %49 : vector<8x128xf32>
    %51 = vector.extract_strided_slice %48 {offsets = [0, 0], sizes = [8, 128], strides = [1, 1]} : vector<8x384xf32> to vector<8x128xf32>
    %52 = vector.extract_strided_slice %48 {offsets = [0, 128], sizes = [8, 128], strides = [1, 1]} : vector<8x384xf32> to vector<8x128xf32>
    %53 = vector.extract_strided_slice %48 {offsets = [0, 256], sizes = [8, 128], strides = [1, 1]} : vector<8x384xf32> to vector<8x128xf32>
    %54 = arith.mulf %52, %13 : vector<8x128xf32>
    %55 = arith.mulf %51, %50 : vector<8x128xf32>
    %56 = arith.addf %54, %55 : vector<8x128xf32>
    %57 = math.tanh %56 : vector<8x128xf32>
    %58 = arith.mulf %53, %57 : vector<8x128xf32>
    %c8 = arith.constant 8 : index
    %c0_26 = arith.constant 0 : index
    %59 = vector.load %arg14[%c8, %c0_26] : memref<64x512xf32, #tpu.memory_space<vmem>>, vector<8x512xf32>
    %60 = arith.truncf %34 : vector<8x128xf32> to vector<8x128xbf16>
    %c0_27 = arith.constant 0 : index
    %c0_28 = arith.constant 0 : index
    %61 = vector.load %arg2[%c0_27, %c0_28] : memref<128x512xbf16, #tpu.memory_space<vmem>>, vector<128x512xbf16>
    %cst_29 = arith.constant dense<0.000000e+00> : vector<8x512xf32>
    %62 = tpu.matmul %60, %61, %cst_29 {dimension_numbers = #tpu.dot_dimension_numbers<[1], [0], [0], [1], [0, 0, 1, 1], [], []>} : vector<8x128xbf16>, vector<128x512xbf16>, vector<8x512xf32> -> vector<8x512xf32>
    %63 = arith.addf %59, %62 : vector<8x512xf32>
    %64 = vector.extract_strided_slice %63 {offsets = [0, 0], sizes = [8, 384], strides = [1, 1]} : vector<8x512xf32> to vector<8x384xf32>
    %65 = arith.negf %64 : vector<8x384xf32>
    %66 = math.exp %65 : vector<8x384xf32>
    %cst_30 = arith.constant 1.000000e+00 : f32
    %67 = vector.broadcast %cst_30 : f32 to vector<8x384xf32>
    %68 = arith.addf %67, %66 : vector<8x384xf32>
    %69 = arith.divf %67, %68 : vector<8x384xf32>
    %70 = vector.extract_strided_slice %63 {offsets = [0, 384], sizes = [8, 128], strides = [1, 1]} : vector<8x512xf32> to vector<8x128xf32>
    %71 = math.tanh %70 : vector<8x128xf32>
    %72 = vector.extract_strided_slice %69 {offsets = [0, 0], sizes = [8, 128], strides = [1, 1]} : vector<8x384xf32> to vector<8x128xf32>
    %73 = vector.extract_strided_slice %69 {offsets = [0, 128], sizes = [8, 128], strides = [1, 1]} : vector<8x384xf32> to vector<8x128xf32>
    %74 = vector.extract_strided_slice %69 {offsets = [0, 256], sizes = [8, 128], strides = [1, 1]} : vector<8x384xf32> to vector<8x128xf32>
    %75 = arith.mulf %73, %32 : vector<8x128xf32>
    %76 = arith.mulf %72, %71 : vector<8x128xf32>
    %77 = arith.addf %75, %76 : vector<8x128xf32>
    %78 = math.tanh %77 : vector<8x128xf32>
    %79 = arith.mulf %74, %78 : vector<8x128xf32>
    %80 = arith.truncf %79 : vector<8x128xf32> to vector<8x128xbf16>
    %c0_31 = arith.constant 0 : index
    %c0_32 = arith.constant 0 : index
    %81 = vector.load %arg4[%c0_31, %c0_32] : memref<128x512xbf16, #tpu.memory_space<vmem>>, vector<128x512xbf16>
    %cst_33 = arith.constant dense<0.000000e+00> : vector<8x512xf32>
    %82 = tpu.matmul %80, %81, %cst_33 {dimension_numbers = #tpu.dot_dimension_numbers<[1], [0], [0], [1], [0, 0, 1, 1], [], []>} : vector<8x128xbf16>, vector<128x512xbf16>, vector<8x512xf32> -> vector<8x512xf32>
    %83 = arith.truncf %58 : vector<8x128xf32> to vector<8x128xbf16>
    %c0_34 = arith.constant 0 : index
    %c0_35 = arith.constant 0 : index
    %84 = vector.load %arg5[%c0_34, %c0_35] : memref<128x512xbf16, #tpu.memory_space<vmem>>, vector<128x512xbf16>
    %cst_36 = arith.constant dense<0.000000e+00> : vector<8x512xf32>
    %85 = tpu.matmul %83, %84, %cst_36 {dimension_numbers = #tpu.dot_dimension_numbers<[1], [0], [0], [1], [0, 0, 1, 1], [], []>} : vector<8x128xbf16>, vector<128x512xbf16>, vector<8x512xf32> -> vector<8x512xf32>
    %86 = arith.addf %82, %85 : vector<8x512xf32>
    %87 = arith.addf %86, %9 : vector<8x512xf32>
    %88 = vector.extract_strided_slice %87 {offsets = [0, 0], sizes = [8, 384], strides = [1, 1]} : vector<8x512xf32> to vector<8x384xf32>
    %89 = arith.negf %88 : vector<8x384xf32>
    %90 = math.exp %89 : vector<8x384xf32>
    %cst_37 = arith.constant 1.000000e+00 : f32
    %91 = vector.broadcast %cst_37 : f32 to vector<8x384xf32>
    %92 = arith.addf %91, %90 : vector<8x384xf32>
    %93 = arith.divf %91, %92 : vector<8x384xf32>
    %94 = vector.extract_strided_slice %87 {offsets = [0, 384], sizes = [8, 128], strides = [1, 1]} : vector<8x512xf32> to vector<8x128xf32>
    %95 = math.tanh %94 : vector<8x128xf32>
    %96 = vector.extract_strided_slice %93 {offsets = [0, 0], sizes = [8, 128], strides = [1, 1]} : vector<8x384xf32> to vector<8x128xf32>
    %97 = vector.extract_strided_slice %93 {offsets = [0, 128], sizes = [8, 128], strides = [1, 1]} : vector<8x384xf32> to vector<8x128xf32>
    %98 = vector.extract_strided_slice %93 {offsets = [0, 256], sizes = [8, 128], strides = [1, 1]} : vector<8x384xf32> to vector<8x128xf32>
    %99 = arith.mulf %97, %56 : vector<8x128xf32>
    %100 = arith.mulf %96, %95 : vector<8x128xf32>
    %101 = arith.addf %99, %100 : vector<8x128xf32>
    %102 = math.tanh %101 : vector<8x128xf32>
    %103 = arith.mulf %98, %102 : vector<8x128xf32>
    %c16 = arith.constant 16 : index
    %c0_38 = arith.constant 0 : index
    %104 = vector.load %arg14[%c16, %c0_38] : memref<64x512xf32, #tpu.memory_space<vmem>>, vector<8x512xf32>
    %105 = arith.truncf %79 : vector<8x128xf32> to vector<8x128xbf16>
    %c0_39 = arith.constant 0 : index
    %c0_40 = arith.constant 0 : index
    %106 = vector.load %arg2[%c0_39, %c0_40] : memref<128x512xbf16, #tpu.memory_space<vmem>>, vector<128x512xbf16>
    %cst_41 = arith.constant dense<0.000000e+00> : vector<8x512xf32>
    %107 = tpu.matmul %105, %106, %cst_41 {dimension_numbers = #tpu.dot_dimension_numbers<[1], [0], [0], [1], [0, 0, 1, 1], [], []>} : vector<8x128xbf16>, vector<128x512xbf16>, vector<8x512xf32> -> vector<8x512xf32>
    %108 = arith.addf %104, %107 : vector<8x512xf32>
    %109 = vector.extract_strided_slice %108 {offsets = [0, 0], sizes = [8, 384], strides = [1, 1]} : vector<8x512xf32> to vector<8x384xf32>
    %110 = arith.negf %109 : vector<8x384xf32>
    %111 = math.exp %110 : vector<8x384xf32>
    %cst_42 = arith.constant 1.000000e+00 : f32
    %112 = vector.broadcast %cst_42 : f32 to vector<8x384xf32>
    %113 = arith.addf %112, %111 : vector<8x384xf32>
    %114 = arith.divf %112, %113 : vector<8x384xf32>
    %115 = vector.extract_strided_slice %108 {offsets = [0, 384], sizes = [8, 128], strides = [1, 1]} : vector<8x512xf32> to vector<8x128xf32>
    %116 = math.tanh %115 : vector<8x128xf32>
    %117 = vector.extract_strided_slice %114 {offsets = [0, 0], sizes = [8, 128], strides = [1, 1]} : vector<8x384xf32> to vector<8x128xf32>
    %118 = vector.extract_strided_slice %114 {offsets = [0, 128], sizes = [8, 128], strides = [1, 1]} : vector<8x384xf32> to vector<8x128xf32>
    %119 = vector.extract_strided_slice %114 {offsets = [0, 256], sizes = [8, 128], strides = [1, 1]} : vector<8x384xf32> to vector<8x128xf32>
    %120 = arith.mulf %118, %77 : vector<8x128xf32>
    %121 = arith.mulf %117, %116 : vector<8x128xf32>
    %122 = arith.addf %120, %121 : vector<8x128xf32>
    %123 = math.tanh %122 : vector<8x128xf32>
    %124 = arith.mulf %119, %123 : vector<8x128xf32>
    %125 = arith.truncf %124 : vector<8x128xf32> to vector<8x128xbf16>
    %c0_43 = arith.constant 0 : index
    %c0_44 = arith.constant 0 : index
    %126 = vector.load %arg4[%c0_43, %c0_44] : memref<128x512xbf16, #tpu.memory_space<vmem>>, vector<128x512xbf16>
    %cst_45 = arith.constant dense<0.000000e+00> : vector<8x512xf32>
    %127 = tpu.matmul %125, %126, %cst_45 {dimension_numbers = #tpu.dot_dimension_numbers<[1], [0], [0], [1], [0, 0, 1, 1], [], []>} : vector<8x128xbf16>, vector<128x512xbf16>, vector<8x512xf32> -> vector<8x512xf32>
    %128 = arith.truncf %103 : vector<8x128xf32> to vector<8x128xbf16>
    %c0_46 = arith.constant 0 : index
    %c0_47 = arith.constant 0 : index
    %129 = vector.load %arg5[%c0_46, %c0_47] : memref<128x512xbf16, #tpu.memory_space<vmem>>, vector<128x512xbf16>
    %cst_48 = arith.constant dense<0.000000e+00> : vector<8x512xf32>
    %130 = tpu.matmul %128, %129, %cst_48 {dimension_numbers = #tpu.dot_dimension_numbers<[1], [0], [0], [1], [0, 0, 1, 1], [], []>} : vector<8x128xbf16>, vector<128x512xbf16>, vector<8x512xf32> -> vector<8x512xf32>
    %131 = arith.addf %127, %130 : vector<8x512xf32>
    %132 = arith.addf %131, %9 : vector<8x512xf32>
    %133 = vector.extract_strided_slice %132 {offsets = [0, 0], sizes = [8, 384], strides = [1, 1]} : vector<8x512xf32> to vector<8x384xf32>
    %134 = arith.negf %133 : vector<8x384xf32>
    %135 = math.exp %134 : vector<8x384xf32>
    %cst_49 = arith.constant 1.000000e+00 : f32
    %136 = vector.broadcast %cst_49 : f32 to vector<8x384xf32>
    %137 = arith.addf %136, %135 : vector<8x384xf32>
    %138 = arith.divf %136, %137 : vector<8x384xf32>
    %139 = vector.extract_strided_slice %132 {offsets = [0, 384], sizes = [8, 128], strides = [1, 1]} : vector<8x512xf32> to vector<8x128xf32>
    %140 = math.tanh %139 : vector<8x128xf32>
    %141 = vector.extract_strided_slice %138 {offsets = [0, 0], sizes = [8, 128], strides = [1, 1]} : vector<8x384xf32> to vector<8x128xf32>
    %142 = vector.extract_strided_slice %138 {offsets = [0, 128], sizes = [8, 128], strides = [1, 1]} : vector<8x384xf32> to vector<8x128xf32>
    %143 = vector.extract_strided_slice %138 {offsets = [0, 256], sizes = [8, 128], strides = [1, 1]} : vector<8x384xf32> to vector<8x128xf32>
    %144 = arith.mulf %142, %101 : vector<8x128xf32>
    %145 = arith.mulf %141, %140 : vector<8x128xf32>
    %146 = arith.addf %144, %145 : vector<8x128xf32>
    %147 = math.tanh %146 : vector<8x128xf32>
    %148 = arith.mulf %143, %147 : vector<8x128xf32>
    %c24 = arith.constant 24 : index
    %c0_50 = arith.constant 0 : index
    %149 = vector.load %arg14[%c24, %c0_50] : memref<64x512xf32, #tpu.memory_space<vmem>>, vector<8x512xf32>
    %150 = arith.truncf %124 : vector<8x128xf32> to vector<8x128xbf16>
    %c0_51 = arith.constant 0 : index
    %c0_52 = arith.constant 0 : index
    %151 = vector.load %arg2[%c0_51, %c0_52] : memref<128x512xbf16, #tpu.memory_space<vmem>>, vector<128x512xbf16>
    %cst_53 = arith.constant dense<0.000000e+00> : vector<8x512xf32>
    %152 = tpu.matmul %150, %151, %cst_53 {dimension_numbers = #tpu.dot_dimension_numbers<[1], [0], [0], [1], [0, 0, 1, 1], [], []>} : vector<8x128xbf16>, vector<128x512xbf16>, vector<8x512xf32> -> vector<8x512xf32>
    %153 = arith.addf %149, %152 : vector<8x512xf32>
    %154 = vector.extract_strided_slice %153 {offsets = [0, 0], sizes = [8, 384], strides = [1, 1]} : vector<8x512xf32> to vector<8x384xf32>
    %155 = arith.negf %154 : vector<8x384xf32>
    %156 = math.exp %155 : vector<8x384xf32>
    %cst_54 = arith.constant 1.000000e+00 : f32
    %157 = vector.broadcast %cst_54 : f32 to vector<8x384xf32>
    %158 = arith.addf %157, %156 : vector<8x384xf32>
    %159 = arith.divf %157, %158 : vector<8x384xf32>
    %160 = vector.extract_strided_slice %153 {offsets = [0, 384], sizes = [8, 128], strides = [1, 1]} : vector<8x512xf32> to vector<8x128xf32>
    %161 = math.tanh %160 : vector<8x128xf32>
    %162 = vector.extract_strided_slice %159 {offsets = [0, 0], sizes = [8, 128], strides = [1, 1]} : vector<8x384xf32> to vector<8x128xf32>
    %163 = vector.extract_strided_slice %159 {offsets = [0, 128], sizes = [8, 128], strides = [1, 1]} : vector<8x384xf32> to vector<8x128xf32>
    %164 = vector.extract_strided_slice %159 {offsets = [0, 256], sizes = [8, 128], strides = [1, 1]} : vector<8x384xf32> to vector<8x128xf32>
    %165 = arith.mulf %163, %122 : vector<8x128xf32>
    %166 = arith.mulf %162, %161 : vector<8x128xf32>
    %167 = arith.addf %165, %166 : vector<8x128xf32>
    %168 = math.tanh %167 : vector<8x128xf32>
    %169 = arith.mulf %164, %168 : vector<8x128xf32>
    %170 = arith.truncf %169 : vector<8x128xf32> to vector<8x128xbf16>
    %c0_55 = arith.constant 0 : index
    %c0_56 = arith.constant 0 : index
    %171 = vector.load %arg4[%c0_55, %c0_56] : memref<128x512xbf16, #tpu.memory_space<vmem>>, vector<128x512xbf16>
    %cst_57 = arith.constant dense<0.000000e+00> : vector<8x512xf32>
    %172 = tpu.matmul %170, %171, %cst_57 {dimension_numbers = #tpu.dot_dimension_numbers<[1], [0], [0], [1], [0, 0, 1, 1], [], []>} : vector<8x128xbf16>, vector<128x512xbf16>, vector<8x512xf32> -> vector<8x512xf32>
    %173 = arith.truncf %148 : vector<8x128xf32> to vector<8x128xbf16>
    %c0_58 = arith.constant 0 : index
    %c0_59 = arith.constant 0 : index
    %174 = vector.load %arg5[%c0_58, %c0_59] : memref<128x512xbf16, #tpu.memory_space<vmem>>, vector<128x512xbf16>
    %cst_60 = arith.constant dense<0.000000e+00> : vector<8x512xf32>
    %175 = tpu.matmul %173, %174, %cst_60 {dimension_numbers = #tpu.dot_dimension_numbers<[1], [0], [0], [1], [0, 0, 1, 1], [], []>} : vector<8x128xbf16>, vector<128x512xbf16>, vector<8x512xf32> -> vector<8x512xf32>
    %176 = arith.addf %172, %175 : vector<8x512xf32>
    %177 = arith.addf %176, %9 : vector<8x512xf32>
    %178 = vector.extract_strided_slice %177 {offsets = [0, 0], sizes = [8, 384], strides = [1, 1]} : vector<8x512xf32> to vector<8x384xf32>
    %179 = arith.negf %178 : vector<8x384xf32>
    %180 = math.exp %179 : vector<8x384xf32>
    %cst_61 = arith.constant 1.000000e+00 : f32
    %181 = vector.broadcast %cst_61 : f32 to vector<8x384xf32>
    %182 = arith.addf %181, %180 : vector<8x384xf32>
    %183 = arith.divf %181, %182 : vector<8x384xf32>
    %184 = vector.extract_strided_slice %177 {offsets = [0, 384], sizes = [8, 128], strides = [1, 1]} : vector<8x512xf32> to vector<8x128xf32>
    %185 = math.tanh %184 : vector<8x128xf32>
    %186 = vector.extract_strided_slice %183 {offsets = [0, 0], sizes = [8, 128], strides = [1, 1]} : vector<8x384xf32> to vector<8x128xf32>
    %187 = vector.extract_strided_slice %183 {offsets = [0, 128], sizes = [8, 128], strides = [1, 1]} : vector<8x384xf32> to vector<8x128xf32>
    %188 = vector.extract_strided_slice %183 {offsets = [0, 256], sizes = [8, 128], strides = [1, 1]} : vector<8x384xf32> to vector<8x128xf32>
    %189 = arith.mulf %187, %146 : vector<8x128xf32>
    %190 = arith.mulf %186, %185 : vector<8x128xf32>
    %191 = arith.addf %189, %190 : vector<8x128xf32>
    %192 = math.tanh %191 : vector<8x128xf32>
    %193 = arith.mulf %188, %192 : vector<8x128xf32>
    %c32 = arith.constant 32 : index
    %c0_62 = arith.constant 0 : index
    %194 = vector.load %arg14[%c32, %c0_62] : memref<64x512xf32, #tpu.memory_space<vmem>>, vector<8x512xf32>
    %195 = arith.truncf %169 : vector<8x128xf32> to vector<8x128xbf16>
    %c0_63 = arith.constant 0 : index
    %c0_64 = arith.constant 0 : index
    %196 = vector.load %arg2[%c0_63, %c0_64] : memref<128x512xbf16, #tpu.memory_space<vmem>>, vector<128x512xbf16>
    %cst_65 = arith.constant dense<0.000000e+00> : vector<8x512xf32>
    %197 = tpu.matmul %195, %196, %cst_65 {dimension_numbers = #tpu.dot_dimension_numbers<[1], [0], [0], [1], [0, 0, 1, 1], [], []>} : vector<8x128xbf16>, vector<128x512xbf16>, vector<8x512xf32> -> vector<8x512xf32>
    %198 = arith.addf %194, %197 : vector<8x512xf32>
    %199 = vector.extract_strided_slice %198 {offsets = [0, 0], sizes = [8, 384], strides = [1, 1]} : vector<8x512xf32> to vector<8x384xf32>
    %200 = arith.negf %199 : vector<8x384xf32>
    %201 = math.exp %200 : vector<8x384xf32>
    %cst_66 = arith.constant 1.000000e+00 : f32
    %202 = vector.broadcast %cst_66 : f32 to vector<8x384xf32>
    %203 = arith.addf %202, %201 : vector<8x384xf32>
    %204 = arith.divf %202, %203 : vector<8x384xf32>
    %205 = vector.extract_strided_slice %198 {offsets = [0, 384], sizes = [8, 128], strides = [1, 1]} : vector<8x512xf32> to vector<8x128xf32>
    %206 = math.tanh %205 : vector<8x128xf32>
    %207 = vector.extract_strided_slice %204 {offsets = [0, 0], sizes = [8, 128], strides = [1, 1]} : vector<8x384xf32> to vector<8x128xf32>
    %208 = vector.extract_strided_slice %204 {offsets = [0, 128], sizes = [8, 128], strides = [1, 1]} : vector<8x384xf32> to vector<8x128xf32>
    %209 = vector.extract_strided_slice %204 {offsets = [0, 256], sizes = [8, 128], strides = [1, 1]} : vector<8x384xf32> to vector<8x128xf32>
    %210 = arith.mulf %208, %167 : vector<8x128xf32>
    %211 = arith.mulf %207, %206 : vector<8x128xf32>
    %212 = arith.addf %210, %211 : vector<8x128xf32>
    %213 = math.tanh %212 : vector<8x128xf32>
    %214 = arith.mulf %209, %213 : vector<8x128xf32>
    %215 = arith.truncf %214 : vector<8x128xf32> to vector<8x128xbf16>
    %c0_67 = arith.constant 0 : index
    %c0_68 = arith.constant 0 : index
    %216 = vector.load %arg4[%c0_67, %c0_68] : memref<128x512xbf16, #tpu.memory_space<vmem>>, vector<128x512xbf16>
    %cst_69 = arith.constant dense<0.000000e+00> : vector<8x512xf32>
    %217 = tpu.matmul %215, %216, %cst_69 {dimension_numbers = #tpu.dot_dimension_numbers<[1], [0], [0], [1], [0, 0, 1, 1], [], []>} : vector<8x128xbf16>, vector<128x512xbf16>, vector<8x512xf32> -> vector<8x512xf32>
    %218 = arith.truncf %193 : vector<8x128xf32> to vector<8x128xbf16>
    %c0_70 = arith.constant 0 : index
    %c0_71 = arith.constant 0 : index
    %219 = vector.load %arg5[%c0_70, %c0_71] : memref<128x512xbf16, #tpu.memory_space<vmem>>, vector<128x512xbf16>
    %cst_72 = arith.constant dense<0.000000e+00> : vector<8x512xf32>
    %220 = tpu.matmul %218, %219, %cst_72 {dimension_numbers = #tpu.dot_dimension_numbers<[1], [0], [0], [1], [0, 0, 1, 1], [], []>} : vector<8x128xbf16>, vector<128x512xbf16>, vector<8x512xf32> -> vector<8x512xf32>
    %221 = arith.addf %217, %220 : vector<8x512xf32>
    %222 = arith.addf %221, %9 : vector<8x512xf32>
    %223 = vector.extract_strided_slice %222 {offsets = [0, 0], sizes = [8, 384], strides = [1, 1]} : vector<8x512xf32> to vector<8x384xf32>
    %224 = arith.negf %223 : vector<8x384xf32>
    %225 = math.exp %224 : vector<8x384xf32>
    %cst_73 = arith.constant 1.000000e+00 : f32
    %226 = vector.broadcast %cst_73 : f32 to vector<8x384xf32>
    %227 = arith.addf %226, %225 : vector<8x384xf32>
    %228 = arith.divf %226, %227 : vector<8x384xf32>
    %229 = vector.extract_strided_slice %222 {offsets = [0, 384], sizes = [8, 128], strides = [1, 1]} : vector<8x512xf32> to vector<8x128xf32>
    %230 = math.tanh %229 : vector<8x128xf32>
    %231 = vector.extract_strided_slice %228 {offsets = [0, 0], sizes = [8, 128], strides = [1, 1]} : vector<8x384xf32> to vector<8x128xf32>
    %232 = vector.extract_strided_slice %228 {offsets = [0, 128], sizes = [8, 128], strides = [1, 1]} : vector<8x384xf32> to vector<8x128xf32>
    %233 = vector.extract_strided_slice %228 {offsets = [0, 256], sizes = [8, 128], strides = [1, 1]} : vector<8x384xf32> to vector<8x128xf32>
    %234 = arith.mulf %232, %191 : vector<8x128xf32>
    %235 = arith.mulf %231, %230 : vector<8x128xf32>
    %236 = arith.addf %234, %235 : vector<8x128xf32>
    %237 = math.tanh %236 : vector<8x128xf32>
    %238 = arith.mulf %233, %237 : vector<8x128xf32>
    %c40 = arith.constant 40 : index
    %c0_74 = arith.constant 0 : index
    %239 = vector.load %arg14[%c40, %c0_74] : memref<64x512xf32, #tpu.memory_space<vmem>>, vector<8x512xf32>
    %240 = arith.truncf %214 : vector<8x128xf32> to vector<8x128xbf16>
    %c0_75 = arith.constant 0 : index
    %c0_76 = arith.constant 0 : index
    %241 = vector.load %arg2[%c0_75, %c0_76] : memref<128x512xbf16, #tpu.memory_space<vmem>>, vector<128x512xbf16>
    %cst_77 = arith.constant dense<0.000000e+00> : vector<8x512xf32>
    %242 = tpu.matmul %240, %241, %cst_77 {dimension_numbers = #tpu.dot_dimension_numbers<[1], [0], [0], [1], [0, 0, 1, 1], [], []>} : vector<8x128xbf16>, vector<128x512xbf16>, vector<8x512xf32> -> vector<8x512xf32>
    %243 = arith.addf %239, %242 : vector<8x512xf32>
    %244 = vector.extract_strided_slice %243 {offsets = [0, 0], sizes = [8, 384], strides = [1, 1]} : vector<8x512xf32> to vector<8x384xf32>
    %245 = arith.negf %244 : vector<8x384xf32>
    %246 = math.exp %245 : vector<8x384xf32>
    %cst_78 = arith.constant 1.000000e+00 : f32
    %247 = vector.broadcast %cst_78 : f32 to vector<8x384xf32>
    %248 = arith.addf %247, %246 : vector<8x384xf32>
    %249 = arith.divf %247, %248 : vector<8x384xf32>
    %250 = vector.extract_strided_slice %243 {offsets = [0, 384], sizes = [8, 128], strides = [1, 1]} : vector<8x512xf32> to vector<8x128xf32>
    %251 = math.tanh %250 : vector<8x128xf32>
    %252 = vector.extract_strided_slice %249 {offsets = [0, 0], sizes = [8, 128], strides = [1, 1]} : vector<8x384xf32> to vector<8x128xf32>
    %253 = vector.extract_strided_slice %249 {offsets = [0, 128], sizes = [8, 128], strides = [1, 1]} : vector<8x384xf32> to vector<8x128xf32>
    %254 = vector.extract_strided_slice %249 {offsets = [0, 256], sizes = [8, 128], strides = [1, 1]} : vector<8x384xf32> to vector<8x128xf32>
    %255 = arith.mulf %253, %212 : vector<8x128xf32>
    %256 = arith.mulf %252, %251 : vector<8x128xf32>
    %257 = arith.addf %255, %256 : vector<8x128xf32>
    %258 = math.tanh %257 : vector<8x128xf32>
    %259 = arith.mulf %254, %258 : vector<8x128xf32>
    %260 = arith.truncf %259 : vector<8x128xf32> to vector<8x128xbf16>
    %c0_79 = arith.constant 0 : index
    %c0_80 = arith.constant 0 : index
    %261 = vector.load %arg4[%c0_79, %c0_80] : memref<128x512xbf16, #tpu.memory_space<vmem>>, vector<128x512xbf16>
    %cst_81 = arith.constant dense<0.000000e+00> : vector<8x512xf32>
    %262 = tpu.matmul %260, %261, %cst_81 {dimension_numbers = #tpu.dot_dimension_numbers<[1], [0], [0], [1], [0, 0, 1, 1], [], []>} : vector<8x128xbf16>, vector<128x512xbf16>, vector<8x512xf32> -> vector<8x512xf32>
    %263 = arith.truncf %238 : vector<8x128xf32> to vector<8x128xbf16>
    %c0_82 = arith.constant 0 : index
    %c0_83 = arith.constant 0 : index
    %264 = vector.load %arg5[%c0_82, %c0_83] : memref<128x512xbf16, #tpu.memory_space<vmem>>, vector<128x512xbf16>
    %cst_84 = arith.constant dense<0.000000e+00> : vector<8x512xf32>
    %265 = tpu.matmul %263, %264, %cst_84 {dimension_numbers = #tpu.dot_dimension_numbers<[1], [0], [0], [1], [0, 0, 1, 1], [], []>} : vector<8x128xbf16>, vector<128x512xbf16>, vector<8x512xf32> -> vector<8x512xf32>
    %266 = arith.addf %262, %265 : vector<8x512xf32>
    %267 = arith.addf %266, %9 : vector<8x512xf32>
    %268 = vector.extract_strided_slice %267 {offsets = [0, 0], sizes = [8, 384], strides = [1, 1]} : vector<8x512xf32> to vector<8x384xf32>
    %269 = arith.negf %268 : vector<8x384xf32>
    %270 = math.exp %269 : vector<8x384xf32>
    %cst_85 = arith.constant 1.000000e+00 : f32
    %271 = vector.broadcast %cst_85 : f32 to vector<8x384xf32>
    %272 = arith.addf %271, %270 : vector<8x384xf32>
    %273 = arith.divf %271, %272 : vector<8x384xf32>
    %274 = vector.extract_strided_slice %267 {offsets = [0, 384], sizes = [8, 128], strides = [1, 1]} : vector<8x512xf32> to vector<8x128xf32>
    %275 = math.tanh %274 : vector<8x128xf32>
    %276 = vector.extract_strided_slice %273 {offsets = [0, 0], sizes = [8, 128], strides = [1, 1]} : vector<8x384xf32> to vector<8x128xf32>
    %277 = vector.extract_strided_slice %273 {offsets = [0, 128], sizes = [8, 128], strides = [1, 1]} : vector<8x384xf32> to vector<8x128xf32>
    %278 = vector.extract_strided_slice %273 {offsets = [0, 256], sizes = [8, 128], strides = [1, 1]} : vector<8x384xf32> to vector<8x128xf32>
    %279 = arith.mulf %277, %236 : vector<8x128xf32>
    %280 = arith.mulf %276, %275 : vector<8x128xf32>
    %281 = arith.addf %279, %280 : vector<8x128xf32>
    %282 = math.tanh %281 : vector<8x128xf32>
    %283 = arith.mulf %278, %282 : vector<8x128xf32>
    %c48 = arith.constant 48 : index
    %c0_86 = arith.constant 0 : index
    %284 = vector.load %arg14[%c48, %c0_86] : memref<64x512xf32, #tpu.memory_space<vmem>>, vector<8x512xf32>
    %285 = arith.truncf %259 : vector<8x128xf32> to vector<8x128xbf16>
    %c0_87 = arith.constant 0 : index
    %c0_88 = arith.constant 0 : index
    %286 = vector.load %arg2[%c0_87, %c0_88] : memref<128x512xbf16, #tpu.memory_space<vmem>>, vector<128x512xbf16>
    %cst_89 = arith.constant dense<0.000000e+00> : vector<8x512xf32>
    %287 = tpu.matmul %285, %286, %cst_89 {dimension_numbers = #tpu.dot_dimension_numbers<[1], [0], [0], [1], [0, 0, 1, 1], [], []>} : vector<8x128xbf16>, vector<128x512xbf16>, vector<8x512xf32> -> vector<8x512xf32>
    %288 = arith.addf %284, %287 : vector<8x512xf32>
    %289 = vector.extract_strided_slice %288 {offsets = [0, 0], sizes = [8, 384], strides = [1, 1]} : vector<8x512xf32> to vector<8x384xf32>
    %290 = arith.negf %289 : vector<8x384xf32>
    %291 = math.exp %290 : vector<8x384xf32>
    %cst_90 = arith.constant 1.000000e+00 : f32
    %292 = vector.broadcast %cst_90 : f32 to vector<8x384xf32>
    %293 = arith.addf %292, %291 : vector<8x384xf32>
    %294 = arith.divf %292, %293 : vector<8x384xf32>
    %295 = vector.extract_strided_slice %288 {offsets = [0, 384], sizes = [8, 128], strides = [1, 1]} : vector<8x512xf32> to vector<8x128xf32>
    %296 = math.tanh %295 : vector<8x128xf32>
    %297 = vector.extract_strided_slice %294 {offsets = [0, 0], sizes = [8, 128], strides = [1, 1]} : vector<8x384xf32> to vector<8x128xf32>
    %298 = vector.extract_strided_slice %294 {offsets = [0, 128], sizes = [8, 128], strides = [1, 1]} : vector<8x384xf32> to vector<8x128xf32>
    %299 = vector.extract_strided_slice %294 {offsets = [0, 256], sizes = [8, 128], strides = [1, 1]} : vector<8x384xf32> to vector<8x128xf32>
    %300 = arith.mulf %298, %257 : vector<8x128xf32>
    %301 = arith.mulf %297, %296 : vector<8x128xf32>
    %302 = arith.addf %300, %301 : vector<8x128xf32>
    %303 = math.tanh %302 : vector<8x128xf32>
    %304 = arith.mulf %299, %303 : vector<8x128xf32>
    %305 = arith.truncf %304 : vector<8x128xf32> to vector<8x128xbf16>
    %c0_91 = arith.constant 0 : index
    %c0_92 = arith.constant 0 : index
    %306 = vector.load %arg4[%c0_91, %c0_92] : memref<128x512xbf16, #tpu.memory_space<vmem>>, vector<128x512xbf16>
    %cst_93 = arith.constant dense<0.000000e+00> : vector<8x512xf32>
    %307 = tpu.matmul %305, %306, %cst_93 {dimension_numbers = #tpu.dot_dimension_numbers<[1], [0], [0], [1], [0, 0, 1, 1], [], []>} : vector<8x128xbf16>, vector<128x512xbf16>, vector<8x512xf32> -> vector<8x512xf32>
    %308 = arith.truncf %283 : vector<8x128xf32> to vector<8x128xbf16>
    %c0_94 = arith.constant 0 : index
    %c0_95 = arith.constant 0 : index
    %309 = vector.load %arg5[%c0_94, %c0_95] : memref<128x512xbf16, #tpu.memory_space<vmem>>, vector<128x512xbf16>
    %cst_96 = arith.constant dense<0.000000e+00> : vector<8x512xf32>
    %310 = tpu.matmul %308, %309, %cst_96 {dimension_numbers = #tpu.dot_dimension_numbers<[1], [0], [0], [1], [0, 0, 1, 1], [], []>} : vector<8x128xbf16>, vector<128x512xbf16>, vector<8x512xf32> -> vector<8x512xf32>
    %311 = arith.addf %307, %310 : vector<8x512xf32>
    %312 = arith.addf %311, %9 : vector<8x512xf32>
    %313 = vector.extract_strided_slice %312 {offsets = [0, 0], sizes = [8, 384], strides = [1, 1]} : vector<8x512xf32> to vector<8x384xf32>
    %314 = arith.negf %313 : vector<8x384xf32>
    %315 = math.exp %314 : vector<8x384xf32>
    %cst_97 = arith.constant 1.000000e+00 : f32
    %316 = vector.broadcast %cst_97 : f32 to vector<8x384xf32>
    %317 = arith.addf %316, %315 : vector<8x384xf32>
    %318 = arith.divf %316, %317 : vector<8x384xf32>
    %319 = vector.extract_strided_slice %312 {offsets = [0, 384], sizes = [8, 128], strides = [1, 1]} : vector<8x512xf32> to vector<8x128xf32>
    %320 = math.tanh %319 : vector<8x128xf32>
    %321 = vector.extract_strided_slice %318 {offsets = [0, 0], sizes = [8, 128], strides = [1, 1]} : vector<8x384xf32> to vector<8x128xf32>
    %322 = vector.extract_strided_slice %318 {offsets = [0, 128], sizes = [8, 128], strides = [1, 1]} : vector<8x384xf32> to vector<8x128xf32>
    %323 = vector.extract_strided_slice %318 {offsets = [0, 256], sizes = [8, 128], strides = [1, 1]} : vector<8x384xf32> to vector<8x128xf32>
    %324 = arith.mulf %322, %281 : vector<8x128xf32>
    %325 = arith.mulf %321, %320 : vector<8x128xf32>
    %326 = arith.addf %324, %325 : vector<8x128xf32>
    %327 = math.tanh %326 : vector<8x128xf32>
    %328 = arith.mulf %323, %327 : vector<8x128xf32>
    %c56 = arith.constant 56 : index
    %c0_98 = arith.constant 0 : index
    %329 = vector.load %arg14[%c56, %c0_98] : memref<64x512xf32, #tpu.memory_space<vmem>>, vector<8x512xf32>
    %330 = arith.truncf %304 : vector<8x128xf32> to vector<8x128xbf16>
    %c0_99 = arith.constant 0 : index
    %c0_100 = arith.constant 0 : index
    %331 = vector.load %arg2[%c0_99, %c0_100] : memref<128x512xbf16, #tpu.memory_space<vmem>>, vector<128x512xbf16>
    %cst_101 = arith.constant dense<0.000000e+00> : vector<8x512xf32>
    %332 = tpu.matmul %330, %331, %cst_101 {dimension_numbers = #tpu.dot_dimension_numbers<[1], [0], [0], [1], [0, 0, 1, 1], [], []>} : vector<8x128xbf16>, vector<128x512xbf16>, vector<8x512xf32> -> vector<8x512xf32>
    %333 = arith.addf %329, %332 : vector<8x512xf32>
    %334 = vector.extract_strided_slice %333 {offsets = [0, 0], sizes = [8, 384], strides = [1, 1]} : vector<8x512xf32> to vector<8x384xf32>
    %335 = arith.negf %334 : vector<8x384xf32>
    %336 = math.exp %335 : vector<8x384xf32>
    %cst_102 = arith.constant 1.000000e+00 : f32
    %337 = vector.broadcast %cst_102 : f32 to vector<8x384xf32>
    %338 = arith.addf %337, %336 : vector<8x384xf32>
    %339 = arith.divf %337, %338 : vector<8x384xf32>
    %340 = vector.extract_strided_slice %333 {offsets = [0, 384], sizes = [8, 128], strides = [1, 1]} : vector<8x512xf32> to vector<8x128xf32>
    %341 = math.tanh %340 : vector<8x128xf32>
    %342 = vector.extract_strided_slice %339 {offsets = [0, 0], sizes = [8, 128], strides = [1, 1]} : vector<8x384xf32> to vector<8x128xf32>
    %343 = vector.extract_strided_slice %339 {offsets = [0, 128], sizes = [8, 128], strides = [1, 1]} : vector<8x384xf32> to vector<8x128xf32>
    %344 = vector.extract_strided_slice %339 {offsets = [0, 256], sizes = [8, 128], strides = [1, 1]} : vector<8x384xf32> to vector<8x128xf32>
    %345 = arith.mulf %343, %302 : vector<8x128xf32>
    %346 = arith.mulf %342, %341 : vector<8x128xf32>
    %347 = arith.addf %345, %346 : vector<8x128xf32>
    %348 = math.tanh %347 : vector<8x128xf32>
    %349 = arith.mulf %344, %348 : vector<8x128xf32>
    %350 = arith.truncf %349 : vector<8x128xf32> to vector<8x128xbf16>
    %c0_103 = arith.constant 0 : index
    %c0_104 = arith.constant 0 : index
    %351 = vector.load %arg4[%c0_103, %c0_104] : memref<128x512xbf16, #tpu.memory_space<vmem>>, vector<128x512xbf16>
    %cst_105 = arith.constant dense<0.000000e+00> : vector<8x512xf32>
    %352 = tpu.matmul %350, %351, %cst_105 {dimension_numbers = #tpu.dot_dimension_numbers<[1], [0], [0], [1], [0, 0, 1, 1], [], []>} : vector<8x128xbf16>, vector<128x512xbf16>, vector<8x512xf32> -> vector<8x512xf32>
    %353 = arith.truncf %328 : vector<8x128xf32> to vector<8x128xbf16>
    %c0_106 = arith.constant 0 : index
    %c0_107 = arith.constant 0 : index
    %354 = vector.load %arg5[%c0_106, %c0_107] : memref<128x512xbf16, #tpu.memory_space<vmem>>, vector<128x512xbf16>
    %cst_108 = arith.constant dense<0.000000e+00> : vector<8x512xf32>
    %355 = tpu.matmul %353, %354, %cst_108 {dimension_numbers = #tpu.dot_dimension_numbers<[1], [0], [0], [1], [0, 0, 1, 1], [], []>} : vector<8x128xbf16>, vector<128x512xbf16>, vector<8x512xf32> -> vector<8x512xf32>
    %356 = arith.addf %352, %355 : vector<8x512xf32>
    %357 = arith.addf %356, %9 : vector<8x512xf32>
    %358 = vector.extract_strided_slice %357 {offsets = [0, 0], sizes = [8, 384], strides = [1, 1]} : vector<8x512xf32> to vector<8x384xf32>
    %359 = arith.negf %358 : vector<8x384xf32>
    %360 = math.exp %359 : vector<8x384xf32>
    %cst_109 = arith.constant 1.000000e+00 : f32
    %361 = vector.broadcast %cst_109 : f32 to vector<8x384xf32>
    %362 = arith.addf %361, %360 : vector<8x384xf32>
    %363 = arith.divf %361, %362 : vector<8x384xf32>
    %364 = vector.extract_strided_slice %357 {offsets = [0, 384], sizes = [8, 128], strides = [1, 1]} : vector<8x512xf32> to vector<8x128xf32>
    %365 = math.tanh %364 : vector<8x128xf32>
    %366 = vector.extract_strided_slice %363 {offsets = [0, 0], sizes = [8, 128], strides = [1, 1]} : vector<8x384xf32> to vector<8x128xf32>
    %367 = vector.extract_strided_slice %363 {offsets = [0, 128], sizes = [8, 128], strides = [1, 1]} : vector<8x384xf32> to vector<8x128xf32>
    %368 = vector.extract_strided_slice %363 {offsets = [0, 256], sizes = [8, 128], strides = [1, 1]} : vector<8x384xf32> to vector<8x128xf32>
    %369 = arith.mulf %367, %326 : vector<8x128xf32>
    %370 = arith.mulf %366, %365 : vector<8x128xf32>
    %371 = arith.addf %369, %370 : vector<8x128xf32>
    %372 = math.tanh %371 : vector<8x128xf32>
    %373 = arith.mulf %368, %372 : vector<8x128xf32>
    %c0_110 = arith.constant 0 : index
    %c0_111 = arith.constant 0 : index
    %374 = vector.load %arg7[%c0_110, %c0_111] : memref<1x128xf32, #tpu.memory_space<vmem>>, vector<1x128xf32>
    %375 = vector.broadcast %374 : vector<1x128xf32> to vector<8x128xf32>
    %376 = arith.mulf %373, %375 : vector<8x128xf32>
    %c0_112 = arith.constant 0 : index
    %c0_113 = arith.constant 0 : index
    %377 = vector.load %arg8[%c0_112, %c0_113] : memref<1x128xf32, #tpu.memory_space<vmem>>, vector<1x128xf32>
    %378 = vector.broadcast %377 : vector<1x128xf32> to vector<8x128xf32>
    %379 = arith.addf %376, %378 : vector<8x128xf32>
    %380 = arith.truncf %379 : vector<8x128xf32> to vector<8x128xbf16>
    %c0_114 = arith.constant 0 : index
    %c0_115 = arith.constant 0 : index
    %381 = vector.load %arg9[%c0_114, %c0_115] : memref<128x128xbf16, #tpu.memory_space<vmem>>, vector<128x128xbf16>
    %cst_116 = arith.constant dense<0.000000e+00> : vector<8x128xf32>
    %382 = tpu.matmul %380, %381, %cst_116 {dimension_numbers = #tpu.dot_dimension_numbers<[1], [0], [0], [1], [0, 0, 1, 1], [], []>} : vector<8x128xbf16>, vector<128x128xbf16>, vector<8x128xf32> -> vector<8x128xf32>
    %c0_117 = arith.constant 0 : index
    %c0_118 = arith.constant 0 : index
    %383 = vector.load %arg10[%c0_117, %c0_118] : memref<1x128xf32, #tpu.memory_space<vmem>>, vector<1x128xf32>
    %384 = vector.broadcast %383 : vector<1x128xf32> to vector<8x128xf32>
    %385 = arith.addf %382, %384 : vector<8x128xf32>
    %cst_119 = arith.constant 0.000000e+00 : f32
    %386 = vector.broadcast %cst_119 : f32 to vector<8x128xf32>
    %387 = arith.maximumf %385, %386 : vector<8x128xf32>
    %388 = arith.truncf %387 : vector<8x128xf32> to vector<8x128xbf16>
    %c0_120 = arith.constant 0 : index
    %c0_121 = arith.constant 0 : index
    %389 = vector.load %arg11[%c0_120, %c0_121] : memref<128x128xbf16, #tpu.memory_space<vmem>>, vector<128x128xbf16>
    %cst_122 = arith.constant dense<0.000000e+00> : vector<8x128xf32>
    %390 = tpu.matmul %388, %389, %cst_122 {dimension_numbers = #tpu.dot_dimension_numbers<[1], [0], [0], [1], [0, 0, 1, 1], [], []>} : vector<8x128xbf16>, vector<128x128xbf16>, vector<8x128xf32> -> vector<8x128xf32>
    %c0_123 = arith.constant 0 : index
    %c0_124 = arith.constant 0 : index
    %391 = vector.load %arg12[%c0_123, %c0_124] : memref<1x128xf32, #tpu.memory_space<vmem>>, vector<1x128xf32>
    %392 = vector.broadcast %391 : vector<1x128xf32> to vector<8x128xf32>
    %393 = arith.addf %390, %392 : vector<8x128xf32>
    %c0_125 = arith.constant 0 : index
    %c0_126 = arith.constant 0 : index
    %394 = vector.load %arg13[%c0_125, %c0_126] : memref<8x128xf32, #tpu.memory_space<vmem>>, vector<8x128xf32>
    tpu.vector_store %arg13[%c0_125, %c0_126], %393 {strides = array<i32>} : memref<8x128xf32, #tpu.memory_space<vmem>>, vector<8x128xf32>,
    return
  }
}

</mosaic_0001>

<bundles_post_ra>
// kernel: tpu_custom_call.1
= control target key start
LH: loop header
LB: loop body
LE: loop exit
PB: predicated region body
PF: predicated region fallthrough
CT: control target
= control target key end

     0   :  { %18 = vsyncpa [#allocation4], 0  ;;  %s6901_s0 = inlined_call_operand.hbm [shape: bf16[64,128], index: 0, kind: input, shape index: {}]   ;;  %s6902_s1 = inlined_call_operand.hbm [shape: bf16[128,512], index: 1, kind: input, shape index: {}]   ;;  %s6903_s2 = inlined_call_operand.hbm [shape: bf16[128,512], index: 2, kind: input, shape index: {}]   ;;  %s6904_s3 = inlined_call_operand.vmem [shape: f32[1,512], index: 3, kind: input, shape index: {}]   ;;  %s6905_s4 = inlined_call_operand.hbm [shape: bf16[128,512], index: 4, kind: input, shape index: {}]   ;;  %s6906_s5 = inlined_call_operand.hbm [shape: bf16[128,512], index: 5, kind: input, shape index: {}]   ;;  %s6907_s6 = inlined_call_operand.vmem [shape: f32[1,512], index: 6, kind: input, shape index: {}]   ;;  %s6908_s7 = inlined_call_operand.vmem [shape: f32[1,128], index: 7, kind: input, shape index: {}]   ;;  %s6909_s8 = inlined_call_operand.vmem [shape: f32[1,128], index: 8, kind: input, shape index: {}]   ;;  %s6910_s9 = inlined_call_operand.hbm [shape: bf16[128,128], index: 9, kind: input, shape index: {}]   ;;  %s6911_s10 = inlined_call_operand.vmem [shape: f32[1,128], index: 10, kind: input, shape index: {}]   ;;  %s6912_s11 = inlined_call_operand.hbm [shape: bf16[128,128], index: 11, kind: input, shape index: {}]   ;;  %s6913_s12 = inlined_call_operand.vmem [shape: f32[1,128], index: 12, kind: input, shape index: {}]   ;;  %s6914_s13 = inlined_call_operand.hbm [shape: f32[8,128], index: 13, kind: output, shape index: {}]  }
   0x1   :  { %19 = vsyncpa [#allocation7], 0 }
   0x2   :  { %20 = vsyncpa [#allocation10], 0 }
   0x3   :  { %21 = vsyncpa [#allocation13], 0 }
   0x4   :  { %22 = vsyncpa [#allocation5], 0  ;;  %s5005_s25 = smov [#allocation6]   ;;  %s4819_s29 = scalar_lea.hbm %s6902_s1, 4096 }
   0x5   :  { %s40_s26 = sshll.u32 %s5005_s25, 4  ;;  %p4820_p0 = scmp.ne.s32.totalorder %s6902_s1, %s4819_s29  ;;  %s41_s26 = int_to_ptr.vmem [resolvable:$true] %s40_s26 }
   0x6   :  { %p4823_p1 = scmp.lt.u32.totalorder %s4819_s29, %s6902_s1 }
   0x8   :  { %p4825_p2 = pnand %p4823_p1, %p4820_p0 }
   0xa   :  { %4828 = shalt.err (!%p4825_p2)
}
   0xb   :  { %s4829_s17 = scalar_lea.vmem %s41_s26, 4096  ;;  %p4834_p4 = scmp.lt.s32.totalorder %s41_s26, %s41_s26 }
   0xc   :  { %p4830_p3 = scmp.ne.s32.totalorder %s41_s26, %s4829_s17  ;;  %p4835_p5 = scmp.lt.s32.totalorder %s4829_s17, %s4829_s17 }
   0xe   :  { %p4836_p6 = por %p4835_p5, %p4834_p4 }
  0x10   :  { %p4837_p7 = pnand %p4836_p6, %p4830_p3 }
  0x12   :  { %4840 = shalt.err (!%p4837_p7)
}
  0x13   :  { %s5006_s18 = smov 256   ;;  %s5007_s19 = smov 16  }
  0x14   :  { %46 = dma.hbm_to_vmem [thread:$0]  %s6902_s1, 4096, %s41_s26, [#allocation7], %s5006_s18, %s5006_s18, %s5007_s19  }
  0x15   :  { %s5008_s22 = smov [#allocation9]   ;;  %s4841_s27 = scalar_lea.hbm %s6905_s4, 4096 }
  0x16   :  { %s66_s23 = sshll.u32 %s5008_s22, 4  ;;  %p4842_p8 = scmp.ne.s32.totalorder %s6905_s4, %s4841_s27  ;;  %s67_s23 = int_to_ptr.vmem [resolvable:$true] %s66_s23 }
  0x17   :  { %p4845_p9 = scmp.lt.u32.totalorder %s4841_s27, %s6905_s4 }
  0x19   :  { %p4847_p10 = pnand %p4845_p9, %p4842_p8 }
  0x1b   :  { %4850 = shalt.err (!%p4847_p10)
}
  0x1c   :  { %s4851_s15 = scalar_lea.vmem %s67_s23, 4096  ;;  %p4856_p12 = scmp.lt.s32.totalorder %s67_s23, %s67_s23 }
  0x1d   :  { %p4852_p11 = scmp.ne.s32.totalorder %s67_s23, %s4851_s15  ;;  %p4857_p13 = scmp.lt.s32.totalorder %s4851_s15, %s4851_s15 }
  0x1f   :  { %p4858_p0 = por %p4857_p13, %p4856_p12 }
  0x21   :  { %p4859_p1 = pnand %p4858_p0, %p4852_p11 }
  0x23   :  { %4862 = shalt.err (!%p4859_p1)
}
  0x24   :  { %72 = dma.hbm_to_vmem [thread:$0]  %s6905_s4, 4096, %s67_s23, [#allocation10], %s5006_s18, %s5006_s18, %s5007_s19  }
  0x25   :  { %s5009_s16 = smov [#allocation12]   ;;  %s5010_s20 = smov [#allocation3]  }
  0x26   :  { %s96_s17 = sshll.u32 %s5009_s16, 4  ;;  %s28_s21 = sshll.u32 %s5010_s20, 4  ;;  %s97_s17 = int_to_ptr.vmem [resolvable:$true] %s96_s17  ;;  %s5120_s21 = int_to_ptr.vmem [resolvable:$true] %s28_s21 }
  0x27   :  { %s4863_s25 = scalar_lea.hbm %s6910_s9, 1024 }
  0x28   :  { %p4864_p2 = scmp.ne.s32.totalorder %s6910_s9, %s4863_s25  ;;  %p4867_p3 = scmp.lt.u32.totalorder %s4863_s25, %s6910_s9 }
  0x2a   :  { %p4869_p4 = pnand %p4867_p3, %p4864_p2 }
  0x2c   :  { %4872 = shalt.err (!%p4869_p4)
}
  0x2d   :  { %s4873_s4 = scalar_lea.vmem %s97_s17, 1024  ;;  %p4878_p6 = scmp.lt.s32.totalorder %s97_s17, %s97_s17 }
  0x2e   :  { %p4874_p5 = scmp.ne.s32.totalorder %s97_s17, %s4873_s4  ;;  %p4879_p7 = scmp.lt.s32.totalorder %s4873_s4, %s4873_s4 }
  0x30   :  { %p4880_p8 = por %p4879_p7, %p4878_p6 }
  0x32   :  { %p4881_p9 = pnand %p4880_p8, %p4874_p5 }
  0x34   :  { %4884 = shalt.err (!%p4881_p9)
}
  0x35   :  { %s5011_s23 = smov 64   ;;  %s5012_s14 = smov 4  }
  0x36   :  { %102 = dma.hbm_to_vmem [thread:$0]  %s6910_s9, 1024, %s97_s17, [#allocation13], %s5011_s23, %s5011_s23, %s5012_s14  }
  0x37   :  { %s4885_s20 = scalar_lea.hbm %s6901_s0, 512 }
  0x38   :  { %p4886_p10 = scmp.ne.s32.totalorder %s6901_s0, %s4885_s20  ;;  %p4889_p11 = scmp.lt.u32.totalorder %s4885_s20, %s6901_s0 }
  0x3a   :  { %p4891_p12 = pnand %p4889_p11, %p4886_p10 }
  0x3c   :  { %4894 = shalt.err (!%p4891_p12)
}
  0x3d   :  { %s4895_s28 = scalar_lea.vmem %s5120_s21, 512  ;;  %p4900_p0 = scmp.lt.s32.totalorder %s5120_s21, %s5120_s21 }
  0x3e   :  { %p4896_p13 = scmp.ne.s32.totalorder %s5120_s21, %s4895_s28  ;;  %p4901_p1 = scmp.lt.s32.totalorder %s4895_s28, %s4895_s28 }
  0x40   :  { %p4902_p2 = por %p4901_p1, %p4900_p0 }
  0x42   :  { %p4903_p3 = pnand %p4902_p2, %p4896_p13 }
  0x44   :  { %4906 = shalt.err (!%p4903_p3)
}
  0x45   :  { %34 = dma.hbm_to_vmem [thread:$0]  %s6901_s0, 512, %s5120_s21, [#allocation4], %s5011_s23, %s5011_s23, %s5012_s14  }
  0x46   :  { %s5013_s29 = smov [#allocation8]   ;;  %s5014_s4 = smov [#allocation11]  }
  0x47   :  { %s52_s30 = sshll.u32 %s5013_s29, 4  ;;  %s78_s15 = sshll.u32 %s5014_s4, 4  ;;  %s53_s30 = int_to_ptr.vmem [resolvable:$true] %s52_s30  ;;  %s5157_s15 = int_to_ptr.vmem [resolvable:$true] %s78_s15 }
  0x48   :  { %s4907_s16 = scalar_lea.hbm %s6903_s2, 4096 }
  0x49   :  { %p4908_p4 = scmp.ne.s32.totalorder %s6903_s2, %s4907_s16  ;;  %p4911_p5 = scmp.lt.u32.totalorder %s4907_s16, %s6903_s2 }
  0x4b   :  { %p4913_p6 = pnand %p4911_p5, %p4908_p4 }
  0x4d   :  { %4916 = shalt.err (!%p4913_p6)
}
  0x4e   :  { %s4917_s0 = scalar_lea.vmem %s53_s30, 4096  ;;  %p4922_p8 = scmp.lt.s32.totalorder %s53_s30, %s53_s30 }
  0x4f   :  { %p4918_p7 = scmp.ne.s32.totalorder %s53_s30, %s4917_s0  ;;  %p4923_p9 = scmp.lt.s32.totalorder %s4917_s0, %s4917_s0 }
  0x51   :  { %p4924_p10 = por %p4923_p9, %p4922_p8 }
  0x53   :  { %p4925_p11 = pnand %p4924_p10, %p4918_p7 }
  0x55   :  { %4928 = shalt.err (!%p4925_p11)
}
  0x56   :  { %58 = dma.hbm_to_vmem [thread:$0]  %s6903_s2, 4096, %s53_s30, [#allocation7], %s5006_s18, %s5006_s18, %s5007_s19  }
  0x57   :  { %s4929_s17 = scalar_lea.hbm %s6906_s5, 4096 }
  0x58   :  { %p4930_p12 = scmp.ne.s32.totalorder %s6906_s5, %s4929_s17  ;;  %p4933_p13 = scmp.lt.u32.totalorder %s4929_s17, %s6906_s5 }
  0x5a   :  { %p4935_p0 = pnand %p4933_p13, %p4930_p12 }
  0x5c   :  { %4938 = shalt.err (!%p4935_p0)
}
  0x5d   :  { %s4939_s16 = scalar_lea.vmem %s5157_s15, 4096  ;;  %p4944_p2 = scmp.lt.s32.totalorder %s5157_s15, %s5157_s15 }
  0x5e   :  { %p4940_p1 = scmp.ne.s32.totalorder %s5157_s15, %s4939_s16  ;;  %p4945_p3 = scmp.lt.s32.totalorder %s4939_s16, %s4939_s16 }
  0x60   :  { %p4946_p4 = por %p4945_p3, %p4944_p2 }
  0x62   :  { %p4947_p5 = pnand %p4946_p4, %p4940_p1 }
  0x64   :  { %4950 = shalt.err (!%p4947_p5)
}
  0x65   :  { %84 = dma.hbm_to_vmem [thread:$0]  %s6906_s5, 4096, %s5157_s15, [#allocation10], %s5006_s18, %s5006_s18, %s5007_s19  }
  0x66   :  { %s5015_s20 = smov [#allocation14]   ;;  %s4951_s0 = scalar_lea.hbm %s6912_s11, 1024 }
  0x67   :  { %s110_s22 = sshll.u32 %s5015_s20, 4  ;;  %p4952_p6 = scmp.ne.s32.totalorder %s6912_s11, %s4951_s0  ;;  %s111_s22 = int_to_ptr.vmem [resolvable:$true] %s110_s22 }
  0x68   :  { %p4955_p7 = scmp.lt.u32.totalorder %s4951_s0, %s6912_s11 }
  0x6a   :  { %p4957_p8 = pnand %p4955_p7, %p4952_p6 }
  0x6c   :  { %4960 = shalt.err (!%p4957_p8)
}
  0x6d   :  { %s4961_s17 = scalar_lea.vmem %s111_s22, 1024  ;;  %p4966_p10 = scmp.lt.s32.totalorder %s111_s22, %s111_s22 }
  0x6e   :  { %p4962_p9 = scmp.ne.s32.totalorder %s111_s22, %s4961_s17  ;;  %p4967_p11 = scmp.lt.s32.totalorder %s4961_s17, %s4961_s17 }
  0x70   :  { %p4968_p12 = por %p4967_p11, %p4966_p10 }
  0x72   :  { %p4969_p13 = pnand %p4968_p12, %p4962_p9 }
  0x74   :  { %4972 = shalt.err (!%p4969_p13)
}
  0x75   :  { %116 = dma.hbm_to_vmem [thread:$0]  %s6912_s11, 1024, %s111_s22, [#allocation13], %s5011_s23, %s5011_s23, %s5012_s14  }
  0x76   :  { %4995 = dma.done.wait [#allocation4], 512  }
  0x77   :  { %4996 = vsyncadd [#allocation4], 4294966784 }
  0x78   :  { %4997 = dma.done.wait [#allocation7], 8192  }
  0x79   :  { %4998 = vsyncadd [#allocation7], 4294959104 }
  0x7a   :  { %4999 = dma.done.wait [#allocation10], 8192  }
  0x7b   :  { %5000 = vsyncadd [#allocation10], 4294959104 }
  0x7c   :  { %5001 = dma.done.wait [#allocation13], 2048  }
  0x7d   :  { %5002 = vsyncadd [#allocation13], 4294965248  ;;  %v6915_v0 = vmov 0   ;;  %v4159_v1 = vld [vmem:[#allocation6 + $0x4] ss:$16 sps:$4 sm:$0xff]   ;;  %v4220_v44 = vld [vmem:[#allocation3 + $0x8] sm:$0xff]  }
  0x7e   :  { %419 = vmatprep.mubr.bf16.mxu0 %v6915_v0  ;;  %492 = vmatprep.mubr.bf16.mxu1 %v6915_v0  ;;  %v4161_v2 = vld [vmem:[#allocation6 + $0xc] ss:$16 sps:$4 sm:$0xff]   ;;  %v4163_v3 = vld [vmem:[#allocation6] ss:$16 sps:$4 sm:$0xff]   ;;  %v4164_v4 = vld [vmem:[#allocation6 + $0x8] ss:$16 sps:$4 sm:$0xff]  }
  0x7f   :  { %387 = vmatprep.subr.bf16.mxu0 %v4159_v1  ;;  %460 = vmatprep.subr.bf16.mxu1 %v4161_v2  ;;  %v4165_v5 = vld [vmem:[#allocation6 + $0x24] ss:$16 sps:$4 sm:$0xff]   ;;  %v4167_v6 = vld [vmem:[#allocation6 + $0x2c] ss:$16 sps:$4 sm:$0xff]   ;;  %v4169_v7 = vld [vmem:[#allocation6 + $0x20] ss:$16 sps:$4 sm:$0xff]  }
  0x80   :  { %388 = vmatpush1.bf16.msra.mxu0 %v4163_v3  ;;  %461 = vmatpush1.bf16.msra.mxu1 %v4164_v4  ;;  %v4170_v8 = vld [vmem:[#allocation6 + $0x28] ss:$16 sps:$4 sm:$0xff]   ;;  %v4171_v9 = vld [vmem:[#allocation6 + $0x44] ss:$16 sps:$4 sm:$0xff]   ;;  %v4173_v10 = vld [vmem:[#allocation6 + $0x4c] ss:$16 sps:$4 sm:$0xff]  }
  0x81   :  { %389 = vmatprep.subr.bf16.mxu0 %v4165_v5  ;;  %462 = vmatprep.subr.bf16.mxu1 %v4167_v6  ;;  %v4175_v11 = vld [vmem:[#allocation6 + $0x40] ss:$16 sps:$4 sm:$0xff]   ;;  %v4176_v12 = vld [vmem:[#allocation6 + $0x48] ss:$16 sps:$4 sm:$0xff]   ;;  %v4177_v13 = vld [vmem:[#allocation6 + $0x64] ss:$16 sps:$4 sm:$0xff]  }
  0x82   :  { %v4179_v14 = vld [vmem:[#allocation6 + $0x6c] ss:$16 sps:$4 sm:$0xff]   ;;  %v4181_v15 = vld [vmem:[#allocation6 + $0x60] ss:$16 sps:$4 sm:$0xff]   ;;  %v4182_v16 = vld [vmem:[#allocation6 + $0x68] ss:$16 sps:$4 sm:$0xff]  }
  0x83   :  { %v4183_v17 = vld [vmem:[#allocation6 + $0x84] ss:$16 sps:$4 sm:$0xff]   ;;  %v4185_v18 = vld [vmem:[#allocation6 + $0x8c] ss:$16 sps:$4 sm:$0xff]   ;;  %v4187_v19 = vld [vmem:[#allocation6 + $0x80] ss:$16 sps:$4 sm:$0xff]  }
  0x84   :  { %390 = vmatpush1.bf16.msra.mxu0 %v4169_v7  ;;  %463 = vmatpush1.bf16.msra.mxu1 %v4170_v8  ;;  %v4188_v20 = vld [vmem:[#allocation6 + $0x88] ss:$16 sps:$4 sm:$0xff]   ;;  %v4189_v21 = vld [vmem:[#allocation6 + $0xa4] ss:$16 sps:$4 sm:$0xff]   ;;  %v4191_v22 = vld [vmem:[#allocation6 + $0xac] ss:$16 sps:$4 sm:$0xff]  }
  0x85   :  { %391 = vmatprep.subr.bf16.mxu0 %v4171_v9  ;;  %464 = vmatprep.subr.bf16.mxu1 %v4173_v10  ;;  %v4193_v23 = vld [vmem:[#allocation6 + $0xa0] ss:$16 sps:$4 sm:$0xff]   ;;  %v4194_v24 = vld [vmem:[#allocation6 + $0xa8] ss:$16 sps:$4 sm:$0xff]   ;;  %v4195_v25 = vld [vmem:[#allocation6 + $0xc4] ss:$16 sps:$4 sm:$0xff]  }
  0x86   :  { %v4197_v26 = vld [vmem:[#allocation6 + $0xcc] ss:$16 sps:$4 sm:$0xff]   ;;  %v4199_v27 = vld [vmem:[#allocation6 + $0xc0] ss:$16 sps:$4 sm:$0xff]   ;;  %v4200_v28 = vld [vmem:[#allocation6 + $0xc8] ss:$16 sps:$4 sm:$0xff]  }
  0x87   :  { %v4201_v29 = vld [vmem:[#allocation6 + $0xe4] ss:$16 sps:$4 sm:$0xff]   ;;  %v4203_v30 = vld [vmem:[#allocation6 + $0xec] ss:$16 sps:$4 sm:$0xff]   ;;  %v4205_v31 = vld [vmem:[#allocation6 + $0xe0] ss:$16 sps:$4 sm:$0xff]  }
  0x88   :  { %392 = vmatpush1.bf16.msra.mxu0 %v4175_v11  ;;  %465 = vmatpush1.bf16.msra.mxu1 %v4176_v12  ;;  %v4206_v32 = vld [vmem:[#allocation6 + $0xe8] ss:$16 sps:$4 sm:$0xff]   ;;  %v5211_v33 = vld [vmem:[#allocation8 + $0x4] ss:$16 sps:$4 sm:$0xff]   ;;  %v5213_v34 = vld [vmem:[#allocation8 + $0xc] ss:$16 sps:$4 sm:$0xff]  }
  0x89   :  { %393 = vmatprep.subr.bf16.mxu0 %v4177_v13  ;;  %466 = vmatprep.subr.bf16.mxu1 %v4179_v14  ;;  %v4207_v35 = vld [vmem:[#allocation3] sm:$0xff]   ;;  %v5217_v37 = vld [vmem:[#allocation8 + $0x8] ss:$16 sps:$4 sm:$0xff]   ;;  %v5223_v39 = vld [vmem:[#allocation8 + $0x2c] ss:$16 sps:$4 sm:$0xff]   ;;  %vm5018_vm0 = vmmov 0  }
  0x8a   :  { %v5215_v36 = vld [vmem:[#allocation8] ss:$16 sps:$4 sm:$0xff]   ;;  %v5221_v38 = vld [vmem:[#allocation8 + $0x24] ss:$16 sps:$4 sm:$0xff]   ;;  %v5229_v41 = vld [vmem:[#allocation8 + $0x28] ss:$16 sps:$4 sm:$0xff]  }
  0x8b   :  { %v5225_v40 = vld [vmem:[#allocation8 + $0x20] ss:$16 sps:$4 sm:$0xff]   ;;  %v5233_v42 = vld [vmem:[#allocation8 + $0x44] ss:$16 sps:$4 sm:$0xff]   ;;  %v5235_v43 = vld [vmem:[#allocation8 + $0x4c] ss:$16 sps:$4 sm:$0xff]  }
  0x8c   :  { %394 = vmatpush1.bf16.msra.mxu0 %v4181_v15  ;;  %467 = vmatpush1.bf16.msra.mxu1 %v4182_v16  ;;  %v5239_v45 = vld [vmem:[#allocation8 + $0x40] ss:$16 sps:$4 sm:$0xff]   ;;  %v5241_v46 = vld [vmem:[#allocation8 + $0x48] ss:$16 sps:$4 sm:$0xff]   ;;  %v5245_v47 = vld [vmem:[#allocation8 + $0x64] ss:$16 sps:$4 sm:$0xff]  }
  0x8d   :  { %395 = vmatprep.subr.bf16.mxu0 %v4183_v17  ;;  %468 = vmatprep.subr.bf16.mxu1 %v4185_v18  ;;  %v5249_v48 = vld [vmem:[#allocation8 + $0x6c] ss:$16 sps:$4 sm:$0xff]   ;;  %v5251_v49 = vld [vmem:[#allocation8 + $0x60] ss:$16 sps:$4 sm:$0xff]   ;;  %v5253_v50 = vld [vmem:[#allocation8 + $0x68] ss:$16 sps:$4 sm:$0xff]  }
  0x8e   :  { %v5257_v51 = vld [vmem:[#allocation8 + $0x84] ss:$16 sps:$4 sm:$0xff]   ;;  %v5261_v52 = vld [vmem:[#allocation8 + $0x8c] ss:$16 sps:$4 sm:$0xff]   ;;  %v5265_v54 = vld [vmem:[#allocation8 + $0x80] ss:$16 sps:$4 sm:$0xff]  }
  0x8f   :  { %v4233_v53 = vld [vmem:[#allocation3 + $0x10] sm:$0xff]   ;;  %v5267_v55 = vld [vmem:[#allocation8 + $0x88] ss:$16 sps:$4 sm:$0xff]   ;;  %v5271_v57 = vld [vmem:[#allocation8 + $0xac] ss:$16 sps:$4 sm:$0xff]   ;;  %s5019_s26 = smov [#allocation15]  }
  0x90   :  { %396 = vmatpush1.bf16.msra.mxu0 %v4187_v19  ;;  %469 = vmatpush1.bf16.msra.mxu1 %v4188_v20  ;;  %v5269_v56 = vld [vmem:[#allocation8 + $0xa4] ss:$16 sps:$4 sm:$0xff]   ;;  %v5277_v58 = vld [vmem:[#allocation8 + $0xa0] ss:$16 sps:$4 sm:$0xff]   ;;  %v5279_v59 = vld [vmem:[#allocation8 + $0xa8] ss:$16 sps:$4 sm:$0xff]  }
  0x91   :  { %397 = vmatprep.subr.bf16.mxu0 %v4189_v21  ;;  %470 = vmatprep.subr.bf16.mxu1 %v4191_v22  ;;  %v5281_v60 = vld [vmem:[#allocation8 + $0xc4] ss:$16 sps:$4 sm:$0xff]   ;;  %v5283_v61 = vld [vmem:[#allocation8 + $0xcc] ss:$16 sps:$4 sm:$0xff]   ;;  %v5291_v63 = vld [vmem:[#allocation8 + $0xc0] ss:$16 sps:$4 sm:$0xff]  }
  0x92   :  { %v4246_v62 = vld [vmem:[#allocation3 + $0x18] sm:$0xff]   ;;  %v5295_v2 = vld [vmem:[#allocation8 + $0xe4] ss:$16 sps:$4 sm:$0xff]   ;;  %v5303_v4 = vld [vmem:[#allocation8 + $0xe0] ss:$16 sps:$4 sm:$0xff]   ;;  %s3874_s16 = sshll.u32 %s5019_s26, 4  ;;  %s3875_s16 = int_to_ptr.vmem [resolvable:$true] %s3874_s16 }
  0x93   :  { %v5293_v1 = vld [vmem:[#allocation8 + $0xc8] ss:$16 sps:$4 sm:$0xff]   ;;  %v5297_v3 = vld [vmem:[#allocation8 + $0xec] ss:$16 sps:$4 sm:$0xff]   ;;  %v5319_v6 = vld [vmem:[#allocation11 + $0x4] ss:$16 sps:$4 sm:$0xff]   ;;  %p4978_p1 = scmp.lt.s32.totalorder %s3875_s16, %s3875_s16 }
  0x94   :  { %398 = vmatpush1.bf16.msra.mxu0 %v4193_v23  ;;  %471 = vmatpush1.bf16.msra.mxu1 %v4194_v24  ;;  %v5305_v5 = vld [vmem:[#allocation8 + $0xe8] ss:$16 sps:$4 sm:$0xff]   ;;  %v5321_v7 = vld [vmem:[#allocation11 + $0xc] ss:$16 sps:$4 sm:$0xff]   ;;  %v5323_v8 = vld [vmem:[#allocation11] ss:$16 sps:$4 sm:$0xff]  }
  0x95   :  { %399 = vmatprep.subr.bf16.mxu0 %v4195_v25  ;;  %472 = vmatprep.subr.bf16.mxu1 %v4197_v26  ;;  %v5326_v9 = vld [vmem:[#allocation11 + $0x8] ss:$16 sps:$4 sm:$0xff]   ;;  %v5331_v10 = vld [vmem:[#allocation11 + $0x24] ss:$16 sps:$4 sm:$0xff]   ;;  %v5333_v11 = vld [vmem:[#allocation11 + $0x2c] ss:$16 sps:$4 sm:$0xff]  }
  0x96   :  { %v5335_v12 = vld [vmem:[#allocation11 + $0x20] ss:$16 sps:$4 sm:$0xff]   ;;  %v5338_v13 = vld [vmem:[#allocation11 + $0x28] ss:$16 sps:$4 sm:$0xff]   ;;  %v5343_v14 = vld [vmem:[#allocation11 + $0x44] ss:$16 sps:$4 sm:$0xff]  }
  0x97   :  { %7185 = vst [vmem:[#allocation21_spill] sm:$0xff] %v5343_v14  ;;  %v5345_v15 = vld [vmem:[#allocation11 + $0x4c] ss:$16 sps:$4 sm:$0xff]   ;;  %v5347_v16 = vld [vmem:[#allocation11 + $0x40] ss:$16 sps:$4 sm:$0xff]  }
  0x98   :  { %400 = vmatpush1.bf16.msra.mxu0 %v4199_v27  ;;  %473 = vmatpush1.bf16.msra.mxu1 %v4200_v28  ;;  %7186 = vst [vmem:[#allocation22_spill] sm:$0xff] %v5345_v15  ;;  %7187 = vst [vmem:[#allocation23_spill] sm:$0xff] %v5347_v16  ;;  %v5350_v17 = vld [vmem:[#allocation11 + $0x48] ss:$16 sps:$4 sm:$0xff]   ;;  %v5355_v18 = vld [vmem:[#allocation11 + $0x64] ss:$16 sps:$4 sm:$0xff]  }
  0x99   :  { %401 = vmatprep.subr.bf16.mxu0 %v4201_v29  ;;  %474 = vmatprep.subr.bf16.mxu1 %v4203_v30  ;;  %7188 = vst [vmem:[#allocation24_spill] sm:$0xff] %v5350_v17  ;;  %7189 = vst [vmem:[#allocation25_spill] sm:$0xff] %v5355_v18  ;;  %v5357_v19 = vld [vmem:[#allocation11 + $0x6c] ss:$16 sps:$4 sm:$0xff]   ;;  %v5359_v20 = vld [vmem:[#allocation11 + $0x60] ss:$16 sps:$4 sm:$0xff]  }
  0x9a   :  { %7190 = vst [vmem:[#allocation26_spill] sm:$0xff] %v5357_v19  ;;  %7191 = vst [vmem:[#allocation27_spill] sm:$0xff] %v5359_v20  ;;  %v5362_v21 = vld [vmem:[#allocation11 + $0x68] ss:$16 sps:$4 sm:$0xff]   ;;  %v5367_v22 = vld [vmem:[#allocation11 + $0x84] ss:$16 sps:$4 sm:$0xff]  }
  0x9b   :  { %7192 = vst [vmem:[#allocation28_spill] sm:$0xff] %v5362_v21  ;;  %7193 = vst [vmem:[#allocation29_spill] sm:$0xff] %v5367_v22  ;;  %v5369_v23 = vld [vmem:[#allocation11 + $0x8c] ss:$16 sps:$4 sm:$0xff]   ;;  %v5371_v24 = vld [vmem:[#allocation11 + $0x80] ss:$16 sps:$4 sm:$0xff]  }
  0x9c   :  { %402 = vmatpush1.bf16.msra.mxu0 %v4205_v31  ;;  %475 = vmatpush1.bf16.msra.mxu1 %v4206_v32  ;;  %7194 = vst [vmem:[#allocation30_spill] sm:$0xff] %v5369_v23  ;;  %7195 = vst [vmem:[#allocation31_spill] sm:$0xff] %v5371_v24  ;;  %v5374_v25 = vld [vmem:[#allocation11 + $0x88] ss:$16 sps:$4 sm:$0xff]   ;;  %v5379_v26 = vld [vmem:[#allocation11 + $0xa4] ss:$16 sps:$4 sm:$0xff]  }
  0x9d   :  { %783 = vmatprep.subr.bf16.mxu0 %v5211_v33  ;;  %824 = vmatprep.subr.bf16.mxu1 %v5213_v34  ;;  %7196 = vst [vmem:[#allocation32_spill] sm:$0xff] %v5374_v25  ;;  %7197 = vst [vmem:[#allocation33_spill] sm:$0xff] %v5379_v26  ;;  %v5381_v27 = vld [vmem:[#allocation11 + $0xac] ss:$16 sps:$4 sm:$0xff]   ;;  %v5383_v28 = vld [vmem:[#allocation11 + $0xa0] ss:$16 sps:$4 sm:$0xff]  }
  0x9e   :  { %7198 = vst [vmem:[#allocation34_spill] sm:$0xff] %v5381_v27  ;;  %7199 = vst [vmem:[#allocation35_spill] sm:$0xff] %v5383_v28  ;;  %v5386_v29 = vld [vmem:[#allocation11 + $0xa8] ss:$16 sps:$4 sm:$0xff]   ;;  %v5391_v30 = vld [vmem:[#allocation11 + $0xc4] ss:$16 sps:$4 sm:$0xff]  }
  0x9f   :  { %420 = vmatmul.mubr.bf16.vlgmr.msra.gmra.mrb[0].mxu0 %v4207_v35  ;;  %493 = vmatmul.mubr.bf16.vlgmr.msra.gmra.mrb[0].mxu1 %v4207_v35  ;;  %7200 = vst [vmem:[#allocation36_spill] sm:$0xff] %v5386_v29  ;;  %7201 = vst [vmem:[#allocation37_spill] sm:$0xff] %v5391_v30  ;;  %v5393_v31 = vld [vmem:[#allocation11 + $0xcc] ss:$16 sps:$4 sm:$0xff]   ;;  %v5395_v32 = vld [vmem:[#allocation11 + $0xc0] ss:$16 sps:$4 sm:$0xff]  }
  0xa0   :  { %784 = vmatpush1.bf16.msra.mxu0 %v5215_v36  ;;  %825 = vmatpush1.bf16.msra.mxu1 %v5217_v37  ;;  %7202 = vst [vmem:[#allocation38_spill] sm:$0xff] %v5393_v31  ;;  %7203 = vst [vmem:[#allocation39_spill] sm:$0xff] %v5395_v32  ;;  %v5398_v35 = vld [vmem:[#allocation11 + $0xc8] ss:$16 sps:$4 sm:$0xff]  }
  0xa1   :  { %785 = vmatprep.subr.bf16.mxu0 %v5221_v38  ;;  %826 = vmatprep.subr.bf16.mxu1 %v5223_v39  ;;  %7204 = vst [vmem:[#allocation40_spill] sm:$0xff] %v5398_v35 }
  0xa2   :  { %429 = vmatprep.mubr.bf16.mxu0 %v6915_v0  ;;  %502 = vmatprep.mubr.bf16.mxu1 %v6915_v0 }
  0xa4   :  { %786 = vmatpush1.bf16.msra.mxu0 %v5225_v40  ;;  %827 = vmatpush1.bf16.msra.mxu1 %v5229_v41 }
  0xa5   :  { %787 = vmatprep.subr.bf16.mxu0 %v5233_v42  ;;  %828 = vmatprep.subr.bf16.mxu1 %v5235_v43 }
  0xa7   :  { %430 = vmatmul.mubr.bf16.gmra.mrb[4].mxu0 %v4220_v44  ;;  %503 = vmatmul.mubr.bf16.gmra.mrb[4].mxu1 %v4220_v44  ;;  %v5403_v44 = vld [vmem:[#allocation11 + $0xe4] ss:$16 sps:$4 sm:$0xff]  }
  0xa8   :  { %788 = vmatpush1.bf16.msra.mxu0 %v5239_v45  ;;  %829 = vmatpush1.bf16.msra.mxu1 %v5241_v46  ;;  %7205 = vst [vmem:[#allocation41_spill] sm:$0xff] %v5403_v44 }
  0xa9   :  { %789 = vmatprep.subr.bf16.mxu0 %v5245_v47  ;;  %830 = vmatprep.subr.bf16.mxu1 %v5249_v48 }
  0xaa   :  { %439 = vmatprep.mubr.bf16.mxu0 %v6915_v0  ;;  %512 = vmatprep.mubr.bf16.mxu1 %v6915_v0 }
  0xac   :  { %790 = vmatpush1.bf16.msra.mxu0 %v5251_v49  ;;  %831 = vmatpush1.bf16.msra.mxu1 %v5253_v50 }
  0xad   :  { %791 = vmatprep.subr.bf16.mxu0 %v5257_v51  ;;  %832 = vmatprep.subr.bf16.mxu1 %v5261_v52 }
  0xaf   :  { %440 = vmatmul.mubr.bf16.gmra.mrb[8].mxu0 %v4233_v53  ;;  %513 = vmatmul.mubr.bf16.gmra.mrb[8].mxu1 %v4233_v53  ;;  %v5405_v53 = vld [vmem:[#allocation11 + $0xec] ss:$16 sps:$4 sm:$0xff]  }
  0xb0   :  { %792 = vmatpush1.bf16.msra.mxu0 %v5265_v54  ;;  %833 = vmatpush1.bf16.msra.mxu1 %v5267_v55  ;;  %7206 = vst [vmem:[#allocation42_spill] sm:$0xff] %v5405_v53 }
  0xb1   :  { %793 = vmatprep.subr.bf16.mxu0 %v5269_v56  ;;  %834 = vmatprep.subr.bf16.mxu1 %v5271_v57 }
  0xb2   :  { %449 = vmatprep.mubr.bf16.mxu0 %v6915_v0  ;;  %522 = vmatprep.mubr.bf16.mxu1 %v6915_v0 }
  0xb4   :  { %794 = vmatpush1.bf16.msra.mxu0 %v5277_v58  ;;  %835 = vmatpush1.bf16.msra.mxu1 %v5279_v59 }
  0xb5   :  { %795 = vmatprep.subr.bf16.mxu0 %v5281_v60  ;;  %836 = vmatprep.subr.bf16.mxu1 %v5283_v61 }
  0xb7   :  { %450 = vmatmul.mubr.bf16.gmra.mrb[12].mxu0 %v4246_v62  ;;  %523 = vmatmul.mubr.bf16.gmra.mrb[12].mxu1 %v4246_v62  ;;  %v5407_v62 = vld [vmem:[#allocation11 + $0xe0] ss:$16 sps:$4 sm:$0xff]  }
  0xb8   :  { %796 = vmatpush1.bf16.msra.mxu0 %v5291_v63  ;;  %837 = vmatpush1.bf16.msra.mxu1 %v5293_v1  ;;  %7207 = vst [vmem:[#allocation43_spill] sm:$0xff] %v5407_v62 }
  0xb9   :  { %797 = vmatprep.subr.bf16.mxu0 %v5295_v2  ;;  %838 = vmatprep.subr.bf16.mxu1 %v5297_v3 }
  0xba   :  { %815 = vmatprep.mubr.bf16.mxu0 %v6915_v0  ;;  %856 = vmatprep.mubr.bf16.mxu1 %v6915_v0 }
  0xbc   :  { %798 = vmatpush1.bf16.msra.mxu0 %v5303_v4  ;;  %839 = vmatpush1.bf16.msra.mxu1 %v5305_v5 }
  0xbd   :  { %1118 = vmatprep.subr.bf16.mxu0 %v5319_v6  ;;  %1159 = vmatprep.subr.bf16.mxu1 %v5321_v7 }
  0xbf   :  { %816 = vmatmul.mubr.bf16.vlgmr.msra.gmra.mrb[16].mxu0 %v6915_v0  ;;  %857 = vmatmul.mubr.bf16.vlgmr.msra.gmra.mrb[16].mxu1 %v6915_v0 }
  0xc0   :  { %1150 = vmatprep.mubr.bf16.mxu0 %v6915_v0  ;;  %1191 = vmatprep.mubr.bf16.mxu1 %v6915_v0  ;;  %v5410_v0 = vld [vmem:[#allocation11 + $0xe8] ss:$16 sps:$4 sm:$0xff]  }
  0xc1   :  { %1119 = vmatpush1.bf16.msra.mxu0 %v5323_v8  ;;  %1160 = vmatpush1.bf16.msra.mxu1 %v5326_v9  ;;  %7208 = vst [vmem:[#allocation44_spill] sm:$0xff] %v5410_v0 }
  0xc2   :  { %1120 = vmatprep.subr.bf16.mxu0 %v5331_v10  ;;  %1161 = vmatprep.subr.bf16.mxu1 %v5333_v11 }
  0xc5   :  { %1121 = vmatpush1.bf16.msra.mxu0 %v5335_v12  ;;  %1162 = vmatpush1.bf16.msra.mxu1 %v5338_v13 }
  0xc6   :  { %1122 = vmatprep.subr.bf16.mxu0 %v5343_v14  ;;  %1163 = vmatprep.subr.bf16.mxu1 %v5345_v15 }
  0xc9   :  { %1123 = vmatpush1.bf16.msra.mxu0 %v5347_v16  ;;  %1164 = vmatpush1.bf16.msra.mxu1 %v5350_v17 }
  0xca   :  { %1124 = vmatprep.subr.bf16.mxu0 %v5355_v18  ;;  %1165 = vmatprep.subr.bf16.mxu1 %v5357_v19 }
  0xcd   :  { %1125 = vmatpush1.bf16.msra.mxu0 %v5359_v20  ;;  %1166 = vmatpush1.bf16.msra.mxu1 %v5362_v21 }
  0xce   :  { %1126 = vmatprep.subr.bf16.mxu0 %v5367_v22  ;;  %1167 = vmatprep.subr.bf16.mxu1 %v5369_v23 }
  0xd1   :  { %1127 = vmatpush1.bf16.msra.mxu0 %v5371_v24  ;;  %1168 = vmatpush1.bf16.msra.mxu1 %v5374_v25 }
  0xd2   :  { %1128 = vmatprep.subr.bf16.mxu0 %v5379_v26  ;;  %1169 = vmatprep.subr.bf16.mxu1 %v5381_v27  ;;  %v5489_v27 = vld [vmem:[#allocation9 + $0xcc] ss:$16 sps:$4 sm:$0xff]  }
  0xd3   :  { %7235 = vst [vmem:[#allocation70_spill] sm:$0xff] %v5489_v27 }
  0xd5   :  { %1129 = vmatpush1.bf16.msra.mxu0 %v5383_v28  ;;  %1170 = vmatpush1.bf16.msra.mxu1 %v5386_v29  ;;  %v5422_v29 = vld [vmem:[#allocation9 + $0x8] ss:$16 sps:$4 sm:$0xff]   ;;  %v5487_v28 = vld [vmem:[#allocation9 + $0xc4] ss:$16 sps:$4 sm:$0xff]  }
  0xd6   :  { %1130 = vmatprep.subr.bf16.mxu0 %v5391_v30  ;;  %1171 = vmatprep.subr.bf16.mxu1 %v5393_v31  ;;  %v5415_v31 = vld [vmem:[#allocation9 + $0x4] ss:$16 sps:$4 sm:$0xff]   ;;  %v5420_v30 = vld [vmem:[#allocation9] ss:$16 sps:$4 sm:$0xff]   ;;  %7213 = vst [vmem:[#allocation48_spill] sm:$0xff] %v5422_v29  ;;  %7234 = vst [vmem:[#allocation69_spill] sm:$0xff] %v5487_v28 }
  0xd7   :  { %7209 = vst [vmem:[#allocation45_spill] sm:$0xff] %v5415_v31  ;;  %7212 = vst [vmem:[#allocation47_spill] sm:$0xff] %v5420_v30 }
  0xd9   :  { %1131 = vmatpush1.bf16.msra.mxu0 %v5395_v32  ;;  %1172 = vmatpush1.bf16.msra.mxu1 %v5398_v35  ;;  %v5417_v32 = vld [vmem:[#allocation9 + $0xc] ss:$16 sps:$4 sm:$0xff]   ;;  %v7211_v35 = vmov 0  }
  0xda   :  { %1132 = vmatprep.subr.bf16.mxu0 %v5403_v44  ;;  %1173 = vmatprep.subr.bf16.mxu1 %v5405_v53  ;;  %7210 = vst [vmem:[#allocation46_spill] sm:$0xff] %v5417_v32  ;;  %v5434_v53 = vld [vmem:[#allocation9 + $0x20] ss:$16 sps:$4 sm:$0xff]   ;;  %v5436_v44 = vld [vmem:[#allocation9 + $0x28] ss:$16 sps:$4 sm:$0xff]  }
  0xdb   :  { %7216 = vst [vmem:[#allocation51_spill] sm:$0xff] %v5434_v53  ;;  %7217 = vst [vmem:[#allocation52_spill] sm:$0xff] %v5436_v44 }
  0xdd   :  { %1133 = vmatpush1.bf16.msra.mxu0 %v5407_v62  ;;  %1174 = vmatpush1.bf16.msra.mxu1 %v5410_v0  ;;  %v5429_v0 = vld [vmem:[#allocation9 + $0x24] ss:$16 sps:$4 sm:$0xff]   ;;  %v5431_v62 = vld [vmem:[#allocation9 + $0x2c] ss:$16 sps:$4 sm:$0xff]  }
  0xde   :  { %1360 = vmatprep.subr.bf16.mxu0 %v5415_v31  ;;  %1401 = vmatprep.subr.bf16.mxu1 %v5417_v32  ;;  %7214 = vst [vmem:[#allocation49_spill] sm:$0xff] %v5429_v0  ;;  %7215 = vst [vmem:[#allocation50_spill] sm:$0xff] %v5431_v62  ;;  %v5447_v32 = vld [vmem:[#allocation9 + $0x40] ss:$16 sps:$4 sm:$0xff]   ;;  %v5449_v31 = vld [vmem:[#allocation9 + $0x48] ss:$16 sps:$4 sm:$0xff]  }
  0xdf   :  { %7220 = vst [vmem:[#allocation55_spill] sm:$0xff] %v5447_v32  ;;  %7221 = vst [vmem:[#allocation56_spill] sm:$0xff] %v5449_v31 }
  0xe0   :  { %1151 = vmatmul.mubr.bf16.vlgmr.msra.gmra.mrb[20].mxu0 %v7211_v35  ;;  %1192 = vmatmul.mubr.bf16.vlgmr.msra.gmra.mrb[20].mxu1 %v7211_v35 }
  0xe1   :  { %1361 = vmatpush1.bf16.msra.mxu0 %v5420_v30  ;;  %1402 = vmatpush1.bf16.msra.mxu1 %v5422_v29  ;;  %v5443_v29 = vld [vmem:[#allocation9 + $0x44] ss:$16 sps:$4 sm:$0xff]   ;;  %v5445_v30 = vld [vmem:[#allocation9 + $0x4c] ss:$16 sps:$4 sm:$0xff]  }
  0xe2   :  { %1392 = vmatprep.mubr.bf16.mxu0 %v7211_v35  ;;  %1433 = vmatprep.mubr.bf16.mxu1 %v7211_v35  ;;  %7218 = vst [vmem:[#allocation53_spill] sm:$0xff] %v5443_v29  ;;  %7219 = vst [vmem:[#allocation54_spill] sm:$0xff] %v5445_v30 }
  0xe3   :  { %1362 = vmatprep.subr.bf16.mxu0 %v5429_v0  ;;  %1403 = vmatprep.subr.bf16.mxu1 %v5431_v62  ;;  %v5455_v62 = vld [vmem:[#allocation9 + $0x64] ss:$16 sps:$4 sm:$0xff]   ;;  %v5461_v0 = vld [vmem:[#allocation9 + $0x68] ss:$16 sps:$4 sm:$0xff]  }
  0xe4   :  { %7222 = vst [vmem:[#allocation57_spill] sm:$0xff] %v5455_v62  ;;  %7225 = vst [vmem:[#allocation60_spill] sm:$0xff] %v5461_v0 }
  0xe5   :  { %1363 = vmatpush1.bf16.msra.mxu0 %v5434_v53  ;;  %1404 = vmatpush1.bf16.msra.mxu1 %v5436_v44  ;;  %v5457_v53 = vld [vmem:[#allocation9 + $0x6c] ss:$16 sps:$4 sm:$0xff]   ;;  %v5459_v44 = vld [vmem:[#allocation9 + $0x60] ss:$16 sps:$4 sm:$0xff]  }
  0xe6   :  { %1364 = vmatprep.subr.bf16.mxu0 %v5443_v29  ;;  %1405 = vmatprep.subr.bf16.mxu1 %v5445_v30  ;;  %7223 = vst [vmem:[#allocation58_spill] sm:$0xff] %v5457_v53  ;;  %7224 = vst [vmem:[#allocation59_spill] sm:$0xff] %v5459_v44  ;;  %v5467_v30 = vld [vmem:[#allocation9 + $0x84] ss:$16 sps:$4 sm:$0xff]   ;;  %v5473_v29 = vld [vmem:[#allocation9 + $0x88] ss:$16 sps:$4 sm:$0xff]  }
  0xe7   :  { %7226 = vst [vmem:[#allocation61_spill] sm:$0xff] %v5467_v30  ;;  %7229 = vst [vmem:[#allocation64_spill] sm:$0xff] %v5473_v29 }
  0xe9   :  { %1365 = vmatpush1.bf16.msra.mxu0 %v5447_v32  ;;  %1406 = vmatpush1.bf16.msra.mxu1 %v5449_v31  ;;  %v5469_v32 = vld [vmem:[#allocation9 + $0x8c] ss:$16 sps:$4 sm:$0xff]   ;;  %v5471_v31 = vld [vmem:[#allocation9 + $0x80] ss:$16 sps:$4 sm:$0xff]  }
  0xea   :  { %1366 = vmatprep.subr.bf16.mxu0 %v5455_v62  ;;  %1407 = vmatprep.subr.bf16.mxu1 %v5457_v53  ;;  %7227 = vst [vmem:[#allocation62_spill] sm:$0xff] %v5469_v32  ;;  %7228 = vst [vmem:[#allocation63_spill] sm:$0xff] %v5471_v31  ;;  %v5479_v53 = vld [vmem:[#allocation9 + $0xa4] ss:$16 sps:$4 sm:$0xff]   ;;  %v5485_v62 = vld [vmem:[#allocation9 + $0xa8] ss:$16 sps:$4 sm:$0xff]  }
  0xeb   :  { %7230 = vst [vmem:[#allocation65_spill] sm:$0xff] %v5479_v53  ;;  %7233 = vst [vmem:[#allocation68_spill] sm:$0xff] %v5485_v62 }
  0xed   :  { %1367 = vmatpush1.bf16.msra.mxu0 %v5459_v44  ;;  %1408 = vmatpush1.bf16.msra.mxu1 %v5461_v0  ;;  %v5481_v44 = vld [vmem:[#allocation9 + $0xac] ss:$16 sps:$4 sm:$0xff]   ;;  %v5483_v0 = vld [vmem:[#allocation9 + $0xa0] ss:$16 sps:$4 sm:$0xff]  }
  0xee   :  { %1368 = vmatprep.subr.bf16.mxu0 %v5467_v30  ;;  %1409 = vmatprep.subr.bf16.mxu1 %v5469_v32  ;;  %7231 = vst [vmem:[#allocation66_spill] sm:$0xff] %v5481_v44  ;;  %7232 = vst [vmem:[#allocation67_spill] sm:$0xff] %v5483_v0  ;;  %v5500_v32 = vld [vmem:[#allocation9 + $0xe4] ss:$16 sps:$4 sm:$0xff]   ;;  %v5503_v30 = vld [vmem:[#allocation9 + $0xec] ss:$16 sps:$4 sm:$0xff]  }
  0xef   :  { %7238 = vst [vmem:[#allocation73_spill] sm:$0xff] %v5500_v32  ;;  %7239 = vst [vmem:[#allocation74_spill] sm:$0xff] %v5503_v30 }
  0xf1   :  { %1369 = vmatpush1.bf16.msra.mxu0 %v5471_v31  ;;  %1410 = vmatpush1.bf16.msra.mxu1 %v5473_v29  ;;  %v5494_v31 = vld [vmem:[#allocation9 + $0xc0] ss:$16 sps:$4 sm:$0xff]   ;;  %v5498_v29 = vld [vmem:[#allocation9 + $0xc8] ss:$16 sps:$4 sm:$0xff]  }
  0xf2   :  { %1370 = vmatprep.subr.bf16.mxu0 %v5479_v53  ;;  %1411 = vmatprep.subr.bf16.mxu1 %v5481_v44  ;;  %7236 = vst [vmem:[#allocation71_spill] sm:$0xff] %v5494_v31  ;;  %7237 = vst [vmem:[#allocation72_spill] sm:$0xff] %v5498_v29  ;;  %v5506_v53 = vld [vmem:[#allocation9 + $0xe0] ss:$16 sps:$4 sm:$0xff]  }
  0xf3   :  { %7240 = vst [vmem:[#allocation75_spill] sm:$0xff] %v5506_v53 }
  0xf5   :  { %1371 = vmatpush1.bf16.msra.mxu0 %v5483_v0  ;;  %1412 = vmatpush1.bf16.msra.mxu1 %v5485_v62  ;;  %v5510_v0 = vld [vmem:[#allocation9 + $0xe8] ss:$16 sps:$4 sm:$0xff]  }
  0xf6   :  { %1372 = vmatprep.subr.bf16.mxu0 %v5487_v28  ;;  %1413 = vmatprep.subr.bf16.mxu1 %v5489_v27  ;;  %7241 = vst [vmem:[#allocation76_spill] sm:$0xff] %v5510_v0  ;;  %v183_v27 = vlaneseq }
  0xf9   :  { %1373 = vmatpush1.bf16.msra.mxu0 %v5494_v31  ;;  %1414 = vmatpush1.bf16.msra.mxu1 %v5498_v29  ;;  %v5517_v31 = vshrl.u32 %v183_v27, 7 }
  0xfa   :  { %1374 = vmatprep.subr.bf16.mxu0 %v5500_v32  ;;  %1415 = vmatprep.subr.bf16.mxu1 %v5503_v30  ;;  %v181_v30 = vld [vmem:[%s6904_s3] sm:$0xf] }
  0xfb   :  { %7242 = vst [vmem:[#allocation77_spill] sm:$0xff] %v5517_v31  ;;  %v6981_v28 = vsub.s32 2, %v5517_v31  ;;  %v6990_v29 = vsub.s32 3, %v5517_v31  ;;  %v6991_v32 = vsub.s32 0, %v5517_v31 }
  0xfd   :  { %1375 = vmatpush1.bf16.msra.mxu0 %v5506_v53  ;;  %1416 = vmatpush1.bf16.msra.mxu1 %v5510_v0  ;;  %v6998_v53 = vsub.s32 1, %v5517_v31  ;;  %v5536_v0 = vrot.slane %v181_v30, %v6990_v29  ;;  %v186_v62 = vrot.slane %v181_v30, %v6991_v32 }
  0xfe   :  { %1474 = vmatprep.subr.bf16.mxu0 %v5211_v33  ;;  %1515 = vmatprep.subr.bf16.mxu1 %v5213_v34  ;;  %v5528_v33 = vrot.slane %v181_v30, %v6981_v28 }
  0xff   :  { %v190_v25 = vrot.slane %v181_v30, %v6998_v53 }
 0x172   :  { %v5530_v34 = vpop.f32.mrb[0].mxu0  ;;  %v5532_v27 = vpop.f32.mrb[0].mxu1 }
 0x173   :  { %v423_v44 = vpop.f32.mrb[1].mxu0  ;;  %v496_v26 = vpop.f32.mrb[1].mxu1 }
 0x174   :  { %v425_v24 = vpop.f32.mrb[2].mxu0  ;;  %v498_v23 = vpop.f32.mrb[2].mxu1 }
 0x175   :  { %v5542_v28 = vadd.f32 %v425_v24, %v186_v62  ;;  %v427_v22 = vpop.f32.mrb[3].mxu0  ;;  %v5545_v21 = vadd.f32 %v498_v23, %v5528_v33  ;;  %v500_v20 = vpop.f32.mrb[3].mxu1 }
 0x176   :  { %v5547_v19 = vadd.f32 %v427_v22, %v190_v25  ;;  %v5550_v29 = vadd.f32 %v500_v20, %v5536_v0 }
 0x177   :  { %7243 = vst [vmem:[#allocation78_spill] sm:$0xff] %v5542_v28  ;;  %7244 = vst [vmem:[#allocation79_spill] sm:$0xff] %v5545_v21 }
 0x178   :  { %7245 = vst [vmem:[#allocation80_spill] sm:$0xff] %v5547_v19  ;;  %7246 = vst [vmem:[#allocation81_spill] sm:$0xff] %v5550_v29 }
 0x17a   :  { %v431_v32 = vpop.f32.mrb[4].mxu0  ;;  %v504_v18 = vpop.f32.mrb[4].mxu1 }
 0x17b   :  { %v5552_v17 = vadd.f32 %v431_v32, %v186_v62  ;;  %v433_v31 = vpop.f32.mrb[5].mxu0  ;;  %v5555_v30 = vadd.f32 %v504_v18, %v5528_v33  ;;  %v506_v24 = vpop.f32.mrb[5].mxu1 }
 0x17c   :  { %v5557_v53 = vadd.f32 %v433_v31, %v190_v25  ;;  %v435_v28 = vpop.f32.mrb[6].mxu0  ;;  %v5560_v23 = vadd.f32 %v506_v24, %v5536_v0  ;;  %v508_v22 = vpop.f32.mrb[6].mxu1 }
 0x17d   :  { %7247 = vst [vmem:[#allocation82_spill] sm:$0xff] %v5552_v17  ;;  %7248 = vst [vmem:[#allocation83_spill] sm:$0xff] %v5555_v30  ;;  %v5562_v19 = vadd.f32 %v435_v28, %v186_v62  ;;  %v437_v20 = vpop.f32.mrb[7].mxu0  ;;  %v5565_v29 = vadd.f32 %v508_v22, %v5528_v33  ;;  %v510_v32 = vpop.f32.mrb[7].mxu1 }
 0x17e   :  { %7249 = vst [vmem:[#allocation84_spill] sm:$0xff] %v5557_v53  ;;  %7250 = vst [vmem:[#allocation85_spill] sm:$0xff] %v5560_v23  ;;  %v5567_v17 = vadd.f32 %v437_v20, %v190_v25  ;;  %v5570_v18 = vadd.f32 %v510_v32, %v5536_v0 }
 0x17f   :  { %7251 = vst [vmem:[#allocation86_spill] sm:$0xff] %v5562_v19  ;;  %7252 = vst [vmem:[#allocation87_spill] sm:$0xff] %v5565_v29 }
 0x180   :  { %7253 = vst [vmem:[#allocation88_spill] sm:$0xff] %v5567_v17  ;;  %7254 = vst [vmem:[#allocation89_spill] sm:$0xff] %v5570_v18 }
 0x182   :  { %v441_v30 = vpop.f32.mrb[8].mxu0  ;;  %v514_v31 = vpop.f32.mrb[8].mxu1 }
 0x183   :  { %v5572_v53 = vadd.f32 %v441_v30, %v186_v62  ;;  %v443_v21 = vpop.f32.mrb[9].mxu0  ;;  %v5575_v24 = vadd.f32 %v514_v31, %v5528_v33  ;;  %v516_v28 = vpop.f32.mrb[9].mxu1 }
 0x184   :  { %v5577_v19 = vadd.f32 %v443_v21, %v190_v25  ;;  %v445_v23 = vpop.f32.mrb[10].mxu0  ;;  %v5580_v22 = vadd.f32 %v516_v28, %v5536_v0  ;;  %v518_v20 = vpop.f32.mrb[10].mxu1 }
 0x185   :  { %7255 = vst [vmem:[#allocation90_spill] sm:$0xff] %v5572_v53  ;;  %7256 = vst [vmem:[#allocation91_spill] sm:$0xff] %v5575_v24  ;;  %v5582_v17 = vadd.f32 %v445_v23, %v186_v62  ;;  %v447_v32 = vpop.f32.mrb[11].mxu0  ;;  %v5585_v18 = vadd.f32 %v518_v20, %v5528_v33  ;;  %v520_v30 = vpop.f32.mrb[11].mxu1 }
 0x186   :  { %7257 = vst [vmem:[#allocation92_spill] sm:$0xff] %v5577_v19  ;;  %7258 = vst [vmem:[#allocation93_spill] sm:$0xff] %v5580_v22  ;;  %v5587_v53 = vadd.f32 %v447_v32, %v190_v25  ;;  %v5590_v31 = vadd.f32 %v520_v30, %v5536_v0 }
 0x187   :  { %7259 = vst [vmem:[#allocation94_spill] sm:$0xff] %v5582_v17  ;;  %7260 = vst [vmem:[#allocation95_spill] sm:$0xff] %v5585_v18 }
 0x188   :  { %7261 = vst [vmem:[#allocation96_spill] sm:$0xff] %v5587_v53  ;;  %7262 = vst [vmem:[#allocation97_spill] sm:$0xff] %v5590_v31 }
 0x18a   :  { %v451_v24 = vpop.f32.mrb[12].mxu0  ;;  %v524_v21 = vpop.f32.mrb[12].mxu1 }
 0x18b   :  { %v5592_v19 = vadd.f32 %v451_v24, %v186_v62  ;;  %v453_v29 = vpop.f32.mrb[13].mxu0  ;;  %v5595_v28 = vadd.f32 %v524_v21, %v5528_v33  ;;  %v526_v23 = vpop.f32.mrb[13].mxu1 }
 0x18c   :  { %v5597_v17 = vadd.f32 %v453_v29, %v190_v25  ;;  %v455_v22 = vpop.f32.mrb[14].mxu0  ;;  %v5600_v20 = vadd.f32 %v526_v23, %v5536_v0  ;;  %v528_v32 = vpop.f32.mrb[14].mxu1  ;;  %v422_v29 = vadd.f32 %v5530_v34, %v186_v62  ;;  %v424_v23 = vadd.f32 %v423_v44, %v190_v25 }
 0x18d   :  { %7263 = vst [vmem:[#allocation98_spill] sm:$0xff] %v5592_v19  ;;  %7264 = vst [vmem:[#allocation99_spill] sm:$0xff] %v5595_v28  ;;  %v5602_v53 = vadd.f32 %v455_v22, %v186_v62  ;;  %v457_v30 = vpop.f32.mrb[15].mxu0  ;;  %v5605_v31 = vadd.f32 %v528_v32, %v5528_v33  ;;  %v530_v24 = vpop.f32.mrb[15].mxu1 }
 0x18e   :  { %7265 = vst [vmem:[#allocation100_spill] sm:$0xff] %v5597_v17  ;;  %7266 = vst [vmem:[#allocation101_spill] sm:$0xff] %v5600_v20  ;;  %v5607_v19 = vadd.f32 %v457_v30, %v190_v25  ;;  %v5610_v21 = vadd.f32 %v530_v24, %v5536_v0  ;;  %v495_v17 = vadd.f32 %v5532_v27, %v5528_v33 }
 0x18f   :  { %7267 = vst [vmem:[#allocation102_spill] sm:$0xff] %v5602_v53  ;;  %7268 = vst [vmem:[#allocation103_spill] sm:$0xff] %v5605_v31  ;;  %v497_v20 = vadd.f32 %v496_v26, %v5536_v0 }
 0x190   :  { %7269 = vst [vmem:[#allocation104_spill] sm:$0xff] %v5607_v19  ;;  %7270 = vst [vmem:[#allocation105_spill] sm:$0xff] %v5610_v21 }
 0x192   :  { %v817_v22 = vpop.f32.mrb[16].mxu0  ;;  %v858_v53 = vpop.f32.mrb[16].mxu1 }
 0x193   :  { %v865_v28 = vadd.f32 %v817_v22, %v422_v29  ;;  %v867_v18 = vadd.f32 %v858_v53, %v495_v17  ;;  %v819_v32 = vpop.f32.mrb[17].mxu0  ;;  %v860_v31 = vpop.f32.mrb[17].mxu1  ;;  %v7294_v29 = vld [vmem:[#allocation44_spill] sm:$0xff]  ;;  %v7296_v22 = vld [vmem:[#allocation46_spill] sm:$0xff] }
 0x194   :  { %v866_v16 = vadd.f32 %v819_v32, %v424_v23  ;;  %v868_v30 = vadd.f32 %v860_v31, %v497_v20  ;;  %v821_v19 = vpop.f32.mrb[18].mxu0  ;;  %v862_v15 = vpop.f32.mrb[18].mxu1  ;;  %v7295_v23 = vld [vmem:[#allocation45_spill] sm:$0xff]  ;;  %v565_v32 = vld [vmem:[%s6907_s6] sm:$0xf] }
 0x195   :  { %v3954_v24 = vmul.f32 -1.442695, %v865_v28  ;;  %v822_v21 = vpop.f32.mrb[19].mxu0  ;;  %v863_v14 = vpop.f32.mrb[19].mxu1  ;;  %v3956_v33 = vmul.f32 -1.442695, %v867_v18 }
 0x196   :  { %v3955_v62 = vmul.f32 -1.442695, %v866_v16  ;;  %v7293_v21 = vld [vmem:[#allocation43_spill] sm:$0xff] }
 0x197   :  { %4371 = vpow2.f32 %v3954_v24 }
 0x198   :  { %4373 = vpow2.f32 %v3955_v62 }
 0x199   :  { %4375 = vtanh.f32 %v868_v30  ;;  %v7297_v30 = vld [vmem:[#allocation77_spill] sm:$0xff] }
 0x19a   :  { %4377 = vpow2.f32 %v3956_v33  ;;  %v7298_v24 = vsub.s32 0, %v7297_v30 }
 0x19c   :  { %v5692_v62 = vrot.slane %v565_v32, %v7298_v24 }
 0x1a1   :  { %v4372_v25 = vpop.eup %4371 }
 0x1a2   :  { %v878_v44 = vadd.f32 1.0, %v4372_v25  ;;  %v4374_v0 = vpop.eup %4373 }
 0x1a3   :  { %v879_v17 = vadd.f32 1.0, %v4374_v0  ;;  %v4376_v26 = vpop.eup %4375 }
 0x1a4   :  { %4379 = vrcp.f32 %v878_v44  ;;  %v4378_v53 = vpop.eup %4377  ;;  %v7299_v44 = vsub.s32 1, %v7297_v30 }
 0x1a5   :  { %4381 = vrcp.f32 %v879_v17  ;;  %v880_v27 = vadd.f32 1.0, %v4378_v53 }
 0x1a6   :  { %v5696_v0 = vrot.slane %v565_v32, %v7299_v44 }
 0x1a7   :  { %4383 = vrcp.f32 %v880_v27 }
 0x1ae   :  { %v4380_v34 = vpop.eup %4379 }
 0x1af   :  { %v889_v19 = vmul.f32 %v4380_v34, %v4376_v26  ;;  %v4382_v15 = vpop.eup %4381 }
 0x1b0   :  { %v888_v31 = vmul.f32 0.0, %v4382_v15 }
 0x1b1   :  { %v4384_v16 = vpop.eup %4383 }
 0x1b2   :  { %v5616_v14 = vadd.f32 %v889_v19, %v888_v31 }
 0x1b4   :  { %4385 = vtanh.f32 %v5616_v14 }
 0x1be   :  { %v4386_v18 = vpop.eup %4385 }
 0x1bf   :  { %v892_v28 = vmul.f32 %v4386_v18, %v4384_v16 }
 0x1c1   :  { %v893_v20 = vpack.c.bf16 %v892_v28, %v892_v28 }
 0x1c3   :  { %1393 = vmatmul.mubr.bf16.vlgmr.msra.gmra.mrb[24].mxu0 %v893_v20  ;;  %1434 = vmatmul.mubr.bf16.vlgmr.msra.gmra.mrb[24].mxu1 %v893_v20 }
 0x1c4   :  { %1475 = vmatpush1.bf16.msra.mxu0 %v5215_v36  ;;  %1516 = vmatpush1.bf16.msra.mxu1 %v5217_v37  ;;  %v7271_v36 = vld [vmem:[#allocation21_spill] sm:$0xff]  ;;  %v7272_v37 = vld [vmem:[#allocation22_spill] sm:$0xff] }
 0x1c5   :  { %1476 = vmatprep.subr.bf16.mxu0 %v5221_v38  ;;  %1517 = vmatprep.subr.bf16.mxu1 %v5223_v39  ;;  %v7273_v38 = vld [vmem:[#allocation23_spill] sm:$0xff]  ;;  %v7274_v39 = vld [vmem:[#allocation24_spill] sm:$0xff] }
 0x1c6   :  { %1506 = vmatprep.mubr.bf16.mxu0 %v7211_v35  ;;  %1547 = vmatprep.mubr.bf16.mxu1 %v7211_v35 }
 0x1c8   :  { %1477 = vmatpush1.bf16.msra.mxu0 %v5225_v40  ;;  %1518 = vmatpush1.bf16.msra.mxu1 %v5229_v41  ;;  %v7275_v40 = vld [vmem:[#allocation25_spill] sm:$0xff]  ;;  %v7276_v41 = vld [vmem:[#allocation26_spill] sm:$0xff] }
 0x1c9   :  { %1478 = vmatprep.subr.bf16.mxu0 %v5233_v42  ;;  %1519 = vmatprep.subr.bf16.mxu1 %v5235_v43  ;;  %v7277_v42 = vld [vmem:[#allocation27_spill] sm:$0xff]  ;;  %v7278_v43 = vld [vmem:[#allocation28_spill] sm:$0xff] }
 0x1cc   :  { %1479 = vmatpush1.bf16.msra.mxu0 %v5239_v45  ;;  %1520 = vmatpush1.bf16.msra.mxu1 %v5241_v46  ;;  %v7279_v45 = vld [vmem:[#allocation29_spill] sm:$0xff]  ;;  %v7280_v46 = vld [vmem:[#allocation30_spill] sm:$0xff] }
 0x1cd   :  { %1480 = vmatprep.subr.bf16.mxu0 %v5245_v47  ;;  %1521 = vmatprep.subr.bf16.mxu1 %v5249_v48  ;;  %v1152_v47 = vpop.f32.mrb[20].mxu0  ;;  %v7281_v48 = vld [vmem:[#allocation31_spill] sm:$0xff] }
 0x1d0   :  { %1481 = vmatpush1.bf16.msra.mxu0 %v5251_v49  ;;  %1522 = vmatpush1.bf16.msra.mxu1 %v5253_v50  ;;  %v7282_v49 = vld [vmem:[#allocation32_spill] sm:$0xff]  ;;  %v1154_v50 = vpop.f32.mrb[21].mxu0 }
 0x1d1   :  { %1482 = vmatprep.subr.bf16.mxu0 %v5257_v51  ;;  %1523 = vmatprep.subr.bf16.mxu1 %v5261_v52  ;;  %v7283_v51 = vld [vmem:[#allocation33_spill] sm:$0xff]  ;;  %v7284_v52 = vld [vmem:[#allocation34_spill] sm:$0xff] }
 0x1d4   :  { %1483 = vmatpush1.bf16.msra.mxu0 %v5265_v54  ;;  %1524 = vmatpush1.bf16.msra.mxu1 %v5267_v55  ;;  %v1156_v54 = vpop.f32.mrb[22].mxu0  ;;  %v1193_v55 = vpop.f32.mrb[20].mxu1 }
 0x1d5   :  { %1484 = vmatprep.subr.bf16.mxu0 %v5269_v56  ;;  %1525 = vmatprep.subr.bf16.mxu1 %v5271_v57  ;;  %v1157_v56 = vpop.f32.mrb[23].mxu0  ;;  %v1195_v57 = vpop.f32.mrb[21].mxu1 }
 0x1d8   :  { %1485 = vmatpush1.bf16.msra.mxu0 %v5277_v58  ;;  %1526 = vmatpush1.bf16.msra.mxu1 %v5279_v59  ;;  %v1197_v58 = vpop.f32.mrb[22].mxu1  ;;  %v7285_v59 = vld [vmem:[#allocation35_spill] sm:$0xff] }
 0x1d9   :  { %1486 = vmatprep.subr.bf16.mxu0 %v5281_v60  ;;  %1527 = vmatprep.subr.bf16.mxu1 %v5283_v61  ;;  %v7286_v60 = vld [vmem:[#allocation36_spill] sm:$0xff]  ;;  %v1198_v61 = vpop.f32.mrb[23].mxu1  ;;  %v7300_v58 = vsub.s32 2, %v7297_v30 }
 0x1db   :  { %v5702_v61 = vrot.slane %v565_v32, %v7300_v58  ;;  %v7306_v58 = vld [vmem:[#allocation80_spill] sm:$0xff] }
 0x1dc   :  { %1487 = vmatpush1.bf16.msra.mxu0 %v5291_v63  ;;  %1528 = vmatpush1.bf16.msra.mxu1 %v5293_v1  ;;  %v7287_v63 = vld [vmem:[#allocation37_spill] sm:$0xff]  ;;  %v7288_v1 = vld [vmem:[#allocation38_spill] sm:$0xff] }
 0x1dd   :  { %1488 = vmatprep.subr.bf16.mxu0 %v5295_v2  ;;  %1529 = vmatprep.subr.bf16.mxu1 %v5297_v3  ;;  %v7289_v2 = vld [vmem:[#allocation39_spill] sm:$0xff]  ;;  %v7290_v3 = vld [vmem:[#allocation40_spill] sm:$0xff]  ;;  %7301 = vst [vmem:[#allocation21_spill] sm:$0xff] %v5702_v61 }
 0x1e0   :  { %1489 = vmatpush1.bf16.msra.mxu0 %v5303_v4  ;;  %1530 = vmatpush1.bf16.msra.mxu1 %v5305_v5  ;;  %v7291_v4 = vld [vmem:[#allocation41_spill] sm:$0xff]  ;;  %v7292_v5 = vld [vmem:[#allocation42_spill] sm:$0xff] }
 0x1e1   :  { %1586 = vmatprep.subr.bf16.mxu0 %v5319_v6  ;;  %1627 = vmatprep.subr.bf16.mxu1 %v5321_v7 }
 0x1e3   :  { %1507 = vmatmul.mubr.bf16.vlgmr.msra.gmra.mrb[28].mxu0 %v893_v20  ;;  %1548 = vmatmul.mubr.bf16.vlgmr.msra.gmra.mrb[28].mxu1 %v893_v20 }
 0x1e4   :  { %1587 = vmatpush1.bf16.msra.mxu0 %v5323_v8  ;;  %1628 = vmatpush1.bf16.msra.mxu1 %v5326_v9 }
 0x1e5   :  { %1588 = vmatprep.subr.bf16.mxu0 %v5331_v10  ;;  %1629 = vmatprep.subr.bf16.mxu1 %v5333_v11 }
 0x1e6   :  { %1618 = vmatprep.mubr.bf16.mxu0 %v7211_v35  ;;  %1659 = vmatprep.mubr.bf16.mxu1 %v7211_v35 }
 0x1e8   :  { %1589 = vmatpush1.bf16.msra.mxu0 %v5335_v12  ;;  %1630 = vmatpush1.bf16.msra.mxu1 %v5338_v13 }
 0x1e9   :  { %1590 = vmatprep.subr.bf16.mxu0 %v7271_v36  ;;  %1631 = vmatprep.subr.bf16.mxu1 %v7272_v37 }
 0x1ec   :  { %1591 = vmatpush1.bf16.msra.mxu0 %v7273_v38  ;;  %1632 = vmatpush1.bf16.msra.mxu1 %v7274_v39 }
 0x1ed   :  { %1592 = vmatprep.subr.bf16.mxu0 %v7275_v40  ;;  %1633 = vmatprep.subr.bf16.mxu1 %v7276_v41 }
 0x1f0   :  { %1593 = vmatpush1.bf16.msra.mxu0 %v7277_v42  ;;  %1634 = vmatpush1.bf16.msra.mxu1 %v7278_v43 }
 0x1f1   :  { %1594 = vmatprep.subr.bf16.mxu0 %v7279_v45  ;;  %1635 = vmatprep.subr.bf16.mxu1 %v7280_v46 }
 0x1f4   :  { %1595 = vmatpush1.bf16.msra.mxu0 %v7281_v48  ;;  %1636 = vmatpush1.bf16.msra.mxu1 %v7282_v49 }
 0x1f5   :  { %1596 = vmatprep.subr.bf16.mxu0 %v7283_v51  ;;  %1637 = vmatprep.subr.bf16.mxu1 %v7284_v52 }
 0x1f8   :  { %1597 = vmatpush1.bf16.msra.mxu0 %v7285_v59  ;;  %1638 = vmatpush1.bf16.msra.mxu1 %v7286_v60 }
 0x1f9   :  { %1598 = vmatprep.subr.bf16.mxu0 %v7287_v63  ;;  %1639 = vmatprep.subr.bf16.mxu1 %v7288_v1 }
 0x1fc   :  { %1599 = vmatpush1.bf16.msra.mxu0 %v7289_v2  ;;  %1640 = vmatpush1.bf16.msra.mxu1 %v7290_v3 }
 0x1fd   :  { %1600 = vmatprep.subr.bf16.mxu0 %v7291_v4  ;;  %1641 = vmatprep.subr.bf16.mxu1 %v7292_v5 }
 0x200   :  { %1601 = vmatpush1.bf16.msra.mxu0 %v7293_v21  ;;  %1642 = vmatpush1.bf16.msra.mxu1 %v7294_v29 }
 0x201   :  { %1668 = vmatprep.subr.bf16.mxu0 %v7295_v23  ;;  %1709 = vmatprep.subr.bf16.mxu1 %v7296_v22 }
 0x296   :  { %v1394_v33 = vpop.f32.mrb[24].mxu0  ;;  %v1435_v25 = vpop.f32.mrb[24].mxu1 }
 0x297   :  { %v1395_v17 = vadd.f32 %v1394_v33, %v1152_v47  ;;  %v1436_v26 = vadd.f32 %v1435_v25, %v1193_v55  ;;  %v1396_v53 = vpop.f32.mrb[25].mxu0  ;;  %v1437_v34 = vpop.f32.mrb[25].mxu1  ;;  %v7302_v47 = vsub.s32 3, %v7297_v30 }
 0x298   :  { %v1397_v19 = vadd.f32 %v1396_v53, %v1154_v50  ;;  %v1438_v15 = vadd.f32 %v1437_v34, %v1195_v57  ;;  %v1398_v27 = vpop.f32.mrb[26].mxu0  ;;  %v1439_v31 = vpop.f32.mrb[26].mxu1 }
 0x299   :  { %v1442_v16 = vadd.f32 %v1395_v17, %v5692_v62  ;;  %v1399_v18 = vpop.f32.mrb[27].mxu0  ;;  %v1440_v28 = vpop.f32.mrb[27].mxu1  ;;  %v5706_v50 = vrot.slane %v565_v32, %v7302_v47  ;;  %v1444_v55 = vadd.f32 %v1436_v26, %v5702_v61 }
 0x29a   :  { %v1443_v20 = vadd.f32 %v1397_v19, %v5696_v0  ;;  %v7304_v18 = vld [vmem:[#allocation78_spill] sm:$0xff]  ;;  %v7305_v28 = vld [vmem:[#allocation79_spill] sm:$0xff] }
 0x29b   :  { %v4021_v54 = vmul.f32 -1.442695, %v1442_v16  ;;  %7303 = vst [vmem:[#allocation22_spill] sm:$0xff] %v5706_v50  ;;  %v1445_v57 = vadd.f32 %v1438_v15, %v5706_v50  ;;  %v4023_v24 = vmul.f32 -1.442695, %v1444_v55  ;;  %v7307_v55 = vld [vmem:[#allocation81_spill] sm:$0xff] }
 0x29c   :  { %v4022_v56 = vmul.f32 -1.442695, %v1443_v20 }
 0x29d   :  { %4387 = vpow2.f32 %v4021_v54 }
 0x29e   :  { %4389 = vpow2.f32 %v4022_v56 }
 0x29f   :  { %4391 = vtanh.f32 %v1445_v57 }
 0x2a0   :  { %4393 = vpow2.f32 %v4023_v24 }
 0x2a7   :  { %v4388_v33 = vpop.eup %4387 }
 0x2a8   :  { %v1455_v25 = vadd.f32 1.0, %v4388_v33  ;;  %v4390_v44 = vpop.eup %4389 }
 0x2a9   :  { %v1456_v17 = vadd.f32 1.0, %v4390_v44  ;;  %v4392_v53 = vpop.eup %4391 }
 0x2aa   :  { %4395 = vrcp.f32 %v1455_v25  ;;  %v4394_v34 = vpop.eup %4393 }
 0x2ab   :  { %4397 = vrcp.f32 %v1456_v17  ;;  %v1457_v32 = vadd.f32 1.0, %v4394_v34 }
 0x2ad   :  { %4399 = vrcp.f32 %v1457_v32  ;;  %v7308_v32 = vld [vmem:[#allocation47_spill] sm:$0xff] }
 0x2b4   :  { %v4396_v19 = vpop.eup %4395 }
 0x2b5   :  { %v1466_v27 = vmul.f32 %v4396_v19, %v4392_v53  ;;  %v4398_v30 = vpop.eup %4397 }
 0x2b6   :  { %v1508_v31 = vpop.f32.mrb[28].mxu0  ;;  %v1549_v16 = vpop.f32.mrb[28].mxu1  ;;  %v1465_v26 = vmul.f32 0.0, %v4398_v30 }
 0x2b7   :  { %v1556_v15 = vadd.f32 %v1508_v31, %v7304_v18  ;;  %v1558_v20 = vadd.f32 %v1549_v16, %v7305_v28  ;;  %v1510_v54 = vpop.f32.mrb[29].mxu0  ;;  %v1551_v56 = vpop.f32.mrb[29].mxu1 }
 0x2b8   :  { %v1557_v47 = vadd.f32 %v1510_v54, %v7306_v58  ;;  %v1559_v57 = vadd.f32 %v1551_v56, %v7307_v55  ;;  %v1512_v24 = vpop.f32.mrb[30].mxu0  ;;  %v1553_v33 = vpop.f32.mrb[30].mxu1  ;;  %v5714_v25 = vadd.f32 %v1466_v27, %v1465_v26  ;;  %v7310_v56 = vld [vmem:[#allocation49_spill] sm:$0xff]  ;;  %v7312_v58 = vld [vmem:[#allocation51_spill] sm:$0xff] }
 0x2b9   :  { %v4024_v44 = vmul.f32 -1.442695, %v1556_v15  ;;  %v1513_v17 = vpop.f32.mrb[31].mxu0  ;;  %v1554_v53 = vpop.f32.mrb[31].mxu1  ;;  %v4026_v30 = vmul.f32 -1.442695, %v1558_v20 }
 0x2ba   :  { %v4025_v34 = vmul.f32 -1.442695, %v1557_v47  ;;  %4401 = vtanh.f32 %v5714_v25  ;;  %v4400_v19 = vpop.eup %4399  ;;  %v7309_v15 = vld [vmem:[#allocation48_spill] sm:$0xff]  ;;  %v7311_v20 = vld [vmem:[#allocation50_spill] sm:$0xff]  ;;  %v7314_v55 = vld [vmem:[#allocation53_spill] sm:$0xff] }
 0x2bb   :  { %4403 = vpow2.f32 %v4024_v44  ;;  %v7313_v47 = vld [vmem:[#allocation52_spill] sm:$0xff]  ;;  %v7316_v17 = vld [vmem:[#allocation55_spill] sm:$0xff] }
 0x2bc   :  { %4405 = vpow2.f32 %v4025_v34  ;;  %v7317_v53 = vld [vmem:[#allocation56_spill] sm:$0xff] }
 0x2bd   :  { %4407 = vtanh.f32 %v1559_v57  ;;  %v7315_v57 = vld [vmem:[#allocation54_spill] sm:$0xff] }
 0x2be   :  { %4409 = vpow2.f32 %v4026_v30  ;;  %v7319_v30 = vld [vmem:[#allocation58_spill] sm:$0xff] }
 0x2c4   :  { %v4402_v31 = vpop.eup %4401 }
 0x2c5   :  { %v4404_v16 = vpop.eup %4403  ;;  %v1469_v18 = vmul.f32 %v4402_v31, %v4400_v19  ;;  %v7318_v19 = vld [vmem:[#allocation57_spill] sm:$0xff] }
 0x2c6   :  { %v1569_v28 = vadd.f32 1.0, %v4404_v16  ;;  %v4406_v54 = vpop.eup %4405 }
 0x2c7   :  { %v1585_v27 = vpack.c.bf16 %v1469_v18, %v1469_v18  ;;  %v1570_v26 = vadd.f32 1.0, %v4406_v54  ;;  %v4408_v24 = vpop.eup %4407  ;;  %v7321_v54 = vld [vmem:[#allocation60_spill] sm:$0xff] }
 0x2c8   :  { %4411 = vrcp.f32 %v1569_v28  ;;  %v4410_v33 = vpop.eup %4409  ;;  %v7320_v28 = vld [vmem:[#allocation59_spill] sm:$0xff] }
 0x2c9   :  { %1619 = vmatmul.mubr.bf16.vlgmr.msra.gmra.mrb[32].mxu0 %v1585_v27  ;;  %1660 = vmatmul.mubr.bf16.vlgmr.msra.gmra.mrb[32].mxu1 %v1585_v27  ;;  %4413 = vrcp.f32 %v1570_v26  ;;  %v1571_v16 = vadd.f32 1.0, %v4410_v33  ;;  %v7322_v26 = vld [vmem:[#allocation61_spill] sm:$0xff]  ;;  %v7332_v33 = vld [vmem:[#allocation71_spill] sm:$0xff] }
 0x2ca   :  { %1669 = vmatpush1.bf16.msra.mxu0 %v7308_v32  ;;  %1710 = vmatpush1.bf16.msra.mxu1 %v7309_v15  ;;  %v7323_v32 = vld [vmem:[#allocation62_spill] sm:$0xff]  ;;  %v7324_v15 = vld [vmem:[#allocation63_spill] sm:$0xff] }
 0x2cb   :  { %1670 = vmatprep.subr.bf16.mxu0 %v7310_v56  ;;  %1711 = vmatprep.subr.bf16.mxu1 %v7311_v20  ;;  %4415 = vrcp.f32 %v1571_v16  ;;  %v7325_v56 = vld [vmem:[#allocation64_spill] sm:$0xff]  ;;  %v7326_v20 = vld [vmem:[#allocation65_spill] sm:$0xff] }
 0x2cc   :  { %1700 = vmatprep.mubr.bf16.mxu0 %v7211_v35  ;;  %1741 = vmatprep.mubr.bf16.mxu1 %v7211_v35 }
 0x2ce   :  { %1671 = vmatpush1.bf16.msra.mxu0 %v7312_v58  ;;  %1712 = vmatpush1.bf16.msra.mxu1 %v7313_v47  ;;  %v7328_v58 = vld [vmem:[#allocation67_spill] sm:$0xff]  ;;  %v7329_v47 = vld [vmem:[#allocation68_spill] sm:$0xff] }
 0x2cf   :  { %1672 = vmatprep.subr.bf16.mxu0 %v7314_v55  ;;  %1713 = vmatprep.subr.bf16.mxu1 %v7315_v57  ;;  %v7330_v55 = vld [vmem:[#allocation69_spill] sm:$0xff]  ;;  %v7331_v57 = vld [vmem:[#allocation70_spill] sm:$0xff] }
 0x2d2   :  { %v4412_v44 = vpop.eup %4411  ;;  %1673 = vmatpush1.bf16.msra.mxu0 %v7316_v17  ;;  %1714 = vmatpush1.bf16.msra.mxu1 %v7317_v53  ;;  %v7334_v53 = vld [vmem:[#allocation73_spill] sm:$0xff] }
 0x2d3   :  { %v1580_v34 = vmul.f32 %v4412_v44, %v4408_v24  ;;  %1674 = vmatprep.subr.bf16.mxu0 %v7318_v19  ;;  %1715 = vmatprep.subr.bf16.mxu1 %v7319_v30  ;;  %v4414_v31 = vpop.eup %4413  ;;  %v7333_v44 = vld [vmem:[#allocation72_spill] sm:$0xff]  ;;  %v7336_v30 = vld [vmem:[#allocation75_spill] sm:$0xff] }
 0x2d4   :  { %v1579_v18 = vmul.f32 %v4414_v31, %v5616_v14  ;;  %v7327_v14 = vld [vmem:[#allocation66_spill] sm:$0xff]  ;;  %v7337_v31 = vld [vmem:[#allocation76_spill] sm:$0xff] }
 0x2d5   :  { %v4416_v24 = vpop.eup %4415 }
 0x2d6   :  { %1675 = vmatpush1.bf16.msra.mxu0 %v7320_v28  ;;  %1716 = vmatpush1.bf16.msra.mxu1 %v7321_v54  ;;  %v5734_v27 = vadd.f32 %v1580_v34, %v1579_v18  ;;  %v7335_v34 = vld [vmem:[#allocation74_spill] sm:$0xff]  ;;  %v5758_v28 = vld [vmem:[#allocation8 + $0xc] ss:$16 sps:$4 sm:$0xff]  }
 0x2d7   :  { %1676 = vmatprep.subr.bf16.mxu0 %v7322_v26  ;;  %1717 = vmatprep.subr.bf16.mxu1 %v7323_v32  ;;  %v5755_v18 = vld [vmem:[#allocation8 + $0x4] ss:$16 sps:$4 sm:$0xff]   ;;  %v5763_v54 = vld [vmem:[#allocation8] ss:$16 sps:$4 sm:$0xff]   ;;  %v5766_v26 = vld [vmem:[#allocation8 + $0x8] ss:$16 sps:$4 sm:$0xff]  }
 0x2d8   :  { %4417 = vtanh.f32 %v5734_v27  ;;  %v5769_v32 = vld [vmem:[#allocation8 + $0x24] ss:$16 sps:$4 sm:$0xff]  }
 0x2da   :  { %1677 = vmatpush1.bf16.msra.mxu0 %v7324_v15  ;;  %1718 = vmatpush1.bf16.msra.mxu1 %v7325_v56  ;;  %v5772_v15 = vld [vmem:[#allocation8 + $0x2c] ss:$16 sps:$4 sm:$0xff]   ;;  %v5777_v56 = vld [vmem:[#allocation8 + $0x20] ss:$16 sps:$4 sm:$0xff]  }
 0x2db   :  { %1678 = vmatprep.subr.bf16.mxu0 %v7326_v20  ;;  %1719 = vmatprep.subr.bf16.mxu1 %v7327_v14  ;;  %7338 = vst [vmem:[#allocation23_spill] sm:$0xff] %v5772_v15  ;;  %7339 = vst [vmem:[#allocation24_spill] sm:$0xff] %v5777_v56  ;;  %v5780_v20 = vld [vmem:[#allocation8 + $0x28] ss:$16 sps:$4 sm:$0xff]   ;;  %v5783_v14 = vld [vmem:[#allocation8 + $0x44] ss:$16 sps:$4 sm:$0xff]  }
 0x2dc   :  { %7340 = vst [vmem:[#allocation25_spill] sm:$0xff] %v5780_v20  ;;  %7341 = vst [vmem:[#allocation26_spill] sm:$0xff] %v5783_v14 }
 0x2de   :  { %1679 = vmatpush1.bf16.msra.mxu0 %v7328_v58  ;;  %1720 = vmatpush1.bf16.msra.mxu1 %v7329_v47  ;;  %v5786_v58 = vld [vmem:[#allocation8 + $0x4c] ss:$16 sps:$4 sm:$0xff]   ;;  %v5789_v47 = vld [vmem:[#allocation8 + $0x40] ss:$16 sps:$4 sm:$0xff]  }
 0x2df   :  { %1680 = vmatprep.subr.bf16.mxu0 %v7330_v55  ;;  %1721 = vmatprep.subr.bf16.mxu1 %v7331_v57  ;;  %7342 = vst [vmem:[#allocation27_spill] sm:$0xff] %v5786_v58  ;;  %7343 = vst [vmem:[#allocation28_spill] sm:$0xff] %v5789_v47  ;;  %v5792_v55 = vld [vmem:[#allocation8 + $0x48] ss:$16 sps:$4 sm:$0xff]   ;;  %v5795_v57 = vld [vmem:[#allocation8 + $0x64] ss:$16 sps:$4 sm:$0xff]  }
 0x2e0   :  { %7344 = vst [vmem:[#allocation29_spill] sm:$0xff] %v5792_v55  ;;  %7345 = vst [vmem:[#allocation30_spill] sm:$0xff] %v5795_v57 }
 0x2e2   :  { %1681 = vmatpush1.bf16.msra.mxu0 %v7332_v33  ;;  %1722 = vmatpush1.bf16.msra.mxu1 %v7333_v44  ;;  %v4418_v17 = vpop.eup %4417  ;;  %v5801_v33 = vld [vmem:[#allocation8 + $0x60] ss:$16 sps:$4 sm:$0xff]   ;;  %v5804_v44 = vld [vmem:[#allocation8 + $0x68] ss:$16 sps:$4 sm:$0xff]  }
 0x2e3   :  { %1682 = vmatprep.subr.bf16.mxu0 %v7334_v53  ;;  %1723 = vmatprep.subr.bf16.mxu1 %v7335_v34  ;;  %v1583_v19 = vmul.f32 %v4418_v17, %v4416_v24  ;;  %v5798_v24 = vld [vmem:[#allocation8 + $0x6c] ss:$16 sps:$4 sm:$0xff]   ;;  %7347 = vst [vmem:[#allocation32_spill] sm:$0xff] %v5801_v33  ;;  %7348 = vst [vmem:[#allocation33_spill] sm:$0xff] %v5804_v44  ;;  %v5807_v17 = vld [vmem:[#allocation8 + $0x84] ss:$16 sps:$4 sm:$0xff]  }
 0x2e4   :  { %7346 = vst [vmem:[#allocation31_spill] sm:$0xff] %v5798_v24  ;;  %7349 = vst [vmem:[#allocation34_spill] sm:$0xff] %v5807_v17  ;;  %v5810_v53 = vld [vmem:[#allocation8 + $0x8c] ss:$16 sps:$4 sm:$0xff]   ;;  %v5813_v34 = vld [vmem:[#allocation8 + $0x80] ss:$16 sps:$4 sm:$0xff]  }
 0x2e5   :  { %v5753_v16 = vpack.c.bf16 %v1583_v19, %v1583_v19  ;;  %7350 = vst [vmem:[#allocation35_spill] sm:$0xff] %v5810_v53  ;;  %7351 = vst [vmem:[#allocation36_spill] sm:$0xff] %v5813_v34  ;;  %v5816_v19 = vld [vmem:[#allocation8 + $0x88] ss:$16 sps:$4 sm:$0xff]  }
 0x2e6   :  { %1683 = vmatpush1.bf16.msra.mxu0 %v7336_v30  ;;  %1724 = vmatpush1.bf16.msra.mxu1 %v7337_v31  ;;  %7352 = vst [vmem:[#allocation37_spill] sm:$0xff] %v5816_v19  ;;  %v5819_v30 = vld [vmem:[#allocation8 + $0xa4] ss:$16 sps:$4 sm:$0xff]   ;;  %v5822_v31 = vld [vmem:[#allocation8 + $0xac] ss:$16 sps:$4 sm:$0xff]  }
 0x2e7   :  { %1782 = vmatprep.subr.bf16.mxu0 %v5755_v18  ;;  %1823 = vmatprep.subr.bf16.mxu1 %v5758_v28  ;;  %7353 = vst [vmem:[#allocation38_spill] sm:$0xff] %v5819_v30  ;;  %7354 = vst [vmem:[#allocation39_spill] sm:$0xff] %v5822_v31 }
 0x2e9   :  { %1701 = vmatmul.mubr.bf16.vlgmr.msra.gmra.mrb[36].mxu0 %v5753_v16  ;;  %1742 = vmatmul.mubr.bf16.vlgmr.msra.gmra.mrb[36].mxu1 %v5753_v16 }
 0x2ea   :  { %1783 = vmatpush1.bf16.msra.mxu0 %v5763_v54  ;;  %1824 = vmatpush1.bf16.msra.mxu1 %v5766_v26 }
 0x2eb   :  { %1784 = vmatprep.subr.bf16.mxu0 %v5769_v32  ;;  %1825 = vmatprep.subr.bf16.mxu1 %v5772_v15 }
 0x2ec   :  { %1814 = vmatprep.mubr.bf16.mxu0 %v7211_v35  ;;  %1855 = vmatprep.mubr.bf16.mxu1 %v7211_v35 }
 0x2ee   :  { %1785 = vmatpush1.bf16.msra.mxu0 %v5777_v56  ;;  %1826 = vmatpush1.bf16.msra.mxu1 %v5780_v20 }
 0x2ef   :  { %1786 = vmatprep.subr.bf16.mxu0 %v5783_v14  ;;  %1827 = vmatprep.subr.bf16.mxu1 %v5786_v58 }
 0x2f2   :  { %1787 = vmatpush1.bf16.msra.mxu0 %v5789_v47  ;;  %1828 = vmatpush1.bf16.msra.mxu1 %v5792_v55 }
 0x2f3   :  { %1788 = vmatprep.subr.bf16.mxu0 %v5795_v57  ;;  %1829 = vmatprep.subr.bf16.mxu1 %v5798_v24 }
 0x2f6   :  { %1789 = vmatpush1.bf16.msra.mxu0 %v5801_v33  ;;  %1830 = vmatpush1.bf16.msra.mxu1 %v5804_v44 }
 0x2f7   :  { %1790 = vmatprep.subr.bf16.mxu0 %v5807_v17  ;;  %1831 = vmatprep.subr.bf16.mxu1 %v5810_v53  ;;  %v5825_v17 = vld [vmem:[#allocation8 + $0xa0] ss:$16 sps:$4 sm:$0xff]   ;;  %v5828_v53 = vld [vmem:[#allocation8 + $0xa8] ss:$16 sps:$4 sm:$0xff]  }
 0x2f8   :  { %7355 = vst [vmem:[#allocation40_spill] sm:$0xff] %v5825_v17  ;;  %7356 = vst [vmem:[#allocation41_spill] sm:$0xff] %v5828_v53 }
 0x2fa   :  { %1791 = vmatpush1.bf16.msra.mxu0 %v5813_v34  ;;  %1832 = vmatpush1.bf16.msra.mxu1 %v5816_v19  ;;  %v5831_v34 = vld [vmem:[#allocation8 + $0xc4] ss:$16 sps:$4 sm:$0xff]   ;;  %v5834_v19 = vld [vmem:[#allocation8 + $0xcc] ss:$16 sps:$4 sm:$0xff]  }
 0x2fb   :  { %1792 = vmatprep.subr.bf16.mxu0 %v5819_v30  ;;  %1833 = vmatprep.subr.bf16.mxu1 %v5822_v31  ;;  %7357 = vst [vmem:[#allocation42_spill] sm:$0xff] %v5831_v34  ;;  %7358 = vst [vmem:[#allocation43_spill] sm:$0xff] %v5834_v19  ;;  %v5837_v30 = vld [vmem:[#allocation8 + $0xc0] ss:$16 sps:$4 sm:$0xff]   ;;  %v5840_v31 = vld [vmem:[#allocation8 + $0xc8] ss:$16 sps:$4 sm:$0xff]  }
 0x2fc   :  { %7359 = vst [vmem:[#allocation44_spill] sm:$0xff] %v5837_v30  ;;  %7360 = vst [vmem:[#allocation45_spill] sm:$0xff] %v5840_v31 }
 0x2fe   :  { %1793 = vmatpush1.bf16.msra.mxu0 %v5825_v17  ;;  %1834 = vmatpush1.bf16.msra.mxu1 %v5828_v53  ;;  %v5843_v17 = vld [vmem:[#allocation8 + $0xe4] ss:$16 sps:$4 sm:$0xff]   ;;  %v5846_v53 = vld [vmem:[#allocation8 + $0xec] ss:$16 sps:$4 sm:$0xff]  }
 0x2ff   :  { %1794 = vmatprep.subr.bf16.mxu0 %v5831_v34  ;;  %1835 = vmatprep.subr.bf16.mxu1 %v5834_v19  ;;  %7361 = vst [vmem:[#allocation46_spill] sm:$0xff] %v5843_v17  ;;  %7362 = vst [vmem:[#allocation77_spill] sm:$0xff] %v5846_v53  ;;  %v5849_v34 = vld [vmem:[#allocation8 + $0xe0] ss:$16 sps:$4 sm:$0xff]   ;;  %v5852_v19 = vld [vmem:[#allocation8 + $0xe8] ss:$16 sps:$4 sm:$0xff]  }
 0x300   :  { %7363 = vst [vmem:[#allocation78_spill] sm:$0xff] %v5849_v34  ;;  %7364 = vst [vmem:[#allocation79_spill] sm:$0xff] %v5852_v19 }
 0x302   :  { %1795 = vmatpush1.bf16.msra.mxu0 %v5837_v30  ;;  %1836 = vmatpush1.bf16.msra.mxu1 %v5840_v31 }
 0x303   :  { %1796 = vmatprep.subr.bf16.mxu0 %v5843_v17  ;;  %1837 = vmatprep.subr.bf16.mxu1 %v5846_v53 }
 0x306   :  { %1797 = vmatpush1.bf16.msra.mxu0 %v5849_v34  ;;  %1838 = vmatpush1.bf16.msra.mxu1 %v5852_v19 }
 0x307   :  { %1894 = vmatprep.subr.bf16.mxu0 %v5319_v6  ;;  %1935 = vmatprep.subr.bf16.mxu1 %v5321_v7 }
 0x309   :  { %1815 = vmatmul.mubr.bf16.vlgmr.msra.gmra.mrb[40].mxu0 %v5753_v16  ;;  %1856 = vmatmul.mubr.bf16.vlgmr.msra.gmra.mrb[40].mxu1 %v5753_v16 }
 0x30a   :  { %1895 = vmatpush1.bf16.msra.mxu0 %v5323_v8  ;;  %1936 = vmatpush1.bf16.msra.mxu1 %v5326_v9 }
 0x30b   :  { %1896 = vmatprep.subr.bf16.mxu0 %v5331_v10  ;;  %1937 = vmatprep.subr.bf16.mxu1 %v5333_v11 }
 0x30c   :  { %1926 = vmatprep.mubr.bf16.mxu0 %v7211_v35  ;;  %1967 = vmatprep.mubr.bf16.mxu1 %v7211_v35 }
 0x30e   :  { %1897 = vmatpush1.bf16.msra.mxu0 %v5335_v12  ;;  %1938 = vmatpush1.bf16.msra.mxu1 %v5338_v13 }
 0x30f   :  { %1898 = vmatprep.subr.bf16.mxu0 %v7271_v36  ;;  %1939 = vmatprep.subr.bf16.mxu1 %v7272_v37 }
 0x312   :  { %1899 = vmatpush1.bf16.msra.mxu0 %v7273_v38  ;;  %1940 = vmatpush1.bf16.msra.mxu1 %v7274_v39 }
 0x313   :  { %1900 = vmatprep.subr.bf16.mxu0 %v7275_v40  ;;  %1941 = vmatprep.subr.bf16.mxu1 %v7276_v41 }
 0x316   :  { %1901 = vmatpush1.bf16.msra.mxu0 %v7277_v42  ;;  %1942 = vmatpush1.bf16.msra.mxu1 %v7278_v43 }
 0x317   :  { %1902 = vmatprep.subr.bf16.mxu0 %v7279_v45  ;;  %1943 = vmatprep.subr.bf16.mxu1 %v7280_v46 }
 0x31a   :  { %1903 = vmatpush1.bf16.msra.mxu0 %v7281_v48  ;;  %1944 = vmatpush1.bf16.msra.mxu1 %v7282_v49 }
 0x31b   :  { %1904 = vmatprep.subr.bf16.mxu0 %v7283_v51  ;;  %1945 = vmatprep.subr.bf16.mxu1 %v7284_v52 }
 0x31e   :  { %1905 = vmatpush1.bf16.msra.mxu0 %v7285_v59  ;;  %1946 = vmatpush1.bf16.msra.mxu1 %v7286_v60 }
 0x31f   :  { %1906 = vmatprep.subr.bf16.mxu0 %v7287_v63  ;;  %1947 = vmatprep.subr.bf16.mxu1 %v7288_v1 }
 0x322   :  { %1907 = vmatpush1.bf16.msra.mxu0 %v7289_v2  ;;  %1948 = vmatpush1.bf16.msra.mxu1 %v7290_v3 }
 0x323   :  { %1908 = vmatprep.subr.bf16.mxu0 %v7291_v4  ;;  %1949 = vmatprep.subr.bf16.mxu1 %v7292_v5 }
 0x326   :  { %1909 = vmatpush1.bf16.msra.mxu0 %v7293_v21  ;;  %1950 = vmatpush1.bf16.msra.mxu1 %v7294_v29 }
 0x327   :  { %1976 = vmatprep.subr.bf16.mxu0 %v7295_v23  ;;  %2017 = vmatprep.subr.bf16.mxu1 %v7296_v22 }
 0x39c   :  { %v1620_v6 = vpop.f32.mrb[32].mxu0  ;;  %v1661_v7 = vpop.f32.mrb[32].mxu1 }
 0x39d   :  { %v1622_v8 = vpop.f32.mrb[33].mxu0  ;;  %v1663_v9 = vpop.f32.mrb[33].mxu1 }
 0x39e   :  { %v1624_v10 = vpop.f32.mrb[34].mxu0  ;;  %v1665_v11 = vpop.f32.mrb[34].mxu1 }
 0x39f   :  { %v1625_v12 = vpop.f32.mrb[35].mxu0  ;;  %v1666_v13 = vpop.f32.mrb[35].mxu1  ;;  %v7365_v11 = vld [vmem:[#allocation82_spill] sm:$0xff] }
 0x3a0   :  { %v7366_v13 = vld [vmem:[#allocation83_spill] sm:$0xff] }
 0x3bc   :  { %v1702_v36 = vpop.f32.mrb[36].mxu0  ;;  %v1743_v37 = vpop.f32.mrb[36].mxu1 }
 0x3bd   :  { %v1703_v38 = vadd.f32 %v1702_v36, %v1620_v6  ;;  %v1744_v39 = vadd.f32 %v1743_v37, %v1661_v7  ;;  %v1704_v40 = vpop.f32.mrb[37].mxu0  ;;  %v1745_v41 = vpop.f32.mrb[37].mxu1 }
 0x3be   :  { %v1705_v42 = vadd.f32 %v1704_v40, %v1622_v8  ;;  %v1746_v43 = vadd.f32 %v1745_v41, %v1663_v9  ;;  %v1706_v45 = vpop.f32.mrb[38].mxu0  ;;  %v1747_v46 = vpop.f32.mrb[38].mxu1  ;;  %v7368_v41 = vld [vmem:[#allocation85_spill] sm:$0xff] }
 0x3bf   :  { %v1750_v48 = vadd.f32 %v1703_v38, %v5692_v62  ;;  %v1707_v49 = vpop.f32.mrb[39].mxu0  ;;  %v1748_v51 = vpop.f32.mrb[39].mxu1  ;;  %v1752_v63 = vadd.f32 %v1744_v39, %v5702_v61  ;;  %v7367_v39 = vld [vmem:[#allocation84_spill] sm:$0xff] }
 0x3c0   :  { %v1751_v52 = vadd.f32 %v1705_v42, %v5696_v0  ;;  %v1753_v1 = vadd.f32 %v1746_v43, %v5706_v50 }
 0x3c1   :  { %v4027_v59 = vmul.f32 -1.442695, %v1750_v48  ;;  %v4029_v2 = vmul.f32 -1.442695, %v1752_v63 }
 0x3c2   :  { %v4028_v60 = vmul.f32 -1.442695, %v1751_v52 }
 0x3c3   :  { %4419 = vpow2.f32 %v4027_v59 }
 0x3c4   :  { %4421 = vpow2.f32 %v4028_v60 }
 0x3c5   :  { %4423 = vtanh.f32 %v1753_v1 }
 0x3c6   :  { %4425 = vpow2.f32 %v4029_v2 }
 0x3cd   :  { %v4420_v3 = vpop.eup %4419 }
 0x3ce   :  { %v1763_v4 = vadd.f32 1.0, %v4420_v3  ;;  %v4422_v5 = vpop.eup %4421 }
 0x3cf   :  { %v1764_v21 = vadd.f32 1.0, %v4422_v5  ;;  %v4424_v29 = vpop.eup %4423 }
 0x3d0   :  { %4427 = vrcp.f32 %v1763_v4  ;;  %v4426_v23 = vpop.eup %4425 }
 0x3d1   :  { %4429 = vrcp.f32 %v1764_v21  ;;  %v1765_v7 = vadd.f32 1.0, %v4426_v23  ;;  %v5905_v21 = vld [vmem:[#allocation9] ss:$16 sps:$4 sm:$0xff]   ;;  %v5911_v23 = vld [vmem:[#allocation9 + $0x24] ss:$16 sps:$4 sm:$0xff]  }
 0x3d3   :  { %4431 = vrcp.f32 %v1765_v7  ;;  %v5925_v7 = vld [vmem:[#allocation9 + $0x44] ss:$16 sps:$4 sm:$0xff]  }
 0x3da   :  { %v4428_v22 = vpop.eup %4427 }
 0x3db   :  { %v1774_v16 = vmul.f32 %v4428_v22, %v4424_v29  ;;  %v4430_v6 = vpop.eup %4429  ;;  %v5908_v29 = vld [vmem:[#allocation9 + $0x8] ss:$16 sps:$4 sm:$0xff]   ;;  %v5914_v22 = vld [vmem:[#allocation9 + $0x2c] ss:$16 sps:$4 sm:$0xff]  }
 0x3dc   :  { %v1816_v8 = vpop.f32.mrb[40].mxu0  ;;  %v1857_v9 = vpop.f32.mrb[40].mxu1  ;;  %v1773_v10 = vmul.f32 %v4430_v6, %v5714_v25  ;;  %v5922_v6 = vld [vmem:[#allocation9 + $0x28] ss:$16 sps:$4 sm:$0xff]  }
 0x3dd   :  { %v1864_v12 = vadd.f32 %v1816_v8, %v7365_v11  ;;  %v1866_v36 = vadd.f32 %v1857_v9, %v7366_v13  ;;  %v1818_v37 = vpop.f32.mrb[41].mxu0  ;;  %v1859_v38 = vpop.f32.mrb[41].mxu1  ;;  %v5928_v8 = vld [vmem:[#allocation9 + $0x4c] ss:$16 sps:$4 sm:$0xff]   ;;  %v5934_v13 = vld [vmem:[#allocation9 + $0x48] ss:$16 sps:$4 sm:$0xff]  }
 0x3de   :  { %v1865_v40 = vadd.f32 %v1818_v37, %v7367_v39  ;;  %v1867_v42 = vadd.f32 %v1859_v38, %v7368_v41  ;;  %v1820_v43 = vpop.f32.mrb[42].mxu0  ;;  %v1861_v45 = vpop.f32.mrb[42].mxu1  ;;  %v5902_v46 = vadd.f32 %v1774_v16, %v1773_v10  ;;  %v5919_v16 = vld [vmem:[#allocation9 + $0x20] ss:$16 sps:$4 sm:$0xff]   ;;  %v5937_v37 = vld [vmem:[#allocation9 + $0x64] ss:$16 sps:$4 sm:$0xff]  }
 0x3df   :  { %v4030_v48 = vmul.f32 -1.442695, %v1864_v12  ;;  %v1821_v49 = vpop.f32.mrb[43].mxu0  ;;  %v1862_v51 = vpop.f32.mrb[43].mxu1  ;;  %v4032_v59 = vmul.f32 -1.442695, %v1866_v36 }
 0x3e0   :  { %v4031_v52 = vmul.f32 -1.442695, %v1865_v40  ;;  %4433 = vtanh.f32 %v5902_v46  ;;  %v4432_v25 = vpop.eup %4431  ;;  %v5931_v12 = vld [vmem:[#allocation9 + $0x40] ss:$16 sps:$4 sm:$0xff]   ;;  %v5940_v38 = vld [vmem:[#allocation9 + $0x6c] ss:$16 sps:$4 sm:$0xff]  }
 0x3e1   :  { %4435 = vpow2.f32 %v4030_v48  ;;  %v5947_v43 = vld [vmem:[#allocation9 + $0x68] ss:$16 sps:$4 sm:$0xff]   ;;  %v5952_v48 = vld [vmem:[#allocation9 + $0x84] ss:$16 sps:$4 sm:$0xff]   ;;  %v5955_v49 = vld [vmem:[#allocation9 + $0x8c] ss:$16 sps:$4 sm:$0xff]  }
 0x3e2   :  { %4437 = vpow2.f32 %v4031_v52  ;;  %v5962_v51 = vld [vmem:[#allocation9 + $0x88] ss:$16 sps:$4 sm:$0xff]   ;;  %v5965_v52 = vld [vmem:[#allocation9 + $0xa4] ss:$16 sps:$4 sm:$0xff]  }
 0x3e3   :  { %4439 = vtanh.f32 %v1867_v42  ;;  %v5944_v42 = vld [vmem:[#allocation9 + $0x60] ss:$16 sps:$4 sm:$0xff]  }
 0x3e4   :  { %4441 = vpow2.f32 %v4032_v59  ;;  %v5971_v59 = vld [vmem:[#allocation9 + $0xa0] ss:$16 sps:$4 sm:$0xff]  }
 0x3ea   :  { %v4434_v60 = vpop.eup %4433 }
 0x3eb   :  { %v4436_v63 = vpop.eup %4435  ;;  %v1777_v1 = vmul.f32 %v4434_v60, %v4432_v25  ;;  %v5968_v25 = vld [vmem:[#allocation9 + $0xac] ss:$16 sps:$4 sm:$0xff]   ;;  %v5974_v60 = vld [vmem:[#allocation9 + $0xa8] ss:$16 sps:$4 sm:$0xff]  }
 0x3ec   :  { %v1877_v2 = vadd.f32 1.0, %v4436_v63  ;;  %v4438_v3 = vpop.eup %4437  ;;  %v5977_v63 = vld [vmem:[#allocation9 + $0xc4] ss:$16 sps:$4 sm:$0xff]  }
 0x3ed   :  { %v1893_v4 = vpack.c.bf16 %v1777_v1, %v1777_v1  ;;  %v1878_v5 = vadd.f32 1.0, %v4438_v3  ;;  %v4440_v9 = vpop.eup %4439  ;;  %v5980_v1 = vld [vmem:[#allocation9 + $0xcc] ss:$16 sps:$4 sm:$0xff]   ;;  %v5983_v3 = vld [vmem:[#allocation9 + $0xc0] ss:$16 sps:$4 sm:$0xff]  }
 0x3ee   :  { %4443 = vrcp.f32 %v1877_v2  ;;  %v4442_v10 = vpop.eup %4441 }
 0x3ef   :  { %1927 = vmatmul.mubr.bf16.vlgmr.msra.gmra.mrb[44].mxu0 %v1893_v4  ;;  %1968 = vmatmul.mubr.bf16.vlgmr.msra.gmra.mrb[44].mxu1 %v1893_v4  ;;  %4445 = vrcp.f32 %v1878_v5  ;;  %v1879_v40 = vadd.f32 1.0, %v4442_v10  ;;  %v5986_v4 = vld [vmem:[#allocation9 + $0xc8] ss:$16 sps:$4 sm:$0xff]   ;;  %v5992_v10 = vld [vmem:[#allocation9 + $0xec] ss:$16 sps:$4 sm:$0xff]  }
 0x3f0   :  { %1977 = vmatpush1.bf16.msra.mxu0 %v5905_v21  ;;  %2018 = vmatpush1.bf16.msra.mxu1 %v5908_v29 }
 0x3f1   :  { %1978 = vmatprep.subr.bf16.mxu0 %v5911_v23  ;;  %2019 = vmatprep.subr.bf16.mxu1 %v5914_v22  ;;  %4447 = vrcp.f32 %v1879_v40 }
 0x3f2   :  { %2008 = vmatprep.mubr.bf16.mxu0 %v7211_v35  ;;  %2049 = vmatprep.mubr.bf16.mxu1 %v7211_v35 }
 0x3f4   :  { %1979 = vmatpush1.bf16.msra.mxu0 %v5919_v16  ;;  %2020 = vmatpush1.bf16.msra.mxu1 %v5922_v6 }
 0x3f5   :  { %1980 = vmatprep.subr.bf16.mxu0 %v5925_v7  ;;  %2021 = vmatprep.subr.bf16.mxu1 %v5928_v8 }
 0x3f8   :  { %v4444_v11 = vpop.eup %4443  ;;  %1981 = vmatpush1.bf16.msra.mxu0 %v5931_v12  ;;  %2022 = vmatpush1.bf16.msra.mxu1 %v5934_v13 }
 0x3f9   :  { %v1888_v36 = vmul.f32 %v4444_v11, %v4440_v9  ;;  %1982 = vmatprep.subr.bf16.mxu0 %v5937_v37  ;;  %2023 = vmatprep.subr.bf16.mxu1 %v5940_v38  ;;  %v4446_v39 = vpop.eup %4445  ;;  %v5989_v9 = vld [vmem:[#allocation9 + $0xe4] ss:$16 sps:$4 sm:$0xff]  }
 0x3fa   :  { %v1887_v41 = vmul.f32 %v4446_v39, %v5734_v27  ;;  %v5959_v27 = vld [vmem:[#allocation9 + $0x80] ss:$16 sps:$4 sm:$0xff]   ;;  %v5998_v39 = vld [vmem:[#allocation9 + $0xe8] ss:$16 sps:$4 sm:$0xff]  }
 0x3fb   :  { %v4448_v2 = vpop.eup %4447 }
 0x3fc   :  { %1983 = vmatpush1.bf16.msra.mxu0 %v5944_v42  ;;  %2024 = vmatpush1.bf16.msra.mxu1 %v5947_v43  ;;  %v5950_v45 = vadd.f32 %v1888_v36, %v1887_v41  ;;  %v5995_v36 = vld [vmem:[#allocation9 + $0xe0] ss:$16 sps:$4 sm:$0xff]  }
 0x3fd   :  { %1984 = vmatprep.subr.bf16.mxu0 %v5952_v48  ;;  %2025 = vmatprep.subr.bf16.mxu1 %v5955_v49  ;;  %v7369_v41 = vld [vmem:[#allocation34_spill] sm:$0xff] }
 0x3fe   :  { %4449 = vtanh.f32 %v5950_v45 }
 0x400   :  { %1985 = vmatpush1.bf16.msra.mxu0 %v5959_v27  ;;  %2026 = vmatpush1.bf16.msra.mxu1 %v5962_v51 }
 0x401   :  { %1986 = vmatprep.subr.bf16.mxu0 %v5965_v52  ;;  %2027 = vmatprep.subr.bf16.mxu1 %v5968_v25 }
 0x404   :  { %1987 = vmatpush1.bf16.msra.mxu0 %v5971_v59  ;;  %2028 = vmatpush1.bf16.msra.mxu1 %v5974_v60 }
 0x405   :  { %1988 = vmatprep.subr.bf16.mxu0 %v5977_v63  ;;  %2029 = vmatprep.subr.bf16.mxu1 %v5980_v1 }
 0x408   :  { %1989 = vmatpush1.bf16.msra.mxu0 %v5983_v3  ;;  %2030 = vmatpush1.bf16.msra.mxu1 %v5986_v4  ;;  %v4450_v5 = vpop.eup %4449 }
 0x409   :  { %1990 = vmatprep.subr.bf16.mxu0 %v5989_v9  ;;  %2031 = vmatprep.subr.bf16.mxu1 %v5992_v10  ;;  %v1891_v11 = vmul.f32 %v4450_v5, %v4448_v2  ;;  %v7370_v2 = vld [vmem:[#allocation35_spill] sm:$0xff]  ;;  %v7371_v5 = vld [vmem:[#allocation36_spill] sm:$0xff] }
 0x40b   :  { %v1892_v40 = vpack.c.bf16 %v1891_v11, %v1891_v11  ;;  %v7372_v11 = vld [vmem:[#allocation37_spill] sm:$0xff] }
 0x40c   :  { %1991 = vmatpush1.bf16.msra.mxu0 %v5995_v36  ;;  %2032 = vmatpush1.bf16.msra.mxu1 %v5998_v39 }
 0x40d   :  { %2090 = vmatprep.subr.bf16.mxu0 %v5755_v18  ;;  %2131 = vmatprep.subr.bf16.mxu1 %v5758_v28 }
 0x40f   :  { %2009 = vmatmul.mubr.bf16.vlgmr.msra.gmra.mrb[48].mxu0 %v1892_v40  ;;  %2050 = vmatmul.mubr.bf16.vlgmr.msra.gmra.mrb[48].mxu1 %v1892_v40 }
 0x410   :  { %2091 = vmatpush1.bf16.msra.mxu0 %v5763_v54  ;;  %2132 = vmatpush1.bf16.msra.mxu1 %v5766_v26 }
 0x411   :  { %2092 = vmatprep.subr.bf16.mxu0 %v5769_v32  ;;  %2133 = vmatprep.subr.bf16.mxu1 %v5772_v15 }
 0x412   :  { %2122 = vmatprep.mubr.bf16.mxu0 %v7211_v35  ;;  %2163 = vmatprep.mubr.bf16.mxu1 %v7211_v35 }
 0x414   :  { %2093 = vmatpush1.bf16.msra.mxu0 %v5777_v56  ;;  %2134 = vmatpush1.bf16.msra.mxu1 %v5780_v20 }
 0x415   :  { %2094 = vmatprep.subr.bf16.mxu0 %v5783_v14  ;;  %2135 = vmatprep.subr.bf16.mxu1 %v5786_v58  ;;  %v7373_v58 = vld [vmem:[#allocation38_spill] sm:$0xff] }
 0x418   :  { %2095 = vmatpush1.bf16.msra.mxu0 %v5789_v47  ;;  %2136 = vmatpush1.bf16.msra.mxu1 %v5792_v55  ;;  %v7374_v47 = vld [vmem:[#allocation39_spill] sm:$0xff]  ;;  %v7375_v55 = vld [vmem:[#allocation40_spill] sm:$0xff] }
 0x419   :  { %2096 = vmatprep.subr.bf16.mxu0 %v5795_v57  ;;  %2137 = vmatprep.subr.bf16.mxu1 %v5798_v24  ;;  %v7376_v57 = vld [vmem:[#allocation41_spill] sm:$0xff]  ;;  %v7377_v24 = vld [vmem:[#allocation42_spill] sm:$0xff] }
 0x41c   :  { %2097 = vmatpush1.bf16.msra.mxu0 %v5801_v33  ;;  %2138 = vmatpush1.bf16.msra.mxu1 %v5804_v44  ;;  %v7378_v33 = vld [vmem:[#allocation43_spill] sm:$0xff] }
 0x41d   :  { %2098 = vmatprep.subr.bf16.mxu0 %v7369_v41  ;;  %2139 = vmatprep.subr.bf16.mxu1 %v7370_v2 }
 0x420   :  { %2099 = vmatpush1.bf16.msra.mxu0 %v7371_v5  ;;  %2140 = vmatpush1.bf16.msra.mxu1 %v7372_v11 }
 0x421   :  { %2100 = vmatprep.subr.bf16.mxu0 %v7373_v58  ;;  %2141 = vmatprep.subr.bf16.mxu1 %v7374_v47  ;;  %v6035_v47 = vld [vmem:[#allocation11 + $0x4] ss:$16 sps:$4 sm:$0xff]  }
 0x422   :  { %7379 = vst [vmem:[#allocation80_spill] sm:$0xff] %v6035_v47 }
 0x424   :  { %2101 = vmatpush1.bf16.msra.mxu0 %v7375_v55  ;;  %2142 = vmatpush1.bf16.msra.mxu1 %v7376_v57  ;;  %v6038_v57 = vld [vmem:[#allocation11 + $0xc] ss:$16 sps:$4 sm:$0xff]  }
 0x425   :  { %2102 = vmatprep.subr.bf16.mxu0 %v7377_v24  ;;  %2143 = vmatprep.subr.bf16.mxu1 %v7378_v33  ;;  %7380 = vst [vmem:[#allocation81_spill] sm:$0xff] %v6038_v57 }
 0x428   :  { %2103 = vmatpush1.bf16.msra.mxu0 %v5837_v30  ;;  %2144 = vmatpush1.bf16.msra.mxu1 %v5840_v31  ;;  %v6041_v30 = vld [vmem:[#allocation11] ss:$16 sps:$4 sm:$0xff]  }
 0x429   :  { %2104 = vmatprep.subr.bf16.mxu0 %v5843_v17  ;;  %2145 = vmatprep.subr.bf16.mxu1 %v5846_v53  ;;  %7381 = vst [vmem:[#allocation47_spill] sm:$0xff] %v6041_v30  ;;  %v6044_v17 = vld [vmem:[#allocation11 + $0x8] ss:$16 sps:$4 sm:$0xff]  }
 0x42a   :  { %7382 = vst [vmem:[#allocation48_spill] sm:$0xff] %v6044_v17 }
 0x42c   :  { %2105 = vmatpush1.bf16.msra.mxu0 %v5849_v34  ;;  %2146 = vmatpush1.bf16.msra.mxu1 %v5852_v19  ;;  %v6047_v34 = vld [vmem:[#allocation11 + $0x24] ss:$16 sps:$4 sm:$0xff]   ;;  %v6050_v19 = vld [vmem:[#allocation11 + $0x2c] ss:$16 sps:$4 sm:$0xff]  }
 0x42d   :  { %2202 = vmatprep.subr.bf16.mxu0 %v6035_v47  ;;  %2243 = vmatprep.subr.bf16.mxu1 %v6038_v57  ;;  %7383 = vst [vmem:[#allocation49_spill] sm:$0xff] %v6047_v34  ;;  %7384 = vst [vmem:[#allocation50_spill] sm:$0xff] %v6050_v19  ;;  %v6070_v57 = vld [vmem:[#allocation11 + $0x48] ss:$16 sps:$4 sm:$0xff]  }
 0x42e   :  { %7390 = vst [vmem:[#allocation56_spill] sm:$0xff] %v6070_v57 }
 0x42f   :  { %2123 = vmatmul.mubr.bf16.vlgmr.msra.gmra.mrb[52].mxu0 %v1892_v40  ;;  %2164 = vmatmul.mubr.bf16.vlgmr.msra.gmra.mrb[52].mxu1 %v1892_v40  ;;  %v6055_v40 = vld [vmem:[#allocation11 + $0x20] ss:$16 sps:$4 sm:$0xff]  }
 0x430   :  { %2203 = vmatpush1.bf16.msra.mxu0 %v6041_v30  ;;  %2244 = vmatpush1.bf16.msra.mxu1 %v6044_v17  ;;  %7385 = vst [vmem:[#allocation51_spill] sm:$0xff] %v6055_v40  ;;  %v6058_v30 = vld [vmem:[#allocation11 + $0x28] ss:$16 sps:$4 sm:$0xff]   ;;  %v6061_v17 = vld [vmem:[#allocation11 + $0x44] ss:$16 sps:$4 sm:$0xff]  }
 0x431   :  { %2204 = vmatprep.subr.bf16.mxu0 %v6047_v34  ;;  %2245 = vmatprep.subr.bf16.mxu1 %v6050_v19  ;;  %7386 = vst [vmem:[#allocation52_spill] sm:$0xff] %v6058_v30  ;;  %7387 = vst [vmem:[#allocation53_spill] sm:$0xff] %v6061_v17  ;;  %v6064_v34 = vld [vmem:[#allocation11 + $0x4c] ss:$16 sps:$4 sm:$0xff]   ;;  %v6067_v19 = vld [vmem:[#allocation11 + $0x40] ss:$16 sps:$4 sm:$0xff]  }
 0x432   :  { %2234 = vmatprep.mubr.bf16.mxu0 %v7211_v35  ;;  %2275 = vmatprep.mubr.bf16.mxu1 %v7211_v35  ;;  %7388 = vst [vmem:[#allocation54_spill] sm:$0xff] %v6064_v34  ;;  %7389 = vst [vmem:[#allocation55_spill] sm:$0xff] %v6067_v19 }
 0x434   :  { %2205 = vmatpush1.bf16.msra.mxu0 %v6055_v40  ;;  %2246 = vmatpush1.bf16.msra.mxu1 %v6058_v30  ;;  %v6073_v40 = vld [vmem:[#allocation11 + $0x64] ss:$16 sps:$4 sm:$0xff]   ;;  %v6076_v30 = vld [vmem:[#allocation11 + $0x6c] ss:$16 sps:$4 sm:$0xff]  }
 0x435   :  { %2206 = vmatprep.subr.bf16.mxu0 %v6061_v17  ;;  %2247 = vmatprep.subr.bf16.mxu1 %v6064_v34  ;;  %7391 = vst [vmem:[#allocation57_spill] sm:$0xff] %v6073_v40  ;;  %7392 = vst [vmem:[#allocation58_spill] sm:$0xff] %v6076_v30  ;;  %v6079_v17 = vld [vmem:[#allocation11 + $0x60] ss:$16 sps:$4 sm:$0xff]   ;;  %v6082_v34 = vld [vmem:[#allocation11 + $0x68] ss:$16 sps:$4 sm:$0xff]  }
 0x436   :  { %7393 = vst [vmem:[#allocation59_spill] sm:$0xff] %v6079_v17  ;;  %7394 = vst [vmem:[#allocation60_spill] sm:$0xff] %v6082_v34 }
 0x438   :  { %2207 = vmatpush1.bf16.msra.mxu0 %v6067_v19  ;;  %2248 = vmatpush1.bf16.msra.mxu1 %v6070_v57  ;;  %v6085_v19 = vld [vmem:[#allocation11 + $0x84] ss:$16 sps:$4 sm:$0xff]   ;;  %v6088_v57 = vld [vmem:[#allocation11 + $0x8c] ss:$16 sps:$4 sm:$0xff]  }
 0x439   :  { %2208 = vmatprep.subr.bf16.mxu0 %v6073_v40  ;;  %2249 = vmatprep.subr.bf16.mxu1 %v6076_v30  ;;  %7395 = vst [vmem:[#allocation61_spill] sm:$0xff] %v6085_v19  ;;  %7396 = vst [vmem:[#allocation62_spill] sm:$0xff] %v6088_v57  ;;  %v6091_v40 = vld [vmem:[#allocation11 + $0x80] ss:$16 sps:$4 sm:$0xff]   ;;  %v6094_v30 = vld [vmem:[#allocation11 + $0x88] ss:$16 sps:$4 sm:$0xff]  }
 0x43a   :  { %7397 = vst [vmem:[#allocation63_spill] sm:$0xff] %v6091_v40  ;;  %7398 = vst [vmem:[#allocation64_spill] sm:$0xff] %v6094_v30 }
 0x43c   :  { %2209 = vmatpush1.bf16.msra.mxu0 %v6079_v17  ;;  %2250 = vmatpush1.bf16.msra.mxu1 %v6082_v34  ;;  %v6097_v17 = vld [vmem:[#allocation11 + $0xa4] ss:$16 sps:$4 sm:$0xff]   ;;  %v6100_v34 = vld [vmem:[#allocation11 + $0xac] ss:$16 sps:$4 sm:$0xff]  }
 0x43d   :  { %2210 = vmatprep.subr.bf16.mxu0 %v6085_v19  ;;  %2251 = vmatprep.subr.bf16.mxu1 %v6088_v57  ;;  %7399 = vst [vmem:[#allocation65_spill] sm:$0xff] %v6097_v17  ;;  %7400 = vst [vmem:[#allocation66_spill] sm:$0xff] %v6100_v34  ;;  %v6103_v19 = vld [vmem:[#allocation11 + $0xa0] ss:$16 sps:$4 sm:$0xff]   ;;  %v6106_v57 = vld [vmem:[#allocation11 + $0xa8] ss:$16 sps:$4 sm:$0xff]  }
 0x43e   :  { %7401 = vst [vmem:[#allocation67_spill] sm:$0xff] %v6103_v19  ;;  %7402 = vst [vmem:[#allocation68_spill] sm:$0xff] %v6106_v57 }
 0x440   :  { %2211 = vmatpush1.bf16.msra.mxu0 %v6091_v40  ;;  %2252 = vmatpush1.bf16.msra.mxu1 %v6094_v30  ;;  %v6109_v40 = vld [vmem:[#allocation11 + $0xc4] ss:$16 sps:$4 sm:$0xff]   ;;  %v6112_v30 = vld [vmem:[#allocation11 + $0xcc] ss:$16 sps:$4 sm:$0xff]  }
 0x441   :  { %2212 = vmatprep.subr.bf16.mxu0 %v6097_v17  ;;  %2253 = vmatprep.subr.bf16.mxu1 %v6100_v34  ;;  %7403 = vst [vmem:[#allocation69_spill] sm:$0xff] %v6109_v40  ;;  %7404 = vst [vmem:[#allocation70_spill] sm:$0xff] %v6112_v30  ;;  %v6115_v17 = vld [vmem:[#allocation11 + $0xc0] ss:$16 sps:$4 sm:$0xff]   ;;  %v6118_v34 = vld [vmem:[#allocation11 + $0xc8] ss:$16 sps:$4 sm:$0xff]  }
 0x442   :  { %7405 = vst [vmem:[#allocation71_spill] sm:$0xff] %v6115_v17  ;;  %7406 = vst [vmem:[#allocation72_spill] sm:$0xff] %v6118_v34 }
 0x444   :  { %2213 = vmatpush1.bf16.msra.mxu0 %v6103_v19  ;;  %2254 = vmatpush1.bf16.msra.mxu1 %v6106_v57  ;;  %v6121_v19 = vld [vmem:[#allocation11 + $0xe4] ss:$16 sps:$4 sm:$0xff]   ;;  %v6124_v57 = vld [vmem:[#allocation11 + $0xec] ss:$16 sps:$4 sm:$0xff]  }
 0x445   :  { %2214 = vmatprep.subr.bf16.mxu0 %v6109_v40  ;;  %2255 = vmatprep.subr.bf16.mxu1 %v6112_v30  ;;  %7407 = vst [vmem:[#allocation73_spill] sm:$0xff] %v6121_v19  ;;  %7408 = vst [vmem:[#allocation74_spill] sm:$0xff] %v6124_v57  ;;  %v6127_v40 = vld [vmem:[#allocation11 + $0xe0] ss:$16 sps:$4 sm:$0xff]   ;;  %v6130_v30 = vld [vmem:[#allocation11 + $0xe8] ss:$16 sps:$4 sm:$0xff]  }
 0x446   :  { %7409 = vst [vmem:[#allocation75_spill] sm:$0xff] %v6127_v40  ;;  %7410 = vst [vmem:[#allocation76_spill] sm:$0xff] %v6130_v30 }
 0x448   :  { %2215 = vmatpush1.bf16.msra.mxu0 %v6115_v17  ;;  %2256 = vmatpush1.bf16.msra.mxu1 %v6118_v34  ;;  %v6133_v17 = vld [vmem:[#allocation9 + $0x4] ss:$16 sps:$4 sm:$0xff]   ;;  %v6136_v34 = vld [vmem:[#allocation9 + $0xc] ss:$16 sps:$4 sm:$0xff]  }
 0x449   :  { %2216 = vmatprep.subr.bf16.mxu0 %v6121_v19  ;;  %2257 = vmatprep.subr.bf16.mxu1 %v6124_v57  ;;  %7411 = vst [vmem:[#allocation82_spill] sm:$0xff] %v6133_v17  ;;  %7412 = vst [vmem:[#allocation83_spill] sm:$0xff] %v6136_v34 }
 0x44c   :  { %2217 = vmatpush1.bf16.msra.mxu0 %v6127_v40  ;;  %2258 = vmatpush1.bf16.msra.mxu1 %v6130_v30 }
 0x44d   :  { %2284 = vmatprep.subr.bf16.mxu0 %v6133_v17  ;;  %2325 = vmatprep.subr.bf16.mxu1 %v6136_v34 }
 0x4c2   :  { %v1928_v19 = vpop.f32.mrb[44].mxu0  ;;  %v1969_v47 = vpop.f32.mrb[44].mxu1 }
 0x4c3   :  { %v1930_v53 = vpop.f32.mrb[45].mxu0  ;;  %v1971_v57 = vpop.f32.mrb[45].mxu1 }
 0x4c4   :  { %v1932_v31 = vpop.f32.mrb[46].mxu0  ;;  %v1973_v33 = vpop.f32.mrb[46].mxu1 }
 0x4c5   :  { %v1933_v24 = vpop.f32.mrb[47].mxu0  ;;  %v1974_v40 = vpop.f32.mrb[47].mxu1 }
 0x4e2   :  { %v2010_v55 = vpop.f32.mrb[48].mxu0  ;;  %v2051_v58 = vpop.f32.mrb[48].mxu1 }
 0x4e3   :  { %v2011_v11 = vadd.f32 %v2010_v55, %v1928_v19  ;;  %v2052_v30 = vadd.f32 %v2051_v58, %v1969_v47  ;;  %v2012_v5 = vpop.f32.mrb[49].mxu0  ;;  %v2053_v2 = vpop.f32.mrb[49].mxu1 }
 0x4e4   :  { %v2013_v41 = vadd.f32 %v2012_v5, %v1930_v53  ;;  %v2054_v17 = vadd.f32 %v2053_v2, %v1971_v57  ;;  %v2014_v44 = vpop.f32.mrb[50].mxu0  ;;  %v2055_v14 = vpop.f32.mrb[50].mxu1 }
 0x4e5   :  { %v2058_v34 = vadd.f32 %v2011_v11, %v5692_v62  ;;  %v2015_v20 = vpop.f32.mrb[51].mxu0  ;;  %v2056_v56 = vpop.f32.mrb[51].mxu1  ;;  %v2060_v24 = vadd.f32 %v2052_v30, %v5702_v61  ;;  %v7414_v11 = vld [vmem:[#allocation87_spill] sm:$0xff] }
 0x4e6   :  { %v2059_v15 = vadd.f32 %v2013_v41, %v5696_v0  ;;  %v2061_v58 = vadd.f32 %v2054_v17, %v5706_v50  ;;  %v7413_v17 = vld [vmem:[#allocation86_spill] sm:$0xff] }
 0x4e7   :  { %v4033_v31 = vmul.f32 -1.442695, %v2058_v34  ;;  %v4035_v47 = vmul.f32 -1.442695, %v2060_v24  ;;  %v7415_v24 = vld [vmem:[#allocation88_spill] sm:$0xff] }
 0x4e8   :  { %v4034_v33 = vmul.f32 -1.442695, %v2059_v15 }
 0x4e9   :  { %4451 = vpow2.f32 %v4033_v31 }
 0x4ea   :  { %4453 = vpow2.f32 %v4034_v33 }
 0x4eb   :  { %4455 = vtanh.f32 %v2061_v58 }
 0x4ec   :  { %4457 = vpow2.f32 %v4035_v47  ;;  %v7416_v47 = vld [vmem:[#allocation89_spill] sm:$0xff] }
 0x4f3   :  { %v4452_v55 = vpop.eup %4451 }
 0x4f4   :  { %v2071_v53 = vadd.f32 1.0, %v4452_v55  ;;  %v4454_v57 = vpop.eup %4453 }
 0x4f5   :  { %v2072_v14 = vadd.f32 1.0, %v4454_v57  ;;  %v4456_v56 = vpop.eup %4455 }
 0x4f6   :  { %4459 = vrcp.f32 %v2071_v53  ;;  %v4458_v20 = vpop.eup %4457 }
 0x4f7   :  { %4461 = vrcp.f32 %v2072_v14  ;;  %v2073_v19 = vadd.f32 1.0, %v4458_v20 }
 0x4f9   :  { %4463 = vrcp.f32 %v2073_v19 }
 0x500   :  { %v4460_v44 = vpop.eup %4459 }
 0x501   :  { %v2082_v34 = vmul.f32 %v4460_v44, %v4456_v56  ;;  %v4462_v15 = vpop.eup %4461 }
 0x502   :  { %v2124_v41 = vpop.f32.mrb[52].mxu0  ;;  %v2165_v2 = vpop.f32.mrb[52].mxu1  ;;  %v2081_v30 = vmul.f32 %v4462_v15, %v5902_v46 }
 0x503   :  { %v2172_v5 = vadd.f32 %v2124_v41, %v7413_v17  ;;  %v2174_v40 = vadd.f32 %v2165_v2, %v7414_v11  ;;  %v2126_v31 = vpop.f32.mrb[53].mxu0  ;;  %v2167_v33 = vpop.f32.mrb[53].mxu1 }
 0x504   :  { %v2173_v58 = vadd.f32 %v2126_v31, %v7415_v24  ;;  %v2175_v55 = vadd.f32 %v2167_v33, %v7416_v47  ;;  %v2128_v53 = vpop.f32.mrb[54].mxu0  ;;  %v2169_v57 = vpop.f32.mrb[54].mxu1  ;;  %v6148_v14 = vadd.f32 %v2082_v34, %v2081_v30 }
 0x505   :  { %v4036_v56 = vmul.f32 -1.442695, %v2172_v5  ;;  %v2129_v20 = vpop.f32.mrb[55].mxu0  ;;  %v2170_v44 = vpop.f32.mrb[55].mxu1  ;;  %v4038_v15 = vmul.f32 -1.442695, %v2174_v40 }
 0x506   :  { %v4037_v50 = vmul.f32 -1.442695, %v2173_v58  ;;  %4465 = vtanh.f32 %v6148_v14  ;;  %v4464_v46 = vpop.eup %4463  ;;  %v7418_v20 = vld [vmem:[#allocation24_spill] sm:$0xff]  ;;  %v7419_v44 = vld [vmem:[#allocation25_spill] sm:$0xff] }
 0x507   :  { %4467 = vpow2.f32 %v4036_v56  ;;  %v7417_v56 = vld [vmem:[#allocation23_spill] sm:$0xff] }
 0x508   :  { %4469 = vpow2.f32 %v4037_v50 }
 0x509   :  { %4471 = vtanh.f32 %v2175_v55 }
 0x50a   :  { %4473 = vpow2.f32 %v4038_v15  ;;  %v7426_v15 = vld [vmem:[#allocation32_spill] sm:$0xff] }
 0x510   :  { %v4466_v41 = vpop.eup %4465 }
 0x511   :  { %v4468_v2 = vpop.eup %4467  ;;  %v2085_v17 = vmul.f32 %v4466_v41, %v4464_v46  ;;  %v7422_v46 = vld [vmem:[#allocation28_spill] sm:$0xff]  ;;  %v7427_v41 = vld [vmem:[#allocation33_spill] sm:$0xff] }
 0x512   :  { %v2185_v11 = vadd.f32 1.0, %v4468_v2  ;;  %v4470_v31 = vpop.eup %4469  ;;  %v7428_v2 = vld [vmem:[#allocation34_spill] sm:$0xff] }
 0x513   :  { %v2201_v34 = vpack.c.bf16 %v2085_v17, %v2085_v17  ;;  %v2186_v30 = vadd.f32 1.0, %v4470_v31  ;;  %v4472_v50 = vpop.eup %4471  ;;  %v7429_v17 = vld [vmem:[#allocation35_spill] sm:$0xff]  ;;  %v7431_v31 = vld [vmem:[#allocation37_spill] sm:$0xff] }
 0x514   :  { %4475 = vrcp.f32 %v2185_v11  ;;  %v4474_v19 = vpop.eup %4473  ;;  %v7430_v11 = vld [vmem:[#allocation36_spill] sm:$0xff] }
 0x515   :  { %2235 = vmatmul.mubr.bf16.vlgmr.msra.gmra.mrb[56].mxu0 %v2201_v34  ;;  %2276 = vmatmul.mubr.bf16.vlgmr.msra.gmra.mrb[56].mxu1 %v2201_v34  ;;  %4477 = vrcp.f32 %v2186_v30  ;;  %v2187_v24 = vadd.f32 1.0, %v4474_v19  ;;  %v7432_v34 = vld [vmem:[#allocation38_spill] sm:$0xff]  ;;  %v7433_v30 = vld [vmem:[#allocation39_spill] sm:$0xff]  ;;  %v7435_v19 = vld [vmem:[#allocation41_spill] sm:$0xff] }
 0x516   :  { %2285 = vmatpush1.bf16.msra.mxu0 %v5905_v21  ;;  %2326 = vmatpush1.bf16.msra.mxu1 %v5908_v29 }
 0x517   :  { %2286 = vmatprep.subr.bf16.mxu0 %v5911_v23  ;;  %2327 = vmatprep.subr.bf16.mxu1 %v5914_v22  ;;  %4479 = vrcp.f32 %v2187_v24  ;;  %v7439_v24 = vld [vmem:[#allocation45_spill] sm:$0xff] }
 0x518   :  { %2316 = vmatprep.mubr.bf16.mxu0 %v7211_v35  ;;  %2357 = vmatprep.mubr.bf16.mxu1 %v7211_v35 }
 0x51a   :  { %2287 = vmatpush1.bf16.msra.mxu0 %v5919_v16  ;;  %2328 = vmatpush1.bf16.msra.mxu1 %v5922_v6 }
 0x51b   :  { %2288 = vmatprep.subr.bf16.mxu0 %v5925_v7  ;;  %2329 = vmatprep.subr.bf16.mxu1 %v5928_v8 }
 0x51e   :  { %v4476_v5 = vpop.eup %4475  ;;  %2289 = vmatpush1.bf16.msra.mxu0 %v5931_v12  ;;  %2330 = vmatpush1.bf16.msra.mxu1 %v5934_v13 }
 0x51f   :  { %v2196_v40 = vmul.f32 %v4476_v5, %v4472_v50  ;;  %2290 = vmatprep.subr.bf16.mxu0 %v5937_v37  ;;  %2331 = vmatprep.subr.bf16.mxu1 %v5940_v38  ;;  %v4478_v33 = vpop.eup %4477  ;;  %v7434_v50 = vld [vmem:[#allocation40_spill] sm:$0xff]  ;;  %v7436_v5 = vld [vmem:[#allocation42_spill] sm:$0xff] }
 0x520   :  { %v2195_v58 = vmul.f32 %v4478_v33, %v5950_v45  ;;  %v7438_v33 = vld [vmem:[#allocation44_spill] sm:$0xff] }
 0x521   :  { %v4480_v45 = vpop.eup %4479 }
 0x522   :  { %2291 = vmatpush1.bf16.msra.mxu0 %v5944_v42  ;;  %2332 = vmatpush1.bf16.msra.mxu1 %v5947_v43  ;;  %v6168_v47 = vadd.f32 %v2196_v40, %v2195_v58  ;;  %v7437_v40 = vld [vmem:[#allocation43_spill] sm:$0xff]  ;;  %v7440_v58 = vld [vmem:[#allocation46_spill] sm:$0xff] }
 0x523   :  { %2292 = vmatprep.subr.bf16.mxu0 %v5952_v48  ;;  %2333 = vmatprep.subr.bf16.mxu1 %v5955_v49 }
 0x524   :  { %4481 = vtanh.f32 %v6168_v47 }
 0x526   :  { %2293 = vmatpush1.bf16.msra.mxu0 %v5959_v27  ;;  %2334 = vmatpush1.bf16.msra.mxu1 %v5962_v51 }
 0x527   :  { %2294 = vmatprep.subr.bf16.mxu0 %v5965_v52  ;;  %2335 = vmatprep.subr.bf16.mxu1 %v5968_v25 }
 0x52a   :  { %2295 = vmatpush1.bf16.msra.mxu0 %v5971_v59  ;;  %2336 = vmatpush1.bf16.msra.mxu1 %v5974_v60 }
 0x52b   :  { %2296 = vmatprep.subr.bf16.mxu0 %v5977_v63  ;;  %2337 = vmatprep.subr.bf16.mxu1 %v5980_v1 }
 0x52e   :  { %2297 = vmatpush1.bf16.msra.mxu0 %v5983_v3  ;;  %2338 = vmatpush1.bf16.msra.mxu1 %v5986_v4  ;;  %v4482_v55 = vpop.eup %4481 }
 0x52f   :  { %2298 = vmatprep.subr.bf16.mxu0 %v5989_v9  ;;  %2339 = vmatprep.subr.bf16.mxu1 %v5992_v10  ;;  %v2199_v53 = vmul.f32 %v4482_v55, %v4480_v45  ;;  %v7441_v45 = vld [vmem:[#allocation77_spill] sm:$0xff]  ;;  %v7442_v55 = vld [vmem:[#allocation78_spill] sm:$0xff] }
 0x531   :  { %v2200_v57 = vpack.c.bf16 %v2199_v53, %v2199_v53  ;;  %v7443_v53 = vld [vmem:[#allocation79_spill] sm:$0xff] }
 0x532   :  { %2299 = vmatpush1.bf16.msra.mxu0 %v5995_v36  ;;  %2340 = vmatpush1.bf16.msra.mxu1 %v5998_v39 }
 0x533   :  { %2398 = vmatprep.subr.bf16.mxu0 %v5755_v18  ;;  %2439 = vmatprep.subr.bf16.mxu1 %v5758_v28  ;;  %v7420_v18 = vld [vmem:[#allocation26_spill] sm:$0xff]  ;;  %v7421_v28 = vld [vmem:[#allocation27_spill] sm:$0xff] }
 0x535   :  { %2317 = vmatmul.mubr.bf16.vlgmr.msra.gmra.mrb[60].mxu0 %v2200_v57  ;;  %2358 = vmatmul.mubr.bf16.vlgmr.msra.gmra.mrb[60].mxu1 %v2200_v57 }
 0x536   :  { %2399 = vmatpush1.bf16.msra.mxu0 %v5763_v54  ;;  %2440 = vmatpush1.bf16.msra.mxu1 %v5766_v26  ;;  %v7423_v54 = vld [vmem:[#allocation29_spill] sm:$0xff]  ;;  %v7424_v26 = vld [vmem:[#allocation30_spill] sm:$0xff] }
 0x537   :  { %2400 = vmatprep.subr.bf16.mxu0 %v5769_v32  ;;  %2441 = vmatprep.subr.bf16.mxu1 %v7417_v56  ;;  %v7425_v32 = vld [vmem:[#allocation31_spill] sm:$0xff]  ;;  %v7444_v56 = vld [vmem:[#allocation80_spill] sm:$0xff] }
 0x538   :  { %2430 = vmatprep.mubr.bf16.mxu0 %v7211_v35  ;;  %2471 = vmatprep.mubr.bf16.mxu1 %v7211_v35 }
 0x53a   :  { %2401 = vmatpush1.bf16.msra.mxu0 %v7418_v20  ;;  %2442 = vmatpush1.bf16.msra.mxu1 %v7419_v44  ;;  %v7445_v20 = vld [vmem:[#allocation81_spill] sm:$0xff]  ;;  %v7446_v44 = vld [vmem:[#allocation47_spill] sm:$0xff] }
 0x53b   :  { %2402 = vmatprep.subr.bf16.mxu0 %v7420_v18  ;;  %2443 = vmatprep.subr.bf16.mxu1 %v7421_v28  ;;  %v7447_v18 = vld [vmem:[#allocation48_spill] sm:$0xff]  ;;  %v7448_v28 = vld [vmem:[#allocation49_spill] sm:$0xff] }
 0x53e   :  { %2403 = vmatpush1.bf16.msra.mxu0 %v7422_v46  ;;  %2444 = vmatpush1.bf16.msra.mxu1 %v7423_v54  ;;  %v7449_v46 = vld [vmem:[#allocation50_spill] sm:$0xff]  ;;  %v7450_v54 = vld [vmem:[#allocation51_spill] sm:$0xff] }
 0x53f   :  { %2404 = vmatprep.subr.bf16.mxu0 %v7424_v26  ;;  %2445 = vmatprep.subr.bf16.mxu1 %v7425_v32  ;;  %v7451_v26 = vld [vmem:[#allocation52_spill] sm:$0xff]  ;;  %v7452_v32 = vld [vmem:[#allocation53_spill] sm:$0xff] }
 0x542   :  { %2405 = vmatpush1.bf16.msra.mxu0 %v7426_v15  ;;  %2446 = vmatpush1.bf16.msra.mxu1 %v7427_v41  ;;  %v7453_v15 = vld [vmem:[#allocation54_spill] sm:$0xff]  ;;  %v7455_v41 = vld [vmem:[#allocation56_spill] sm:$0xff] }
 0x543   :  { %2406 = vmatprep.subr.bf16.mxu0 %v7428_v2  ;;  %2447 = vmatprep.subr.bf16.mxu1 %v7429_v17  ;;  %v7456_v2 = vld [vmem:[#allocation57_spill] sm:$0xff]  ;;  %v7457_v17 = vld [vmem:[#allocation58_spill] sm:$0xff] }
 0x546   :  { %2407 = vmatpush1.bf16.msra.mxu0 %v7430_v11  ;;  %2448 = vmatpush1.bf16.msra.mxu1 %v7431_v31  ;;  %v7458_v11 = vld [vmem:[#allocation59_spill] sm:$0xff]  ;;  %v7459_v31 = vld [vmem:[#allocation60_spill] sm:$0xff] }
 0x547   :  { %2408 = vmatprep.subr.bf16.mxu0 %v7432_v34  ;;  %2449 = vmatprep.subr.bf16.mxu1 %v7433_v30  ;;  %v7460_v34 = vld [vmem:[#allocation61_spill] sm:$0xff]  ;;  %v7461_v30 = vld [vmem:[#allocation62_spill] sm:$0xff] }
 0x54a   :  { %2409 = vmatpush1.bf16.msra.mxu0 %v7434_v50  ;;  %2450 = vmatpush1.bf16.msra.mxu1 %v7435_v19  ;;  %v7462_v50 = vld [vmem:[#allocation63_spill] sm:$0xff]  ;;  %v7463_v19 = vld [vmem:[#allocation64_spill] sm:$0xff] }
 0x54b   :  { %2410 = vmatprep.subr.bf16.mxu0 %v7436_v5  ;;  %2451 = vmatprep.subr.bf16.mxu1 %v7437_v40  ;;  %v7464_v5 = vld [vmem:[#allocation65_spill] sm:$0xff]  ;;  %v7465_v40 = vld [vmem:[#allocation66_spill] sm:$0xff] }
 0x54e   :  { %2411 = vmatpush1.bf16.msra.mxu0 %v7438_v33  ;;  %2452 = vmatpush1.bf16.msra.mxu1 %v7439_v24  ;;  %v7466_v33 = vld [vmem:[#allocation67_spill] sm:$0xff]  ;;  %v7467_v24 = vld [vmem:[#allocation68_spill] sm:$0xff] }
 0x54f   :  { %2412 = vmatprep.subr.bf16.mxu0 %v7440_v58  ;;  %2453 = vmatprep.subr.bf16.mxu1 %v7441_v45  ;;  %v7468_v58 = vld [vmem:[#allocation69_spill] sm:$0xff]  ;;  %v7469_v45 = vld [vmem:[#allocation70_spill] sm:$0xff] }
 0x552   :  { %2413 = vmatpush1.bf16.msra.mxu0 %v7442_v55  ;;  %2454 = vmatpush1.bf16.msra.mxu1 %v7443_v53  ;;  %v7470_v55 = vld [vmem:[#allocation71_spill] sm:$0xff]  ;;  %v7471_v53 = vld [vmem:[#allocation72_spill] sm:$0xff] }
 0x553   :  { %2510 = vmatprep.subr.bf16.mxu0 %v7444_v56  ;;  %2551 = vmatprep.subr.bf16.mxu1 %v7445_v20 }
 0x555   :  { %2431 = vmatmul.mubr.bf16.vlgmr.msra.gmra.mrb[64].mxu0 %v2200_v57  ;;  %2472 = vmatmul.mubr.bf16.vlgmr.msra.gmra.mrb[64].mxu1 %v2200_v57  ;;  %v7454_v57 = vld [vmem:[#allocation55_spill] sm:$0xff] }
 0x556   :  { %2511 = vmatpush1.bf16.msra.mxu0 %v7446_v44  ;;  %2552 = vmatpush1.bf16.msra.mxu1 %v7447_v18 }
 0x557   :  { %2512 = vmatprep.subr.bf16.mxu0 %v7448_v28  ;;  %2553 = vmatprep.subr.bf16.mxu1 %v7449_v46 }
 0x558   :  { %2542 = vmatprep.mubr.bf16.mxu0 %v7211_v35  ;;  %2583 = vmatprep.mubr.bf16.mxu1 %v7211_v35 }
 0x55a   :  { %2513 = vmatpush1.bf16.msra.mxu0 %v7450_v54  ;;  %2554 = vmatpush1.bf16.msra.mxu1 %v7451_v26 }
 0x55b   :  { %2514 = vmatprep.subr.bf16.mxu0 %v7452_v32  ;;  %2555 = vmatprep.subr.bf16.mxu1 %v7453_v15 }
 0x55e   :  { %2515 = vmatpush1.bf16.msra.mxu0 %v7454_v57  ;;  %2556 = vmatpush1.bf16.msra.mxu1 %v7455_v41 }
 0x55f   :  { %2516 = vmatprep.subr.bf16.mxu0 %v7456_v2  ;;  %2557 = vmatprep.subr.bf16.mxu1 %v7457_v17 }
 0x562   :  { %2517 = vmatpush1.bf16.msra.mxu0 %v7458_v11  ;;  %2558 = vmatpush1.bf16.msra.mxu1 %v7459_v31 }
 0x563   :  { %2518 = vmatprep.subr.bf16.mxu0 %v7460_v34  ;;  %2559 = vmatprep.subr.bf16.mxu1 %v7461_v30  ;;  %v7472_v30 = vld [vmem:[#allocation73_spill] sm:$0xff] }
 0x566   :  { %2519 = vmatpush1.bf16.msra.mxu0 %v7462_v50  ;;  %2560 = vmatpush1.bf16.msra.mxu1 %v7463_v19  ;;  %v7473_v50 = vld [vmem:[#allocation74_spill] sm:$0xff]  ;;  %v7474_v19 = vld [vmem:[#allocation75_spill] sm:$0xff] }
 0x567   :  { %2520 = vmatprep.subr.bf16.mxu0 %v7464_v5  ;;  %2561 = vmatprep.subr.bf16.mxu1 %v7465_v40  ;;  %v7475_v5 = vld [vmem:[#allocation76_spill] sm:$0xff]  ;;  %v7476_v40 = vld [vmem:[#allocation82_spill] sm:$0xff] }
 0x56a   :  { %2521 = vmatpush1.bf16.msra.mxu0 %v7466_v33  ;;  %2562 = vmatpush1.bf16.msra.mxu1 %v7467_v24  ;;  %v7477_v33 = vld [vmem:[#allocation83_spill] sm:$0xff] }
 0x56b   :  { %2522 = vmatprep.subr.bf16.mxu0 %v7468_v58  ;;  %2563 = vmatprep.subr.bf16.mxu1 %v7469_v45 }
 0x56e   :  { %2523 = vmatpush1.bf16.msra.mxu0 %v7470_v55  ;;  %2564 = vmatpush1.bf16.msra.mxu1 %v7471_v53 }
 0x56f   :  { %2524 = vmatprep.subr.bf16.mxu0 %v7472_v30  ;;  %2565 = vmatprep.subr.bf16.mxu1 %v7473_v50 }
 0x572   :  { %2525 = vmatpush1.bf16.msra.mxu0 %v7474_v19  ;;  %2566 = vmatpush1.bf16.msra.mxu1 %v7475_v5 }
 0x573   :  { %2592 = vmatprep.subr.bf16.mxu0 %v7476_v40  ;;  %2633 = vmatprep.subr.bf16.mxu1 %v7477_v33 }
 0x5e8   :  { %v2236_v24 = vpop.f32.mrb[56].mxu0  ;;  %v2277_v58 = vpop.f32.mrb[56].mxu1 }
 0x5e9   :  { %v2238_v34 = vpop.f32.mrb[57].mxu0  ;;  %v2279_v45 = vpop.f32.mrb[57].mxu1 }
 0x5ea   :  { %v2240_v31 = vpop.f32.mrb[58].mxu0  ;;  %v2281_v55 = vpop.f32.mrb[58].mxu1 }
 0x5eb   :  { %v2241_v11 = vpop.f32.mrb[59].mxu0  ;;  %v2282_v53 = vpop.f32.mrb[59].mxu1 }
 0x5ec   :  { %v7480_v53 = vld [vmem:[#allocation91_spill] sm:$0xff] }
 0x608   :  { %v2318_v17 = vpop.f32.mrb[60].mxu0  ;;  %v2359_v30 = vpop.f32.mrb[60].mxu1 }
 0x609   :  { %v2319_v2 = vadd.f32 %v2318_v17, %v2236_v24  ;;  %v2360_v50 = vadd.f32 %v2359_v30, %v2277_v58  ;;  %v2320_v41 = vpop.f32.mrb[61].mxu0  ;;  %v2361_v19 = vpop.f32.mrb[61].mxu1  ;;  %v7478_v17 = vld [vmem:[#allocation22_spill] sm:$0xff] }
 0x60a   :  { %v2321_v57 = vadd.f32 %v2320_v41, %v2238_v34  ;;  %v2362_v5 = vadd.f32 %v2361_v19, %v2279_v45  ;;  %v2322_v15 = vpop.f32.mrb[62].mxu0  ;;  %v2363_v40 = vpop.f32.mrb[62].mxu1 }
 0x60b   :  { %v2366_v33 = vadd.f32 %v2319_v2, %v5692_v62  ;;  %v2323_v32 = vpop.f32.mrb[63].mxu0  ;;  %v2364_v26 = vpop.f32.mrb[63].mxu1  ;;  %v2368_v11 = vadd.f32 %v2360_v50, %v5702_v61 }
 0x60c   :  { %v2367_v54 = vadd.f32 %v2321_v57, %v5696_v0  ;;  %v2369_v30 = vadd.f32 %v2362_v5, %v7478_v17  ;;  %v7479_v5 = vld [vmem:[#allocation90_spill] sm:$0xff] }
 0x60d   :  { %v4039_v31 = vmul.f32 -1.442695, %v2366_v33  ;;  %v4041_v24 = vmul.f32 -1.442695, %v2368_v11 }
 0x60e   :  { %v4040_v55 = vmul.f32 -1.442695, %v2367_v54 }
 0x60f   :  { %4483 = vpow2.f32 %v4039_v31 }
 0x610   :  { %4485 = vpow2.f32 %v4040_v55 }
 0x611   :  { %4487 = vtanh.f32 %v2369_v30  ;;  %v7481_v30 = vld [vmem:[#allocation92_spill] sm:$0xff] }
 0x612   :  { %4489 = vpow2.f32 %v4041_v24 }
 0x619   :  { %v4484_v58 = vpop.eup %4483 }
 0x61a   :  { %v2379_v41 = vadd.f32 1.0, %v4484_v58  ;;  %v4486_v15 = vpop.eup %4485  ;;  %v7482_v58 = vld [vmem:[#allocation93_spill] sm:$0xff] }
 0x61b   :  { %v2380_v2 = vadd.f32 1.0, %v4486_v15  ;;  %v4488_v26 = vpop.eup %4487 }
 0x61c   :  { %4491 = vrcp.f32 %v2379_v41  ;;  %v4490_v32 = vpop.eup %4489 }
 0x61d   :  { %4493 = vrcp.f32 %v2380_v2  ;;  %v2381_v19 = vadd.f32 1.0, %v4490_v32 }
 0x61f   :  { %4495 = vrcp.f32 %v2381_v19 }
 0x626   :  { %v4492_v57 = vpop.eup %4491 }
 0x627   :  { %v2390_v34 = vmul.f32 %v4492_v57, %v4488_v26  ;;  %v4494_v54 = vpop.eup %4493 }
 0x628   :  { %v2432_v40 = vpop.f32.mrb[64].mxu0  ;;  %v2473_v33 = vpop.f32.mrb[64].mxu1  ;;  %v2389_v50 = vmul.f32 %v4494_v54, %v6148_v14 }
 0x629   :  { %v2480_v45 = vadd.f32 %v2432_v40, %v7479_v5  ;;  %v2482_v31 = vadd.f32 %v2473_v33, %v7480_v53  ;;  %v2434_v55 = vpop.f32.mrb[65].mxu0  ;;  %v2475_v11 = vpop.f32.mrb[65].mxu1 }
 0x62a   :  { %v2481_v24 = vadd.f32 %v2434_v55, %v7481_v30  ;;  %v2483_v41 = vadd.f32 %v2475_v11, %v7482_v58  ;;  %v2436_v15 = vpop.f32.mrb[66].mxu0  ;;  %v2477_v2 = vpop.f32.mrb[66].mxu1  ;;  %v6266_v17 = vadd.f32 %v2390_v34, %v2389_v50  ;;  %v6380_v11 = vld [vmem:[#allocation8 + $0xa8] ss:$16 sps:$4 sm:$0xff]   ;;  %v6383_v30 = vld [vmem:[#allocation8 + $0xc4] ss:$16 sps:$4 sm:$0xff]  }
 0x62b   :  { %v4042_v26 = vmul.f32 -1.442695, %v2480_v45  ;;  %v2437_v32 = vpop.f32.mrb[67].mxu0  ;;  %v2478_v57 = vpop.f32.mrb[67].mxu1  ;;  %v4044_v54 = vmul.f32 -1.442695, %v2482_v31 }
 0x62c   :  { %v4043_v61 = vmul.f32 -1.442695, %v2481_v24  ;;  %4497 = vtanh.f32 %v6266_v17  ;;  %v4496_v14 = vpop.eup %4495  ;;  %v6374_v45 = vld [vmem:[#allocation8 + $0xac] ss:$16 sps:$4 sm:$0xff]   ;;  %v6377_v31 = vld [vmem:[#allocation8 + $0xa0] ss:$16 sps:$4 sm:$0xff]  }
 0x62d   :  { %4499 = vpow2.f32 %v4042_v26  ;;  %7490 = vst [vmem:[#allocation24_spill] sm:$0xff] %v6374_v45  ;;  %7491 = vst [vmem:[#allocation25_spill] sm:$0xff] %v6377_v31  ;;  %v6386_v24 = vld [vmem:[#allocation8 + $0xcc] ss:$16 sps:$4 sm:$0xff]   ;;  %v6389_v58 = vld [vmem:[#allocation8 + $0xc0] ss:$16 sps:$4 sm:$0xff]  }
 0x62e   :  { %4501 = vpow2.f32 %v4043_v61  ;;  %7492 = vst [vmem:[#allocation26_spill] sm:$0xff] %v6380_v11  ;;  %7493 = vst [vmem:[#allocation27_spill] sm:$0xff] %v6383_v30  ;;  %v6395_v15 = vld [vmem:[#allocation8 + $0xe4] ss:$16 sps:$4 sm:$0xff]   ;;  %v6398_v2 = vld [vmem:[#allocation8 + $0xec] ss:$16 sps:$4 sm:$0xff]  }
 0x62f   :  { %4503 = vtanh.f32 %v2483_v41  ;;  %7494 = vst [vmem:[#allocation28_spill] sm:$0xff] %v6386_v24  ;;  %7495 = vst [vmem:[#allocation29_spill] sm:$0xff] %v6389_v58  ;;  %v6392_v41 = vld [vmem:[#allocation8 + $0xc8] ss:$16 sps:$4 sm:$0xff]   ;;  %v6401_v26 = vld [vmem:[#allocation8 + $0xe0] ss:$16 sps:$4 sm:$0xff]  }
 0x630   :  { %4505 = vpow2.f32 %v4044_v54  ;;  %7496 = vst [vmem:[#allocation30_spill] sm:$0xff] %v6392_v41  ;;  %7497 = vst [vmem:[#allocation31_spill] sm:$0xff] %v6395_v15  ;;  %v6404_v32 = vld [vmem:[#allocation8 + $0xe8] ss:$16 sps:$4 sm:$0xff]  }
 0x631   :  { %7498 = vst [vmem:[#allocation32_spill] sm:$0xff] %v6398_v2  ;;  %7499 = vst [vmem:[#allocation33_spill] sm:$0xff] %v6401_v26  ;;  %v7501_v57 = vld [vmem:[#allocation51_spill] sm:$0xff] }
 0x632   :  { %7500 = vst [vmem:[#allocation34_spill] sm:$0xff] %v6404_v32  ;;  %v7505_v54 = vld [vmem:[#allocation55_spill] sm:$0xff] }
 0x636   :  { %v4498_v40 = vpop.eup %4497 }
 0x637   :  { %v4500_v33 = vpop.eup %4499  ;;  %v2393_v5 = vmul.f32 %v4498_v40, %v4496_v14  ;;  %v7504_v14 = vld [vmem:[#allocation54_spill] sm:$0xff]  ;;  %v7510_v40 = vld [vmem:[#allocation60_spill] sm:$0xff] }
 0x638   :  { %v2493_v53 = vadd.f32 1.0, %v4500_v33  ;;  %v4502_v55 = vpop.eup %4501  ;;  %v7511_v33 = vld [vmem:[#allocation61_spill] sm:$0xff] }
 0x639   :  { %v2509_v34 = vpack.c.bf16 %v2393_v5, %v2393_v5  ;;  %v2494_v50 = vadd.f32 1.0, %v4502_v55  ;;  %v4504_v61 = vpop.eup %4503  ;;  %v7512_v5 = vld [vmem:[#allocation62_spill] sm:$0xff]  ;;  %v7514_v55 = vld [vmem:[#allocation64_spill] sm:$0xff] }
 0x63a   :  { %4507 = vrcp.f32 %v2493_v53  ;;  %v7513_v53 = vld [vmem:[#allocation63_spill] sm:$0xff] }
 0x63b   :  { %2543 = vmatmul.mubr.bf16.vlgmr.msra.gmra.mrb[68].mxu0 %v2509_v34  ;;  %2584 = vmatmul.mubr.bf16.vlgmr.msra.gmra.mrb[68].mxu1 %v2509_v34  ;;  %4509 = vrcp.f32 %v2494_v50  ;;  %v7515_v34 = vld [vmem:[#allocation65_spill] sm:$0xff]  ;;  %v7516_v50 = vld [vmem:[#allocation66_spill] sm:$0xff] }
 0x63c   :  { %2593 = vmatpush1.bf16.msra.mxu0 %v5905_v21  ;;  %2634 = vmatpush1.bf16.msra.mxu1 %v5908_v29  ;;  %v4506_v21 = vpop.eup %4505 }
 0x63d   :  { %2594 = vmatprep.subr.bf16.mxu0 %v5911_v23  ;;  %2635 = vmatprep.subr.bf16.mxu1 %v5914_v22  ;;  %v2495_v22 = vadd.f32 1.0, %v4506_v21  ;;  %v7518_v21 = vld [vmem:[#allocation68_spill] sm:$0xff] }
 0x63e   :  { %2624 = vmatprep.mubr.bf16.mxu0 %v7211_v35  ;;  %2665 = vmatprep.mubr.bf16.mxu1 %v7211_v35 }
 0x63f   :  { %4511 = vrcp.f32 %v2495_v22  ;;  %v7522_v22 = vld [vmem:[#allocation72_spill] sm:$0xff] }
 0x640   :  { %2595 = vmatpush1.bf16.msra.mxu0 %v5919_v16  ;;  %2636 = vmatpush1.bf16.msra.mxu1 %v5922_v6 }
 0x641   :  { %2596 = vmatprep.subr.bf16.mxu0 %v5925_v7  ;;  %2637 = vmatprep.subr.bf16.mxu1 %v5928_v8 }
 0x644   :  { %v4508_v19 = vpop.eup %4507  ;;  %2597 = vmatpush1.bf16.msra.mxu0 %v5931_v12  ;;  %2638 = vmatpush1.bf16.msra.mxu1 %v5934_v13 }
 0x645   :  { %v2504_v29 = vmul.f32 %v4508_v19, %v4504_v61  ;;  %2598 = vmatprep.subr.bf16.mxu0 %v5937_v37  ;;  %2639 = vmatprep.subr.bf16.mxu1 %v5940_v38  ;;  %v4510_v23 = vpop.eup %4509  ;;  %v6307_v37 = vld [vmem:[#allocation8 + $0x4] ss:$16 sps:$4 sm:$0xff]   ;;  %v6310_v38 = vld [vmem:[#allocation8 + $0xc] ss:$16 sps:$4 sm:$0xff]  }
 0x646   :  { %v2503_v16 = vmul.f32 %v4510_v23, %v6168_v47  ;;  %v6371_v47 = vld [vmem:[#allocation8 + $0xa4] ss:$16 sps:$4 sm:$0xff]   ;;  %v7517_v61 = vld [vmem:[#allocation67_spill] sm:$0xff]  ;;  %v7519_v19 = vld [vmem:[#allocation69_spill] sm:$0xff] }
 0x647   :  { %7489 = vst [vmem:[#allocation23_spill] sm:$0xff] %v6371_v47  ;;  %v7521_v23 = vld [vmem:[#allocation71_spill] sm:$0xff] }
 0x648   :  { %2599 = vmatpush1.bf16.msra.mxu0 %v5944_v42  ;;  %2640 = vmatpush1.bf16.msra.mxu1 %v5947_v43  ;;  %v6286_v6 = vadd.f32 %v2504_v29, %v2503_v16  ;;  %v6315_v42 = vld [vmem:[#allocation8] ss:$16 sps:$4 sm:$0xff]   ;;  %v6318_v43 = vld [vmem:[#allocation8 + $0x8] ss:$16 sps:$4 sm:$0xff]  }
 0x649   :  { %2600 = vmatprep.subr.bf16.mxu0 %v5952_v48  ;;  %2641 = vmatprep.subr.bf16.mxu1 %v5955_v49  ;;  %v4512_v7 = vpop.eup %4511  ;;  %v6321_v48 = vld [vmem:[#allocation8 + $0x24] ss:$16 sps:$4 sm:$0xff]   ;;  %v6324_v49 = vld [vmem:[#allocation8 + $0x2c] ss:$16 sps:$4 sm:$0xff]  }
 0x64a   :  { %4513 = vtanh.f32 %v6286_v6  ;;  %v7520_v29 = vld [vmem:[#allocation70_spill] sm:$0xff]  ;;  %v7523_v16 = vld [vmem:[#allocation73_spill] sm:$0xff] }
 0x64c   :  { %2601 = vmatpush1.bf16.msra.mxu0 %v5959_v27  ;;  %2642 = vmatpush1.bf16.msra.mxu1 %v5962_v51  ;;  %v6329_v27 = vld [vmem:[#allocation8 + $0x20] ss:$16 sps:$4 sm:$0xff]   ;;  %v6332_v51 = vld [vmem:[#allocation8 + $0x28] ss:$16 sps:$4 sm:$0xff]  }
 0x64d   :  { %2602 = vmatprep.subr.bf16.mxu0 %v5965_v52  ;;  %2643 = vmatprep.subr.bf16.mxu1 %v5968_v25  ;;  %v6335_v52 = vld [vmem:[#allocation8 + $0x44] ss:$16 sps:$4 sm:$0xff]   ;;  %v6338_v25 = vld [vmem:[#allocation8 + $0x4c] ss:$16 sps:$4 sm:$0xff]  }
 0x650   :  { %2603 = vmatpush1.bf16.msra.mxu0 %v5971_v59  ;;  %2644 = vmatpush1.bf16.msra.mxu1 %v5974_v60  ;;  %v6341_v59 = vld [vmem:[#allocation8 + $0x40] ss:$16 sps:$4 sm:$0xff]   ;;  %v6344_v60 = vld [vmem:[#allocation8 + $0x48] ss:$16 sps:$4 sm:$0xff]  }
 0x651   :  { %2604 = vmatprep.subr.bf16.mxu0 %v5977_v63  ;;  %2645 = vmatprep.subr.bf16.mxu1 %v5980_v1  ;;  %v6347_v63 = vld [vmem:[#allocation8 + $0x64] ss:$16 sps:$4 sm:$0xff]   ;;  %v6350_v1 = vld [vmem:[#allocation8 + $0x6c] ss:$16 sps:$4 sm:$0xff]  }
 0x654   :  { %2605 = vmatpush1.bf16.msra.mxu0 %v5983_v3  ;;  %2646 = vmatpush1.bf16.msra.mxu1 %v5986_v4  ;;  %v4514_v8 = vpop.eup %4513  ;;  %v6353_v3 = vld [vmem:[#allocation8 + $0x60] ss:$16 sps:$4 sm:$0xff]   ;;  %v6356_v4 = vld [vmem:[#allocation8 + $0x68] ss:$16 sps:$4 sm:$0xff]  }
 0x655   :  { %2606 = vmatprep.subr.bf16.mxu0 %v5989_v9  ;;  %2647 = vmatprep.subr.bf16.mxu1 %v5992_v10  ;;  %v2507_v12 = vmul.f32 %v4514_v8, %v4512_v7  ;;  %7483 = vst [vmem:[#allocation84_spill] sm:$0xff] %v6353_v3  ;;  %7484 = vst [vmem:[#allocation85_spill] sm:$0xff] %v6356_v4  ;;  %v6359_v9 = vld [vmem:[#allocation8 + $0x84] ss:$16 sps:$4 sm:$0xff]   ;;  %v6362_v10 = vld [vmem:[#allocation8 + $0x8c] ss:$16 sps:$4 sm:$0xff]  }
 0x656   :  { %7485 = vst [vmem:[#allocation86_spill] sm:$0xff] %v6359_v9  ;;  %7486 = vst [vmem:[#allocation87_spill] sm:$0xff] %v6362_v10  ;;  %v7524_v7 = vld [vmem:[#allocation74_spill] sm:$0xff]  ;;  %v7525_v8 = vld [vmem:[#allocation75_spill] sm:$0xff] }
 0x657   :  { %v6305_v13 = vpack.c.bf16 %v2507_v12, %v2507_v12  ;;  %v7526_v12 = vld [vmem:[#allocation76_spill] sm:$0xff] }
 0x658   :  { %2607 = vmatpush1.bf16.msra.mxu0 %v5995_v36  ;;  %2648 = vmatpush1.bf16.msra.mxu1 %v5998_v39  ;;  %v6365_v36 = vld [vmem:[#allocation8 + $0x80] ss:$16 sps:$4 sm:$0xff]   ;;  %v6368_v39 = vld [vmem:[#allocation8 + $0x88] ss:$16 sps:$4 sm:$0xff]  }
 0x659   :  { %2706 = vmatprep.subr.bf16.mxu0 %v6307_v37  ;;  %2747 = vmatprep.subr.bf16.mxu1 %v6310_v38  ;;  %7487 = vst [vmem:[#allocation88_spill] sm:$0xff] %v6365_v36  ;;  %7488 = vst [vmem:[#allocation89_spill] sm:$0xff] %v6368_v39 }
 0x65b   :  { %2625 = vmatmul.mubr.bf16.vlgmr.msra.gmra.mrb[72].mxu0 %v6305_v13  ;;  %2666 = vmatmul.mubr.bf16.vlgmr.msra.gmra.mrb[72].mxu1 %v6305_v13 }
 0x65c   :  { %2707 = vmatpush1.bf16.msra.mxu0 %v6315_v42  ;;  %2748 = vmatpush1.bf16.msra.mxu1 %v6318_v43 }
 0x65d   :  { %2708 = vmatprep.subr.bf16.mxu0 %v6321_v48  ;;  %2749 = vmatprep.subr.bf16.mxu1 %v6324_v49 }
 0x65e   :  { %2738 = vmatprep.mubr.bf16.mxu0 %v7211_v35  ;;  %2779 = vmatprep.mubr.bf16.mxu1 %v7211_v35 }
 0x660   :  { %2709 = vmatpush1.bf16.msra.mxu0 %v6329_v27  ;;  %2750 = vmatpush1.bf16.msra.mxu1 %v6332_v51 }
 0x661   :  { %2710 = vmatprep.subr.bf16.mxu0 %v6335_v52  ;;  %2751 = vmatprep.subr.bf16.mxu1 %v6338_v25 }
 0x664   :  { %2711 = vmatpush1.bf16.msra.mxu0 %v6341_v59  ;;  %2752 = vmatpush1.bf16.msra.mxu1 %v6344_v60 }
 0x665   :  { %2712 = vmatprep.subr.bf16.mxu0 %v6347_v63  ;;  %2753 = vmatprep.subr.bf16.mxu1 %v6350_v1 }
 0x668   :  { %2713 = vmatpush1.bf16.msra.mxu0 %v6353_v3  ;;  %2754 = vmatpush1.bf16.msra.mxu1 %v6356_v4 }
 0x669   :  { %2714 = vmatprep.subr.bf16.mxu0 %v6359_v9  ;;  %2755 = vmatprep.subr.bf16.mxu1 %v6362_v10 }
 0x66c   :  { %2715 = vmatpush1.bf16.msra.mxu0 %v6365_v36  ;;  %2756 = vmatpush1.bf16.msra.mxu1 %v6368_v39 }
 0x66d   :  { %2716 = vmatprep.subr.bf16.mxu0 %v6371_v47  ;;  %2757 = vmatprep.subr.bf16.mxu1 %v6374_v45 }
 0x670   :  { %2717 = vmatpush1.bf16.msra.mxu0 %v6377_v31  ;;  %2758 = vmatpush1.bf16.msra.mxu1 %v6380_v11 }
 0x671   :  { %2718 = vmatprep.subr.bf16.mxu0 %v6383_v30  ;;  %2759 = vmatprep.subr.bf16.mxu1 %v6386_v24 }
 0x674   :  { %2719 = vmatpush1.bf16.msra.mxu0 %v6389_v58  ;;  %2760 = vmatpush1.bf16.msra.mxu1 %v6392_v41 }
 0x675   :  { %2720 = vmatprep.subr.bf16.mxu0 %v6395_v15  ;;  %2761 = vmatprep.subr.bf16.mxu1 %v6398_v2 }
 0x678   :  { %2721 = vmatpush1.bf16.msra.mxu0 %v6401_v26  ;;  %2762 = vmatpush1.bf16.msra.mxu1 %v6404_v32 }
 0x679   :  { %2818 = vmatprep.subr.bf16.mxu0 %v7444_v56  ;;  %2859 = vmatprep.subr.bf16.mxu1 %v7445_v20  ;;  %v7502_v56 = vld [vmem:[#allocation52_spill] sm:$0xff]  ;;  %v7503_v20 = vld [vmem:[#allocation53_spill] sm:$0xff] }
 0x67b   :  { %2739 = vmatmul.mubr.bf16.vlgmr.msra.gmra.mrb[76].mxu0 %v6305_v13  ;;  %2780 = vmatmul.mubr.bf16.vlgmr.msra.gmra.mrb[76].mxu1 %v6305_v13  ;;  %v7527_v13 = vld [vmem:[#allocation82_spill] sm:$0xff] }
 0x67c   :  { %2819 = vmatpush1.bf16.msra.mxu0 %v7446_v44  ;;  %2860 = vmatpush1.bf16.msra.mxu1 %v7447_v18  ;;  %v7506_v44 = vld [vmem:[#allocation56_spill] sm:$0xff]  ;;  %v7507_v18 = vld [vmem:[#allocation57_spill] sm:$0xff] }
 0x67d   :  { %2820 = vmatprep.subr.bf16.mxu0 %v7448_v28  ;;  %2861 = vmatprep.subr.bf16.mxu1 %v7449_v46  ;;  %v7508_v28 = vld [vmem:[#allocation58_spill] sm:$0xff]  ;;  %v7509_v46 = vld [vmem:[#allocation59_spill] sm:$0xff] }
 0x67e   :  { %2850 = vmatprep.mubr.bf16.mxu0 %v7211_v35  ;;  %2891 = vmatprep.mubr.bf16.mxu1 %v7211_v35 }
 0x680   :  { %2821 = vmatpush1.bf16.msra.mxu0 %v7501_v57  ;;  %2862 = vmatpush1.bf16.msra.mxu1 %v7502_v56  ;;  %v7528_v57 = vld [vmem:[#allocation83_spill] sm:$0xff] }
 0x681   :  { %2822 = vmatprep.subr.bf16.mxu0 %v7503_v20  ;;  %2863 = vmatprep.subr.bf16.mxu1 %v7504_v14 }
 0x684   :  { %2823 = vmatpush1.bf16.msra.mxu0 %v7505_v54  ;;  %2864 = vmatpush1.bf16.msra.mxu1 %v7506_v44 }
 0x685   :  { %2824 = vmatprep.subr.bf16.mxu0 %v7507_v18  ;;  %2865 = vmatprep.subr.bf16.mxu1 %v7508_v28 }
 0x688   :  { %2825 = vmatpush1.bf16.msra.mxu0 %v7509_v46  ;;  %2866 = vmatpush1.bf16.msra.mxu1 %v7510_v40 }
 0x689   :  { %2826 = vmatprep.subr.bf16.mxu0 %v7511_v33  ;;  %2867 = vmatprep.subr.bf16.mxu1 %v7512_v5 }
 0x68c   :  { %2827 = vmatpush1.bf16.msra.mxu0 %v7513_v53  ;;  %2868 = vmatpush1.bf16.msra.mxu1 %v7514_v55 }
 0x68d   :  { %2828 = vmatprep.subr.bf16.mxu0 %v7515_v34  ;;  %2869 = vmatprep.subr.bf16.mxu1 %v7516_v50 }
 0x690   :  { %2829 = vmatpush1.bf16.msra.mxu0 %v7517_v61  ;;  %2870 = vmatpush1.bf16.msra.mxu1 %v7518_v21 }
 0x691   :  { %2830 = vmatprep.subr.bf16.mxu0 %v7519_v19  ;;  %2871 = vmatprep.subr.bf16.mxu1 %v7520_v29 }
 0x694   :  { %2831 = vmatpush1.bf16.msra.mxu0 %v7521_v23  ;;  %2872 = vmatpush1.bf16.msra.mxu1 %v7522_v22 }
 0x695   :  { %2832 = vmatprep.subr.bf16.mxu0 %v7523_v16  ;;  %2873 = vmatprep.subr.bf16.mxu1 %v7524_v7 }
 0x698   :  { %2833 = vmatpush1.bf16.msra.mxu0 %v7525_v8  ;;  %2874 = vmatpush1.bf16.msra.mxu1 %v7526_v12  ;;  %v7529_v12 = vld [vmem:[#allocation21_spill] sm:$0xff] }
 0x699   :  { %2900 = vmatprep.subr.bf16.mxu0 %v7527_v13  ;;  %2941 = vmatprep.subr.bf16.mxu1 %v7528_v57  ;;  %v7530_v57 = vld [vmem:[#allocation22_spill] sm:$0xff] }
 0x70e   :  { %v2544_v56 = vpop.f32.mrb[68].mxu0  ;;  %v2585_v20 = vpop.f32.mrb[68].mxu1 }
 0x70f   :  { %v2546_v14 = vpop.f32.mrb[69].mxu0  ;;  %v2587_v54 = vpop.f32.mrb[69].mxu1 }
 0x710   :  { %v2548_v44 = vpop.f32.mrb[70].mxu0  ;;  %v2589_v18 = vpop.f32.mrb[70].mxu1 }
 0x711   :  { %v2549_v28 = vpop.f32.mrb[71].mxu0  ;;  %v2590_v46 = vpop.f32.mrb[71].mxu1 }
 0x72e   :  { %v2626_v40 = vpop.f32.mrb[72].mxu0  ;;  %v2667_v33 = vpop.f32.mrb[72].mxu1 }
 0x72f   :  { %v2627_v5 = vadd.f32 %v2626_v40, %v2544_v56  ;;  %v2668_v53 = vadd.f32 %v2667_v33, %v2585_v20  ;;  %v2628_v55 = vpop.f32.mrb[73].mxu0  ;;  %v2669_v34 = vpop.f32.mrb[73].mxu1 }
 0x730   :  { %v2629_v50 = vadd.f32 %v2628_v55, %v2546_v14  ;;  %v2670_v61 = vadd.f32 %v2669_v34, %v2587_v54  ;;  %v2630_v21 = vpop.f32.mrb[74].mxu0  ;;  %v2671_v19 = vpop.f32.mrb[74].mxu1 }
 0x731   :  { %v2674_v29 = vadd.f32 %v2627_v5, %v5692_v62  ;;  %v2631_v23 = vpop.f32.mrb[75].mxu0  ;;  %v2672_v22 = vpop.f32.mrb[75].mxu1  ;;  %v2676_v13 = vadd.f32 %v2668_v53, %v7529_v12  ;;  %v7532_v19 = vld [vmem:[#allocation95_spill] sm:$0xff] }
 0x732   :  { %v2675_v16 = vadd.f32 %v2629_v50, %v5696_v0  ;;  %v2677_v56 = vadd.f32 %v2670_v61, %v7530_v57  ;;  %v7531_v61 = vld [vmem:[#allocation94_spill] sm:$0xff] }
 0x733   :  { %v4045_v7 = vmul.f32 -1.442695, %v2674_v29  ;;  %v4047_v20 = vmul.f32 -1.442695, %v2676_v13 }
 0x734   :  { %v4046_v8 = vmul.f32 -1.442695, %v2675_v16  ;;  %v7533_v16 = vld [vmem:[#allocation96_spill] sm:$0xff] }
 0x735   :  { %4515 = vpow2.f32 %v4045_v7 }
 0x736   :  { %4517 = vpow2.f32 %v4046_v8  ;;  %v7534_v8 = vld [vmem:[#allocation97_spill] sm:$0xff] }
 0x737   :  { %4519 = vtanh.f32 %v2677_v56 }
 0x738   :  { %4521 = vpow2.f32 %v4047_v20 }
 0x73f   :  { %v4516_v44 = vpop.eup %4515 }
 0x740   :  { %v2687_v14 = vadd.f32 1.0, %v4516_v44  ;;  %v4518_v54 = vpop.eup %4517 }
 0x741   :  { %v2688_v18 = vadd.f32 1.0, %v4518_v54  ;;  %v4520_v28 = vpop.eup %4519 }
 0x742   :  { %4523 = vrcp.f32 %v2687_v14  ;;  %v4522_v46 = vpop.eup %4521 }
 0x743   :  { %4525 = vrcp.f32 %v2688_v18  ;;  %v2689_v55 = vadd.f32 1.0, %v4522_v46 }
 0x745   :  { %4527 = vrcp.f32 %v2689_v55  ;;  %v6457_v55 = vld [vmem:[#allocation9] ss:$16 sps:$4 sm:$0xff]  }
 0x74c   :  { %v4524_v40 = vpop.eup %4523 }
 0x74d   :  { %v2698_v33 = vmul.f32 %v4524_v40, %v4520_v28  ;;  %v4526_v5 = vpop.eup %4525 }
 0x74e   :  { %v2740_v34 = vpop.f32.mrb[76].mxu0  ;;  %v2781_v50 = vpop.f32.mrb[76].mxu1  ;;  %v2697_v53 = vmul.f32 %v4526_v5, %v6266_v17 }
 0x74f   :  { %v2788_v21 = vadd.f32 %v2740_v34, %v7531_v61  ;;  %v2790_v29 = vadd.f32 %v2781_v50, %v7532_v19  ;;  %v2742_v23 = vpop.f32.mrb[77].mxu0  ;;  %v2783_v22 = vpop.f32.mrb[77].mxu1  ;;  %v6463_v19 = vld [vmem:[#allocation9 + $0x24] ss:$16 sps:$4 sm:$0xff]  }
 0x750   :  { %v2789_v7 = vadd.f32 %v2742_v23, %v7533_v16  ;;  %v2791_v13 = vadd.f32 %v2783_v22, %v7534_v8  ;;  %v2744_v56 = vpop.f32.mrb[78].mxu0  ;;  %v2785_v20 = vpop.f32.mrb[78].mxu1  ;;  %v6454_v44 = vadd.f32 %v2698_v33, %v2697_v53  ;;  %v6471_v23 = vld [vmem:[#allocation9 + $0x20] ss:$16 sps:$4 sm:$0xff]   ;;  %v6474_v22 = vld [vmem:[#allocation9 + $0x28] ss:$16 sps:$4 sm:$0xff]  }
 0x751   :  { %v4048_v14 = vmul.f32 -1.442695, %v2788_v21  ;;  %v2745_v54 = vpop.f32.mrb[79].mxu0  ;;  %v2786_v18 = vpop.f32.mrb[79].mxu1  ;;  %v4050_v46 = vmul.f32 -1.442695, %v2790_v29 }
 0x752   :  { %v4049_v28 = vmul.f32 -1.442695, %v2789_v7  ;;  %4529 = vtanh.f32 %v6454_v44  ;;  %v4528_v17 = vpop.eup %4527  ;;  %v6460_v21 = vld [vmem:[#allocation9 + $0x8] ss:$16 sps:$4 sm:$0xff]   ;;  %v6466_v29 = vld [vmem:[#allocation9 + $0x2c] ss:$16 sps:$4 sm:$0xff]  }
 0x753   :  { %4531 = vpow2.f32 %v4048_v14  ;;  %v6477_v16 = vld [vmem:[#allocation9 + $0x44] ss:$16 sps:$4 sm:$0xff]   ;;  %v6480_v7 = vld [vmem:[#allocation9 + $0x4c] ss:$16 sps:$4 sm:$0xff]   ;;  %v6483_v20 = vld [vmem:[#allocation9 + $0x40] ss:$16 sps:$4 sm:$0xff]  }
 0x754   :  { %4533 = vpow2.f32 %v4049_v28  ;;  %v6486_v14 = vld [vmem:[#allocation9 + $0x48] ss:$16 sps:$4 sm:$0xff]   ;;  %v6489_v18 = vld [vmem:[#allocation9 + $0x64] ss:$16 sps:$4 sm:$0xff]   ;;  %v6492_v28 = vld [vmem:[#allocation9 + $0x6c] ss:$16 sps:$4 sm:$0xff]  }
 0x755   :  { %4535 = vtanh.f32 %v2791_v13 }
 0x756   :  { %4537 = vpow2.f32 %v4050_v46 }
 0x75c   :  { %v4530_v40 = vpop.eup %4529 }
 0x75d   :  { %v4532_v5 = vpop.eup %4531  ;;  %v2701_v34 = vmul.f32 %v4530_v40, %v4528_v17 }
 0x75e   :  { %v2801_v50 = vadd.f32 1.0, %v4532_v5  ;;  %v4534_v61 = vpop.eup %4533  ;;  %v6496_v5 = vld [vmem:[#allocation9 + $0x60] ss:$16 sps:$4 sm:$0xff]  }
 0x75f   :  { %v2817_v33 = vpack.c.bf16 %v2701_v34, %v2701_v34  ;;  %v2802_v53 = vadd.f32 1.0, %v4534_v61  ;;  %v4536_v8 = vpop.eup %4535  ;;  %v6499_v34 = vld [vmem:[#allocation9 + $0x68] ss:$16 sps:$4 sm:$0xff]   ;;  %v6504_v61 = vld [vmem:[#allocation9 + $0x84] ss:$16 sps:$4 sm:$0xff]  }
 0x760   :  { %4539 = vrcp.f32 %v2801_v50  ;;  %v4538_v13 = vpop.eup %4537 }
 0x761   :  { %2851 = vmatmul.mubr.bf16.vlgmr.msra.gmra.mrb[80].mxu0 %v2817_v33  ;;  %2892 = vmatmul.mubr.bf16.vlgmr.msra.gmra.mrb[80].mxu1 %v2817_v33  ;;  %4541 = vrcp.f32 %v2802_v53  ;;  %v2803_v46 = vadd.f32 1.0, %v4538_v13  ;;  %v6507_v33 = vld [vmem:[#allocation9 + $0x8c] ss:$16 sps:$4 sm:$0xff]   ;;  %v6514_v53 = vld [vmem:[#allocation9 + $0x88] ss:$16 sps:$4 sm:$0xff]  }
 0x762   :  { %2901 = vmatpush1.bf16.msra.mxu0 %v6457_v55  ;;  %2942 = vmatpush1.bf16.msra.mxu1 %v6460_v21  ;;  %7536 = vst [vmem:[#allocation36_spill] sm:$0xff] %v6514_v53  ;;  %v6520_v13 = vld [vmem:[#allocation9 + $0xac] ss:$16 sps:$4 sm:$0xff]  }
 0x763   :  { %2902 = vmatprep.subr.bf16.mxu0 %v6463_v19  ;;  %2943 = vmatprep.subr.bf16.mxu1 %v6466_v29  ;;  %4543 = vrcp.f32 %v2803_v46  ;;  %7538 = vst [vmem:[#allocation38_spill] sm:$0xff] %v6520_v13  ;;  %v6532_v46 = vld [vmem:[#allocation9 + $0xcc] ss:$16 sps:$4 sm:$0xff]  }
 0x764   :  { %2932 = vmatprep.mubr.bf16.mxu0 %v7211_v35  ;;  %2973 = vmatprep.mubr.bf16.mxu1 %v7211_v35  ;;  %7542 = vst [vmem:[#allocation42_spill] sm:$0xff] %v6532_v46 }
 0x766   :  { %2903 = vmatpush1.bf16.msra.mxu0 %v6471_v23  ;;  %2944 = vmatpush1.bf16.msra.mxu1 %v6474_v22 }
 0x767   :  { %2904 = vmatprep.subr.bf16.mxu0 %v6477_v16  ;;  %2945 = vmatprep.subr.bf16.mxu1 %v6480_v7 }
 0x76a   :  { %v4540_v56 = vpop.eup %4539  ;;  %2905 = vmatpush1.bf16.msra.mxu0 %v6483_v20  ;;  %2946 = vmatpush1.bf16.msra.mxu1 %v6486_v14 }
 0x76b   :  { %v2812_v54 = vmul.f32 %v4540_v56, %v4536_v8  ;;  %2906 = vmatprep.subr.bf16.mxu0 %v6489_v18  ;;  %2947 = vmatprep.subr.bf16.mxu1 %v6492_v28  ;;  %v4542_v17 = vpop.eup %4541  ;;  %v6517_v8 = vld [vmem:[#allocation9 + $0xa4] ss:$16 sps:$4 sm:$0xff]   ;;  %v6523_v56 = vld [vmem:[#allocation9 + $0xa0] ss:$16 sps:$4 sm:$0xff]  }
 0x76c   :  { %v2811_v40 = vmul.f32 %v4542_v17, %v6286_v6  ;;  %v6511_v6 = vld [vmem:[#allocation9 + $0x80] ss:$16 sps:$4 sm:$0xff]   ;;  %7537 = vst [vmem:[#allocation37_spill] sm:$0xff] %v6517_v8  ;;  %7539 = vst [vmem:[#allocation39_spill] sm:$0xff] %v6523_v56  ;;  %v6529_v17 = vld [vmem:[#allocation9 + $0xc4] ss:$16 sps:$4 sm:$0xff]  }
 0x76d   :  { %7535 = vst [vmem:[#allocation35_spill] sm:$0xff] %v6511_v6  ;;  %7541 = vst [vmem:[#allocation41_spill] sm:$0xff] %v6529_v17 }
 0x76e   :  { %2907 = vmatpush1.bf16.msra.mxu0 %v6496_v5  ;;  %2948 = vmatpush1.bf16.msra.mxu1 %v6499_v34  ;;  %v6502_v50 = vadd.f32 %v2812_v54, %v2811_v40  ;;  %v6526_v54 = vld [vmem:[#allocation9 + $0xa8] ss:$16 sps:$4 sm:$0xff]   ;;  %v4544_v40 = vpop.eup %4543 }
 0x76f   :  { %2908 = vmatprep.subr.bf16.mxu0 %v6504_v61  ;;  %2949 = vmatprep.subr.bf16.mxu1 %v6507_v33  ;;  %7540 = vst [vmem:[#allocation40_spill] sm:$0xff] %v6526_v54 }
 0x770   :  { %4545 = vtanh.f32 %v6502_v50 }
 0x772   :  { %2909 = vmatpush1.bf16.msra.mxu0 %v6511_v6  ;;  %2950 = vmatpush1.bf16.msra.mxu1 %v6514_v53  ;;  %v6541_v53 = vld [vmem:[#allocation9 + $0xe4] ss:$16 sps:$4 sm:$0xff]   ;;  %v6550_v6 = vld [vmem:[#allocation9 + $0xe8] ss:$16 sps:$4 sm:$0xff]  }
 0x773   :  { %2910 = vmatprep.subr.bf16.mxu0 %v6517_v8  ;;  %2951 = vmatprep.subr.bf16.mxu1 %v6520_v13  ;;  %v6535_v8 = vld [vmem:[#allocation9 + $0xc0] ss:$16 sps:$4 sm:$0xff]   ;;  %v6538_v13 = vld [vmem:[#allocation9 + $0xc8] ss:$16 sps:$4 sm:$0xff]  }
 0x774   :  { %7543 = vst [vmem:[#allocation43_spill] sm:$0xff] %v6535_v8 }
 0x776   :  { %2911 = vmatpush1.bf16.msra.mxu0 %v6523_v56  ;;  %2952 = vmatpush1.bf16.msra.mxu1 %v6526_v54  ;;  %v6544_v54 = vld [vmem:[#allocation9 + $0xec] ss:$16 sps:$4 sm:$0xff]  }
 0x777   :  { %2912 = vmatprep.subr.bf16.mxu0 %v6529_v17  ;;  %2953 = vmatprep.subr.bf16.mxu1 %v6532_v46  ;;  %v6547_v46 = vld [vmem:[#allocation9 + $0xe0] ss:$16 sps:$4 sm:$0xff]  }
 0x77a   :  { %2913 = vmatpush1.bf16.msra.mxu0 %v6535_v8  ;;  %2954 = vmatpush1.bf16.msra.mxu1 %v6538_v13  ;;  %v4546_v56 = vpop.eup %4545 }
 0x77b   :  { %2914 = vmatprep.subr.bf16.mxu0 %v6541_v53  ;;  %2955 = vmatprep.subr.bf16.mxu1 %v6544_v54  ;;  %v2815_v17 = vmul.f32 %v4546_v56, %v4544_v40  ;;  %v6587_v56 = vld [vmem:[#allocation11 + $0x4] ss:$16 sps:$4 sm:$0xff]   ;;  %v6593_v40 = vld [vmem:[#allocation11] ss:$16 sps:$4 sm:$0xff]  }
 0x77c   :  { %7544 = vst [vmem:[#allocation44_spill] sm:$0xff] %v6587_v56  ;;  %7546 = vst [vmem:[#allocation46_spill] sm:$0xff] %v6593_v40 }
 0x77d   :  { %v2816_v8 = vpack.c.bf16 %v2815_v17, %v2815_v17  ;;  %v6590_v17 = vld [vmem:[#allocation11 + $0xc] ss:$16 sps:$4 sm:$0xff]  }
 0x77e   :  { %2915 = vmatpush1.bf16.msra.mxu0 %v6547_v46  ;;  %2956 = vmatpush1.bf16.msra.mxu1 %v6550_v6  ;;  %7545 = vst [vmem:[#allocation45_spill] sm:$0xff] %v6590_v17 }
 0x77f   :  { %3014 = vmatprep.subr.bf16.mxu0 %v6307_v37  ;;  %3055 = vmatprep.subr.bf16.mxu1 %v6310_v38 }
 0x781   :  { %2933 = vmatmul.mubr.bf16.vlgmr.msra.gmra.mrb[84].mxu0 %v2816_v8  ;;  %2974 = vmatmul.mubr.bf16.vlgmr.msra.gmra.mrb[84].mxu1 %v2816_v8 }
 0x782   :  { %3015 = vmatpush1.bf16.msra.mxu0 %v6315_v42  ;;  %3056 = vmatpush1.bf16.msra.mxu1 %v6318_v43 }
 0x783   :  { %3016 = vmatprep.subr.bf16.mxu0 %v6321_v48  ;;  %3057 = vmatprep.subr.bf16.mxu1 %v6324_v49 }
 0x784   :  { %3046 = vmatprep.mubr.bf16.mxu0 %v7211_v35  ;;  %3087 = vmatprep.mubr.bf16.mxu1 %v7211_v35 }
 0x786   :  { %3017 = vmatpush1.bf16.msra.mxu0 %v6329_v27  ;;  %3058 = vmatpush1.bf16.msra.mxu1 %v6332_v51 }
 0x787   :  { %3018 = vmatprep.subr.bf16.mxu0 %v6335_v52  ;;  %3059 = vmatprep.subr.bf16.mxu1 %v6338_v25 }
 0x78a   :  { %3019 = vmatpush1.bf16.msra.mxu0 %v6341_v59  ;;  %3060 = vmatpush1.bf16.msra.mxu1 %v6344_v60 }
 0x78b   :  { %3020 = vmatprep.subr.bf16.mxu0 %v6347_v63  ;;  %3061 = vmatprep.subr.bf16.mxu1 %v6350_v1 }
 0x78e   :  { %3021 = vmatpush1.bf16.msra.mxu0 %v6353_v3  ;;  %3062 = vmatpush1.bf16.msra.mxu1 %v6356_v4 }
 0x78f   :  { %3022 = vmatprep.subr.bf16.mxu0 %v6359_v9  ;;  %3063 = vmatprep.subr.bf16.mxu1 %v6362_v10 }
 0x792   :  { %3023 = vmatpush1.bf16.msra.mxu0 %v6365_v36  ;;  %3064 = vmatpush1.bf16.msra.mxu1 %v6368_v39 }
 0x793   :  { %3024 = vmatprep.subr.bf16.mxu0 %v6371_v47  ;;  %3065 = vmatprep.subr.bf16.mxu1 %v6374_v45 }
 0x796   :  { %3025 = vmatpush1.bf16.msra.mxu0 %v6377_v31  ;;  %3066 = vmatpush1.bf16.msra.mxu1 %v6380_v11 }
 0x797   :  { %3026 = vmatprep.subr.bf16.mxu0 %v6383_v30  ;;  %3067 = vmatprep.subr.bf16.mxu1 %v6386_v24 }
 0x79a   :  { %3027 = vmatpush1.bf16.msra.mxu0 %v6389_v58  ;;  %3068 = vmatpush1.bf16.msra.mxu1 %v6392_v41 }
 0x79b   :  { %3028 = vmatprep.subr.bf16.mxu0 %v6395_v15  ;;  %3069 = vmatprep.subr.bf16.mxu1 %v6398_v2  ;;  %v6596_v15 = vld [vmem:[#allocation11 + $0x8] ss:$16 sps:$4 sm:$0xff]  }
 0x79c   :  { %7547 = vst [vmem:[#allocation77_spill] sm:$0xff] %v6596_v15 }
 0x79e   :  { %3029 = vmatpush1.bf16.msra.mxu0 %v6401_v26  ;;  %3070 = vmatpush1.bf16.msra.mxu1 %v6404_v32  ;;  %v6599_v26 = vld [vmem:[#allocation11 + $0x24] ss:$16 sps:$4 sm:$0xff]   ;;  %v6602_v32 = vld [vmem:[#allocation11 + $0x2c] ss:$16 sps:$4 sm:$0xff]  }
 0x79f   :  { %3126 = vmatprep.subr.bf16.mxu0 %v6587_v56  ;;  %3167 = vmatprep.subr.bf16.mxu1 %v6590_v17  ;;  %7548 = vst [vmem:[#allocation78_spill] sm:$0xff] %v6599_v26  ;;  %7549 = vst [vmem:[#allocation79_spill] sm:$0xff] %v6602_v32  ;;  %v6622_v17 = vld [vmem:[#allocation11 + $0x48] ss:$16 sps:$4 sm:$0xff]  }
 0x7a0   :  { %7555 = vst [vmem:[#allocation50_spill] sm:$0xff] %v6622_v17 }
 0x7a1   :  { %3047 = vmatmul.mubr.bf16.vlgmr.msra.gmra.mrb[88].mxu0 %v2816_v8  ;;  %3088 = vmatmul.mubr.bf16.vlgmr.msra.gmra.mrb[88].mxu1 %v2816_v8  ;;  %v6607_v8 = vld [vmem:[#allocation11 + $0x20] ss:$16 sps:$4 sm:$0xff]  }
 0x7a2   :  { %3127 = vmatpush1.bf16.msra.mxu0 %v6593_v40  ;;  %3168 = vmatpush1.bf16.msra.mxu1 %v6596_v15  ;;  %7550 = vst [vmem:[#allocation80_spill] sm:$0xff] %v6607_v8  ;;  %v6610_v40 = vld [vmem:[#allocation11 + $0x28] ss:$16 sps:$4 sm:$0xff]   ;;  %v6613_v15 = vld [vmem:[#allocation11 + $0x44] ss:$16 sps:$4 sm:$0xff]  }
 0x7a3   :  { %3128 = vmatprep.subr.bf16.mxu0 %v6599_v26  ;;  %3169 = vmatprep.subr.bf16.mxu1 %v6602_v32  ;;  %7551 = vst [vmem:[#allocation81_spill] sm:$0xff] %v6610_v40  ;;  %7552 = vst [vmem:[#allocation47_spill] sm:$0xff] %v6613_v15  ;;  %v6616_v26 = vld [vmem:[#allocation11 + $0x4c] ss:$16 sps:$4 sm:$0xff]   ;;  %v6619_v32 = vld [vmem:[#allocation11 + $0x40] ss:$16 sps:$4 sm:$0xff]  }
 0x7a4   :  { %3158 = vmatprep.mubr.bf16.mxu0 %v7211_v35  ;;  %3199 = vmatprep.mubr.bf16.mxu1 %v7211_v35  ;;  %7553 = vst [vmem:[#allocation48_spill] sm:$0xff] %v6616_v26  ;;  %7554 = vst [vmem:[#allocation49_spill] sm:$0xff] %v6619_v32 }
 0x7a6   :  { %3129 = vmatpush1.bf16.msra.mxu0 %v6607_v8  ;;  %3170 = vmatpush1.bf16.msra.mxu1 %v6610_v40  ;;  %v6625_v8 = vld [vmem:[#allocation11 + $0x64] ss:$16 sps:$4 sm:$0xff]   ;;  %v6628_v40 = vld [vmem:[#allocation11 + $0x6c] ss:$16 sps:$4 sm:$0xff]  }
 0x7a7   :  { %3130 = vmatprep.subr.bf16.mxu0 %v6613_v15  ;;  %3171 = vmatprep.subr.bf16.mxu1 %v6616_v26  ;;  %7556 = vst [vmem:[#allocation90_spill] sm:$0xff] %v6625_v8  ;;  %7557 = vst [vmem:[#allocation91_spill] sm:$0xff] %v6628_v40  ;;  %v6631_v15 = vld [vmem:[#allocation11 + $0x60] ss:$16 sps:$4 sm:$0xff]   ;;  %v6634_v26 = vld [vmem:[#allocation11 + $0x68] ss:$16 sps:$4 sm:$0xff]  }
 0x7a8   :  { %7558 = vst [vmem:[#allocation92_spill] sm:$0xff] %v6631_v15  ;;  %7559 = vst [vmem:[#allocation93_spill] sm:$0xff] %v6634_v26 }
 0x7aa   :  { %3131 = vmatpush1.bf16.msra.mxu0 %v6619_v32  ;;  %3172 = vmatpush1.bf16.msra.mxu1 %v6622_v17  ;;  %v6637_v32 = vld [vmem:[#allocation11 + $0x84] ss:$16 sps:$4 sm:$0xff]   ;;  %v6640_v17 = vld [vmem:[#allocation11 + $0x8c] ss:$16 sps:$4 sm:$0xff]  }
 0x7ab   :  { %3132 = vmatprep.subr.bf16.mxu0 %v6625_v8  ;;  %3173 = vmatprep.subr.bf16.mxu1 %v6628_v40  ;;  %7560 = vst [vmem:[#allocation51_spill] sm:$0xff] %v6637_v32  ;;  %7561 = vst [vmem:[#allocation52_spill] sm:$0xff] %v6640_v17  ;;  %v6643_v8 = vld [vmem:[#allocation11 + $0x80] ss:$16 sps:$4 sm:$0xff]   ;;  %v6646_v40 = vld [vmem:[#allocation11 + $0x88] ss:$16 sps:$4 sm:$0xff]  }
 0x7ac   :  { %7562 = vst [vmem:[#allocation53_spill] sm:$0xff] %v6643_v8  ;;  %7563 = vst [vmem:[#allocation54_spill] sm:$0xff] %v6646_v40 }
 0x7ae   :  { %3133 = vmatpush1.bf16.msra.mxu0 %v6631_v15  ;;  %3174 = vmatpush1.bf16.msra.mxu1 %v6634_v26  ;;  %v6649_v15 = vld [vmem:[#allocation11 + $0xa4] ss:$16 sps:$4 sm:$0xff]   ;;  %v6652_v26 = vld [vmem:[#allocation11 + $0xac] ss:$16 sps:$4 sm:$0xff]  }
 0x7af   :  { %3134 = vmatprep.subr.bf16.mxu0 %v6637_v32  ;;  %3175 = vmatprep.subr.bf16.mxu1 %v6640_v17  ;;  %7564 = vst [vmem:[#allocation55_spill] sm:$0xff] %v6649_v15  ;;  %7565 = vst [vmem:[#allocation56_spill] sm:$0xff] %v6652_v26  ;;  %v6655_v32 = vld [vmem:[#allocation11 + $0xa0] ss:$16 sps:$4 sm:$0xff]   ;;  %v6658_v17 = vld [vmem:[#allocation11 + $0xa8] ss:$16 sps:$4 sm:$0xff]  }
 0x7b0   :  { %7566 = vst [vmem:[#allocation57_spill] sm:$0xff] %v6655_v32  ;;  %7567 = vst [vmem:[#allocation58_spill] sm:$0xff] %v6658_v17 }
 0x7b2   :  { %3135 = vmatpush1.bf16.msra.mxu0 %v6643_v8  ;;  %3176 = vmatpush1.bf16.msra.mxu1 %v6646_v40  ;;  %v6661_v8 = vld [vmem:[#allocation11 + $0xc4] ss:$16 sps:$4 sm:$0xff]   ;;  %v6664_v40 = vld [vmem:[#allocation11 + $0xcc] ss:$16 sps:$4 sm:$0xff]  }
 0x7b3   :  { %3136 = vmatprep.subr.bf16.mxu0 %v6649_v15  ;;  %3177 = vmatprep.subr.bf16.mxu1 %v6652_v26  ;;  %7568 = vst [vmem:[#allocation59_spill] sm:$0xff] %v6661_v8  ;;  %7569 = vst [vmem:[#allocation60_spill] sm:$0xff] %v6664_v40  ;;  %v6667_v15 = vld [vmem:[#allocation11 + $0xc0] ss:$16 sps:$4 sm:$0xff]   ;;  %v6670_v26 = vld [vmem:[#allocation11 + $0xc8] ss:$16 sps:$4 sm:$0xff]  }
 0x7b4   :  { %7570 = vst [vmem:[#allocation61_spill] sm:$0xff] %v6667_v15  ;;  %7571 = vst [vmem:[#allocation62_spill] sm:$0xff] %v6670_v26 }
 0x7b6   :  { %3137 = vmatpush1.bf16.msra.mxu0 %v6655_v32  ;;  %3178 = vmatpush1.bf16.msra.mxu1 %v6658_v17  ;;  %v6673_v32 = vld [vmem:[#allocation11 + $0xe4] ss:$16 sps:$4 sm:$0xff]   ;;  %v6676_v17 = vld [vmem:[#allocation11 + $0xec] ss:$16 sps:$4 sm:$0xff]  }
 0x7b7   :  { %3138 = vmatprep.subr.bf16.mxu0 %v6661_v8  ;;  %3179 = vmatprep.subr.bf16.mxu1 %v6664_v40  ;;  %7572 = vst [vmem:[#allocation63_spill] sm:$0xff] %v6673_v32  ;;  %7573 = vst [vmem:[#allocation64_spill] sm:$0xff] %v6676_v17  ;;  %v6679_v8 = vld [vmem:[#allocation11 + $0xe0] ss:$16 sps:$4 sm:$0xff]   ;;  %v6682_v40 = vld [vmem:[#allocation11 + $0xe8] ss:$16 sps:$4 sm:$0xff]  }
 0x7b8   :  { %7574 = vst [vmem:[#allocation65_spill] sm:$0xff] %v6679_v8  ;;  %7575 = vst [vmem:[#allocation66_spill] sm:$0xff] %v6682_v40 }
 0x7ba   :  { %3139 = vmatpush1.bf16.msra.mxu0 %v6667_v15  ;;  %3180 = vmatpush1.bf16.msra.mxu1 %v6670_v26  ;;  %v6685_v15 = vld [vmem:[#allocation9 + $0x4] ss:$16 sps:$4 sm:$0xff]   ;;  %v6688_v26 = vld [vmem:[#allocation9 + $0xc] ss:$16 sps:$4 sm:$0xff]  }
 0x7bb   :  { %3140 = vmatprep.subr.bf16.mxu0 %v6673_v32  ;;  %3181 = vmatprep.subr.bf16.mxu1 %v6676_v17  ;;  %7576 = vst [vmem:[#allocation67_spill] sm:$0xff] %v6685_v15  ;;  %7577 = vst [vmem:[#allocation68_spill] sm:$0xff] %v6688_v26 }
 0x7be   :  { %3141 = vmatpush1.bf16.msra.mxu0 %v6679_v8  ;;  %3182 = vmatpush1.bf16.msra.mxu1 %v6682_v40 }
 0x7bf   :  { %3208 = vmatprep.subr.bf16.mxu0 %v6685_v15  ;;  %3249 = vmatprep.subr.bf16.mxu1 %v6688_v26 }
 0x834   :  { %v2852_v32 = vpop.f32.mrb[80].mxu0  ;;  %v2893_v56 = vpop.f32.mrb[80].mxu1 }
 0x835   :  { %v2854_v2 = vpop.f32.mrb[81].mxu0  ;;  %v2895_v17 = vpop.f32.mrb[81].mxu1 }
 0x836   :  { %v2856_v41 = vpop.f32.mrb[82].mxu0  ;;  %v2897_v58 = vpop.f32.mrb[82].mxu1 }
 0x837   :  { %v2857_v24 = vpop.f32.mrb[83].mxu0  ;;  %v2898_v8 = vpop.f32.mrb[83].mxu1 }
 0x854   :  { %v2934_v30 = vpop.f32.mrb[84].mxu0  ;;  %v2975_v11 = vpop.f32.mrb[84].mxu1 }
 0x855   :  { %v2935_v31 = vadd.f32 %v2934_v30, %v2852_v32  ;;  %v2976_v40 = vadd.f32 %v2975_v11, %v2893_v56  ;;  %v2936_v45 = vpop.f32.mrb[85].mxu0  ;;  %v2977_v47 = vpop.f32.mrb[85].mxu1 }
 0x856   :  { %v2937_v39 = vadd.f32 %v2936_v45, %v2854_v2  ;;  %v2978_v15 = vadd.f32 %v2977_v47, %v2895_v17  ;;  %v2938_v36 = vpop.f32.mrb[86].mxu0  ;;  %v2979_v10 = vpop.f32.mrb[86].mxu1 }
 0x857   :  { %v2982_v26 = vadd.f32 %v2935_v31, %v5692_v62  ;;  %v2939_v9 = vpop.f32.mrb[87].mxu0  ;;  %v2980_v4 = vpop.f32.mrb[87].mxu1  ;;  %v2984_v24 = vadd.f32 %v2976_v40, %v7529_v12  ;;  %v7579_v40 = vld [vmem:[#allocation99_spill] sm:$0xff] }
 0x858   :  { %v2983_v3 = vadd.f32 %v2937_v39, %v5696_v0  ;;  %v2985_v11 = vadd.f32 %v2978_v15, %v7530_v57  ;;  %v7578_v15 = vld [vmem:[#allocation98_spill] sm:$0xff] }
 0x859   :  { %v4051_v41 = vmul.f32 -1.442695, %v2982_v26  ;;  %v4053_v30 = vmul.f32 -1.442695, %v2984_v24  ;;  %v7580_v24 = vld [vmem:[#allocation100_spill] sm:$0xff] }
 0x85a   :  { %v4052_v58 = vmul.f32 -1.442695, %v2983_v3 }
 0x85b   :  { %4547 = vpow2.f32 %v4051_v41 }
 0x85c   :  { %4549 = vpow2.f32 %v4052_v58 }
 0x85d   :  { %4551 = vtanh.f32 %v2985_v11 }
 0x85e   :  { %4553 = vpow2.f32 %v4053_v30  ;;  %v7581_v30 = vld [vmem:[#allocation101_spill] sm:$0xff] }
 0x865   :  { %v4548_v32 = vpop.eup %4547 }
 0x866   :  { %v2995_v45 = vadd.f32 1.0, %v4548_v32  ;;  %v4550_v36 = vpop.eup %4549 }
 0x867   :  { %v2996_v10 = vadd.f32 1.0, %v4550_v36  ;;  %v4552_v4 = vpop.eup %4551 }
 0x868   :  { %4555 = vrcp.f32 %v2995_v45  ;;  %v4554_v9 = vpop.eup %4553 }
 0x869   :  { %4557 = vrcp.f32 %v2996_v10  ;;  %v2997_v31 = vadd.f32 1.0, %v4554_v9 }
 0x86b   :  { %4559 = vrcp.f32 %v2997_v31 }
 0x872   :  { %v4556_v39 = vpop.eup %4555 }
 0x873   :  { %v3006_v47 = vmul.f32 %v4556_v39, %v4552_v4  ;;  %v4558_v3 = vpop.eup %4557 }
 0x874   :  { %v3048_v2 = vpop.f32.mrb[88].mxu0  ;;  %v3089_v26 = vpop.f32.mrb[88].mxu1  ;;  %v3005_v56 = vmul.f32 %v4558_v3, %v6454_v44 }
 0x875   :  { %v3096_v17 = vadd.f32 %v3048_v2, %v7578_v15  ;;  %v3098_v8 = vadd.f32 %v3089_v26, %v7579_v40  ;;  %v3050_v41 = vpop.f32.mrb[89].mxu0  ;;  %v3091_v58 = vpop.f32.mrb[89].mxu1 }
 0x876   :  { %v3097_v11 = vadd.f32 %v3050_v41, %v7580_v24  ;;  %v3099_v32 = vadd.f32 %v3091_v58, %v7581_v30  ;;  %v3052_v45 = vpop.f32.mrb[90].mxu0  ;;  %v3093_v36 = vpop.f32.mrb[90].mxu1  ;;  %v6700_v10 = vadd.f32 %v3006_v47, %v3005_v56 }
 0x877   :  { %v4054_v4 = vmul.f32 -1.442695, %v3096_v17  ;;  %v3053_v9 = vpop.f32.mrb[91].mxu0  ;;  %v3094_v39 = vpop.f32.mrb[91].mxu1  ;;  %v4056_v3 = vmul.f32 -1.442695, %v3098_v8 }
 0x878   :  { %v4055_v57 = vmul.f32 -1.442695, %v3097_v11  ;;  %4561 = vtanh.f32 %v6700_v10  ;;  %v4560_v44 = vpop.eup %4559  ;;  %v7583_v45 = vld [vmem:[#allocation36_spill] sm:$0xff]  ;;  %v7584_v36 = vld [vmem:[#allocation37_spill] sm:$0xff] }
 0x879   :  { %4563 = vpow2.f32 %v4054_v4  ;;  %v7586_v4 = vld [vmem:[#allocation39_spill] sm:$0xff]  ;;  %v7587_v9 = vld [vmem:[#allocation40_spill] sm:$0xff]  ;;  %v7588_v39 = vld [vmem:[#allocation41_spill] sm:$0xff] }
 0x87a   :  { %4565 = vpow2.f32 %v4055_v57 }
 0x87b   :  { %4567 = vtanh.f32 %v3099_v32  ;;  %v7582_v32 = vld [vmem:[#allocation35_spill] sm:$0xff] }
 0x87c   :  { %4569 = vpow2.f32 %v4056_v3 }
 0x882   :  { %v4562_v2 = vpop.eup %4561 }
 0x883   :  { %v4564_v26 = vpop.eup %4563  ;;  %v3009_v15 = vmul.f32 %v4562_v2, %v4560_v44  ;;  %v7589_v44 = vld [vmem:[#allocation42_spill] sm:$0xff]  ;;  %v7590_v2 = vld [vmem:[#allocation43_spill] sm:$0xff] }
 0x884   :  { %v3109_v40 = vadd.f32 1.0, %v4564_v26  ;;  %v4566_v41 = vpop.eup %4565 }
 0x885   :  { %v3125_v47 = vpack.c.bf16 %v3009_v15, %v3009_v15  ;;  %v3110_v56 = vadd.f32 1.0, %v4566_v41  ;;  %v4568_v57 = vpop.eup %4567  ;;  %v7605_v41 = vld [vmem:[#allocation31_spill] sm:$0xff] }
 0x886   :  { %4571 = vrcp.f32 %v3109_v40  ;;  %v4570_v31 = vpop.eup %4569 }
 0x887   :  { %3159 = vmatmul.mubr.bf16.vlgmr.msra.gmra.mrb[92].mxu0 %v3125_v47  ;;  %3200 = vmatmul.mubr.bf16.vlgmr.msra.gmra.mrb[92].mxu1 %v3125_v47  ;;  %4573 = vrcp.f32 %v3110_v56  ;;  %v3111_v24 = vadd.f32 1.0, %v4570_v31  ;;  %v7606_v47 = vld [vmem:[#allocation32_spill] sm:$0xff]  ;;  %v7607_v56 = vld [vmem:[#allocation33_spill] sm:$0xff] }
 0x888   :  { %3209 = vmatpush1.bf16.msra.mxu0 %v6457_v55  ;;  %3250 = vmatpush1.bf16.msra.mxu1 %v6460_v21  ;;  %v7609_v31 = vld [vmem:[#allocation44_spill] sm:$0xff] }
 0x889   :  { %3210 = vmatprep.subr.bf16.mxu0 %v6463_v19  ;;  %3251 = vmatprep.subr.bf16.mxu1 %v6466_v29  ;;  %4575 = vrcp.f32 %v3111_v24  ;;  %v7613_v24 = vld [vmem:[#allocation78_spill] sm:$0xff] }
 0x88a   :  { %3240 = vmatprep.mubr.bf16.mxu0 %v7211_v35  ;;  %3281 = vmatprep.mubr.bf16.mxu1 %v7211_v35 }
 0x88c   :  { %3211 = vmatpush1.bf16.msra.mxu0 %v6471_v23  ;;  %3252 = vmatpush1.bf16.msra.mxu1 %v6474_v22 }
 0x88d   :  { %3212 = vmatprep.subr.bf16.mxu0 %v6477_v16  ;;  %3253 = vmatprep.subr.bf16.mxu1 %v6480_v7 }
 0x890   :  { %v4572_v17 = vpop.eup %4571  ;;  %3213 = vmatpush1.bf16.msra.mxu0 %v6483_v20  ;;  %3254 = vmatpush1.bf16.msra.mxu1 %v6486_v14 }
 0x891   :  { %v3120_v8 = vmul.f32 %v4572_v17, %v4568_v57  ;;  %3214 = vmatprep.subr.bf16.mxu0 %v6489_v18  ;;  %3255 = vmatprep.subr.bf16.mxu1 %v6492_v28  ;;  %v4574_v58 = vpop.eup %4573  ;;  %v7608_v57 = vld [vmem:[#allocation34_spill] sm:$0xff]  ;;  %v7610_v17 = vld [vmem:[#allocation45_spill] sm:$0xff] }
 0x892   :  { %v3119_v11 = vmul.f32 %v4574_v58, %v6502_v50  ;;  %v7585_v50 = vld [vmem:[#allocation38_spill] sm:$0xff]  ;;  %v7612_v58 = vld [vmem:[#allocation77_spill] sm:$0xff] }
 0x893   :  { %v4576_v3 = vpop.eup %4575 }
 0x894   :  { %3215 = vmatpush1.bf16.msra.mxu0 %v6496_v5  ;;  %3256 = vmatpush1.bf16.msra.mxu1 %v6499_v34  ;;  %v6720_v30 = vadd.f32 %v3120_v8, %v3119_v11  ;;  %v7611_v8 = vld [vmem:[#allocation46_spill] sm:$0xff]  ;;  %v7614_v11 = vld [vmem:[#allocation79_spill] sm:$0xff] }
 0x895   :  { %3216 = vmatprep.subr.bf16.mxu0 %v6504_v61  ;;  %3257 = vmatprep.subr.bf16.mxu1 %v6507_v33 }
 0x896   :  { %4577 = vtanh.f32 %v6720_v30 }
 0x898   :  { %3217 = vmatpush1.bf16.msra.mxu0 %v7582_v32  ;;  %3258 = vmatpush1.bf16.msra.mxu1 %v7583_v45 }
 0x899   :  { %3218 = vmatprep.subr.bf16.mxu0 %v7584_v36  ;;  %3259 = vmatprep.subr.bf16.mxu1 %v7585_v50 }
 0x89c   :  { %3219 = vmatpush1.bf16.msra.mxu0 %v7586_v4  ;;  %3260 = vmatpush1.bf16.msra.mxu1 %v7587_v9 }
 0x89d   :  { %3220 = vmatprep.subr.bf16.mxu0 %v7588_v39  ;;  %3261 = vmatprep.subr.bf16.mxu1 %v7589_v44 }
 0x8a0   :  { %3221 = vmatpush1.bf16.msra.mxu0 %v7590_v2  ;;  %3262 = vmatpush1.bf16.msra.mxu1 %v6538_v13  ;;  %v4578_v26 = vpop.eup %4577 }
 0x8a1   :  { %3222 = vmatprep.subr.bf16.mxu0 %v6541_v53  ;;  %3263 = vmatprep.subr.bf16.mxu1 %v6544_v54  ;;  %v3123_v15 = vmul.f32 %v4578_v26, %v4576_v3  ;;  %v7615_v3 = vld [vmem:[#allocation80_spill] sm:$0xff]  ;;  %v7616_v26 = vld [vmem:[#allocation81_spill] sm:$0xff] }
 0x8a3   :  { %v3124_v40 = vpack.c.bf16 %v3123_v15, %v3123_v15  ;;  %v7617_v15 = vld [vmem:[#allocation47_spill] sm:$0xff] }
 0x8a4   :  { %3223 = vmatpush1.bf16.msra.mxu0 %v6547_v46  ;;  %3264 = vmatpush1.bf16.msra.mxu1 %v6550_v6 }
 0x8a5   :  { %3322 = vmatprep.subr.bf16.mxu0 %v6307_v37  ;;  %3363 = vmatprep.subr.bf16.mxu1 %v6310_v38  ;;  %v7591_v37 = vld [vmem:[#allocation84_spill] sm:$0xff]  ;;  %v7592_v38 = vld [vmem:[#allocation85_spill] sm:$0xff] }
 0x8a7   :  { %3241 = vmatmul.mubr.bf16.vlgmr.msra.gmra.mrb[96].mxu0 %v3124_v40  ;;  %3282 = vmatmul.mubr.bf16.vlgmr.msra.gmra.mrb[96].mxu1 %v3124_v40 }
 0x8a8   :  { %3323 = vmatpush1.bf16.msra.mxu0 %v6315_v42  ;;  %3364 = vmatpush1.bf16.msra.mxu1 %v6318_v43  ;;  %v7593_v42 = vld [vmem:[#allocation86_spill] sm:$0xff]  ;;  %v7594_v43 = vld [vmem:[#allocation87_spill] sm:$0xff] }
 0x8a9   :  { %3324 = vmatprep.subr.bf16.mxu0 %v6321_v48  ;;  %3365 = vmatprep.subr.bf16.mxu1 %v6324_v49  ;;  %v7595_v48 = vld [vmem:[#allocation88_spill] sm:$0xff]  ;;  %v7596_v49 = vld [vmem:[#allocation89_spill] sm:$0xff] }
 0x8aa   :  { %3354 = vmatprep.mubr.bf16.mxu0 %v7211_v35  ;;  %3395 = vmatprep.mubr.bf16.mxu1 %v7211_v35 }
 0x8ac   :  { %3325 = vmatpush1.bf16.msra.mxu0 %v6329_v27  ;;  %3366 = vmatpush1.bf16.msra.mxu1 %v6332_v51  ;;  %v7597_v27 = vld [vmem:[#allocation23_spill] sm:$0xff]  ;;  %v7598_v51 = vld [vmem:[#allocation24_spill] sm:$0xff] }
 0x8ad   :  { %3326 = vmatprep.subr.bf16.mxu0 %v6335_v52  ;;  %3367 = vmatprep.subr.bf16.mxu1 %v6338_v25  ;;  %v7599_v52 = vld [vmem:[#allocation25_spill] sm:$0xff]  ;;  %v7600_v25 = vld [vmem:[#allocation26_spill] sm:$0xff] }
 0x8b0   :  { %3327 = vmatpush1.bf16.msra.mxu0 %v6341_v59  ;;  %3368 = vmatpush1.bf16.msra.mxu1 %v6344_v60  ;;  %v7601_v59 = vld [vmem:[#allocation27_spill] sm:$0xff]  ;;  %v7602_v60 = vld [vmem:[#allocation28_spill] sm:$0xff] }
 0x8b1   :  { %3328 = vmatprep.subr.bf16.mxu0 %v6347_v63  ;;  %3369 = vmatprep.subr.bf16.mxu1 %v6350_v1  ;;  %v7603_v63 = vld [vmem:[#allocation29_spill] sm:$0xff]  ;;  %v7604_v1 = vld [vmem:[#allocation30_spill] sm:$0xff] }
 0x8b4   :  { %3329 = vmatpush1.bf16.msra.mxu0 %v7591_v37  ;;  %3370 = vmatpush1.bf16.msra.mxu1 %v7592_v38  ;;  %v7618_v37 = vld [vmem:[#allocation48_spill] sm:$0xff]  ;;  %v7620_v38 = vld [vmem:[#allocation50_spill] sm:$0xff] }
 0x8b5   :  { %3330 = vmatprep.subr.bf16.mxu0 %v7593_v42  ;;  %3371 = vmatprep.subr.bf16.mxu1 %v7594_v43  ;;  %v7621_v42 = vld [vmem:[#allocation90_spill] sm:$0xff]  ;;  %v7622_v43 = vld [vmem:[#allocation91_spill] sm:$0xff] }
 0x8b8   :  { %3331 = vmatpush1.bf16.msra.mxu0 %v7595_v48  ;;  %3372 = vmatpush1.bf16.msra.mxu1 %v7596_v49  ;;  %v7623_v48 = vld [vmem:[#allocation92_spill] sm:$0xff]  ;;  %v7624_v49 = vld [vmem:[#allocation93_spill] sm:$0xff] }
 0x8b9   :  { %3332 = vmatprep.subr.bf16.mxu0 %v7597_v27  ;;  %3373 = vmatprep.subr.bf16.mxu1 %v7598_v51  ;;  %v7625_v27 = vld [vmem:[#allocation51_spill] sm:$0xff]  ;;  %v7626_v51 = vld [vmem:[#allocation52_spill] sm:$0xff] }
 0x8bc   :  { %3333 = vmatpush1.bf16.msra.mxu0 %v7599_v52  ;;  %3374 = vmatpush1.bf16.msra.mxu1 %v7600_v25  ;;  %v7627_v52 = vld [vmem:[#allocation53_spill] sm:$0xff]  ;;  %v7628_v25 = vld [vmem:[#allocation54_spill] sm:$0xff] }
 0x8bd   :  { %3334 = vmatprep.subr.bf16.mxu0 %v7601_v59  ;;  %3375 = vmatprep.subr.bf16.mxu1 %v7602_v60  ;;  %v7629_v59 = vld [vmem:[#allocation55_spill] sm:$0xff]  ;;  %v7630_v60 = vld [vmem:[#allocation56_spill] sm:$0xff] }
 0x8c0   :  { %3335 = vmatpush1.bf16.msra.mxu0 %v7603_v63  ;;  %3376 = vmatpush1.bf16.msra.mxu1 %v7604_v1  ;;  %v7631_v63 = vld [vmem:[#allocation57_spill] sm:$0xff]  ;;  %v7632_v1 = vld [vmem:[#allocation58_spill] sm:$0xff] }
 0x8c1   :  { %3336 = vmatprep.subr.bf16.mxu0 %v7605_v41  ;;  %3377 = vmatprep.subr.bf16.mxu1 %v7606_v47  ;;  %v7633_v41 = vld [vmem:[#allocation59_spill] sm:$0xff]  ;;  %v7634_v47 = vld [vmem:[#allocation60_spill] sm:$0xff] }
 0x8c4   :  { %3337 = vmatpush1.bf16.msra.mxu0 %v7607_v56  ;;  %3378 = vmatpush1.bf16.msra.mxu1 %v7608_v57  ;;  %v7635_v56 = vld [vmem:[#allocation61_spill] sm:$0xff]  ;;  %v7636_v57 = vld [vmem:[#allocation62_spill] sm:$0xff] }
 0x8c5   :  { %3434 = vmatprep.subr.bf16.mxu0 %v7609_v31  ;;  %3475 = vmatprep.subr.bf16.mxu1 %v7610_v17  ;;  %v7637_v31 = vld [vmem:[#allocation63_spill] sm:$0xff]  ;;  %v7638_v17 = vld [vmem:[#allocation64_spill] sm:$0xff] }
 0x8c7   :  { %3355 = vmatmul.mubr.bf16.vlgmr.msra.gmra.mrb[100].mxu0 %v3124_v40  ;;  %3396 = vmatmul.mubr.bf16.vlgmr.msra.gmra.mrb[100].mxu1 %v3124_v40  ;;  %v7619_v40 = vld [vmem:[#allocation49_spill] sm:$0xff] }
 0x8c8   :  { %3435 = vmatpush1.bf16.msra.mxu0 %v7611_v8  ;;  %3476 = vmatpush1.bf16.msra.mxu1 %v7612_v58  ;;  %v7639_v8 = vld [vmem:[#allocation65_spill] sm:$0xff]  ;;  %v7640_v58 = vld [vmem:[#allocation66_spill] sm:$0xff] }
 0x8c9   :  { %3436 = vmatprep.subr.bf16.mxu0 %v7613_v24  ;;  %3477 = vmatprep.subr.bf16.mxu1 %v7614_v11  ;;  %v7641_v24 = vld [vmem:[#allocation67_spill] sm:$0xff]  ;;  %v7642_v11 = vld [vmem:[#allocation68_spill] sm:$0xff] }
 0x8ca   :  { %3466 = vmatprep.mubr.bf16.mxu0 %v7211_v35  ;;  %3507 = vmatprep.mubr.bf16.mxu1 %v7211_v35 }
 0x8cc   :  { %3437 = vmatpush1.bf16.msra.mxu0 %v7615_v3  ;;  %3478 = vmatpush1.bf16.msra.mxu1 %v7616_v26 }
 0x8cd   :  { %3438 = vmatprep.subr.bf16.mxu0 %v7617_v15  ;;  %3479 = vmatprep.subr.bf16.mxu1 %v7618_v37 }
 0x8d0   :  { %3439 = vmatpush1.bf16.msra.mxu0 %v7619_v40  ;;  %3480 = vmatpush1.bf16.msra.mxu1 %v7620_v38 }
 0x8d1   :  { %3440 = vmatprep.subr.bf16.mxu0 %v7621_v42  ;;  %3481 = vmatprep.subr.bf16.mxu1 %v7622_v43 }
 0x8d4   :  { %3441 = vmatpush1.bf16.msra.mxu0 %v7623_v48  ;;  %3482 = vmatpush1.bf16.msra.mxu1 %v7624_v49 }
 0x8d5   :  { %3442 = vmatprep.subr.bf16.mxu0 %v7625_v27  ;;  %3483 = vmatprep.subr.bf16.mxu1 %v7626_v51 }
 0x8d8   :  { %3443 = vmatpush1.bf16.msra.mxu0 %v7627_v52  ;;  %3484 = vmatpush1.bf16.msra.mxu1 %v7628_v25 }
 0x8d9   :  { %3444 = vmatprep.subr.bf16.mxu0 %v7629_v59  ;;  %3485 = vmatprep.subr.bf16.mxu1 %v7630_v60 }
 0x8dc   :  { %3445 = vmatpush1.bf16.msra.mxu0 %v7631_v63  ;;  %3486 = vmatpush1.bf16.msra.mxu1 %v7632_v1 }
 0x8dd   :  { %3446 = vmatprep.subr.bf16.mxu0 %v7633_v41  ;;  %3487 = vmatprep.subr.bf16.mxu1 %v7634_v47 }
 0x8e0   :  { %3447 = vmatpush1.bf16.msra.mxu0 %v7635_v56  ;;  %3488 = vmatpush1.bf16.msra.mxu1 %v7636_v57 }
 0x8e1   :  { %3448 = vmatprep.subr.bf16.mxu0 %v7637_v31  ;;  %3489 = vmatprep.subr.bf16.mxu1 %v7638_v17 }
 0x8e4   :  { %3449 = vmatpush1.bf16.msra.mxu0 %v7639_v8  ;;  %3490 = vmatpush1.bf16.msra.mxu1 %v7640_v58  ;;  %v7643_v58 = vld [vmem:[#allocation22_spill] sm:$0xff] }
 0x8e5   :  { %3516 = vmatprep.subr.bf16.mxu0 %v7641_v24  ;;  %3557 = vmatprep.subr.bf16.mxu1 %v7642_v11 }
 0x95a   :  { %v3160_v3 = vpop.f32.mrb[92].mxu0  ;;  %v3201_v26 = vpop.f32.mrb[92].mxu1 }
 0x95b   :  { %v3162_v15 = vpop.f32.mrb[93].mxu0  ;;  %v3203_v37 = vpop.f32.mrb[93].mxu1 }
 0x95c   :  { %v3164_v40 = vpop.f32.mrb[94].mxu0  ;;  %v3205_v38 = vpop.f32.mrb[94].mxu1 }
 0x95d   :  { %v3165_v42 = vpop.f32.mrb[95].mxu0  ;;  %v3206_v43 = vpop.f32.mrb[95].mxu1 }
 0x97a   :  { %v3242_v48 = vpop.f32.mrb[96].mxu0  ;;  %v3283_v49 = vpop.f32.mrb[96].mxu1 }
 0x97b   :  { %v3243_v27 = vadd.f32 %v3242_v48, %v3160_v3  ;;  %v3284_v51 = vadd.f32 %v3283_v49, %v3201_v26  ;;  %v3244_v52 = vpop.f32.mrb[97].mxu0  ;;  %v3285_v25 = vpop.f32.mrb[97].mxu1 }
 0x97c   :  { %v3245_v59 = vadd.f32 %v3244_v52, %v3162_v15  ;;  %v3286_v60 = vadd.f32 %v3285_v25, %v3203_v37  ;;  %v3246_v63 = vpop.f32.mrb[98].mxu0  ;;  %v3287_v1 = vpop.f32.mrb[98].mxu1  ;;  %v7644_v25 = vld [vmem:[#allocation102_spill] sm:$0xff] }
 0x97d   :  { %v3290_v41 = vadd.f32 %v3243_v27, %v5692_v62  ;;  %v3247_v47 = vpop.f32.mrb[99].mxu0  ;;  %v3288_v56 = vpop.f32.mrb[99].mxu1  ;;  %v3292_v8 = vadd.f32 %v3284_v51, %v7529_v12 }
 0x97e   :  { %v3291_v57 = vadd.f32 %v3245_v59, %v5696_v0  ;;  %v3293_v24 = vadd.f32 %v3286_v60, %v7643_v58  ;;  %v7645_v60 = vld [vmem:[#allocation103_spill] sm:$0xff]  ;;  %v7646_v47 = vld [vmem:[#allocation104_spill] sm:$0xff] }
 0x97f   :  { %v4057_v31 = vmul.f32 -1.442695, %v3290_v41  ;;  %v4059_v11 = vmul.f32 -1.442695, %v3292_v8 }
 0x980   :  { %v4058_v17 = vmul.f32 -1.442695, %v3291_v57  ;;  %v7647_v57 = vld [vmem:[#allocation105_spill] sm:$0xff] }
 0x981   :  { %4579 = vpow2.f32 %v4057_v31 }
 0x982   :  { %4581 = vpow2.f32 %v4058_v17 }
 0x983   :  { %4583 = vtanh.f32 %v3293_v24 }
 0x984   :  { %4585 = vpow2.f32 %v4059_v11 }
 0x98b   :  { %v4580_v3 = vpop.eup %4579 }
 0x98c   :  { %v3303_v26 = vadd.f32 1.0, %v4580_v3  ;;  %v4582_v15 = vpop.eup %4581 }
 0x98d   :  { %v3304_v37 = vadd.f32 1.0, %v4582_v15  ;;  %v4584_v40 = vpop.eup %4583 }
 0x98e   :  { %4587 = vrcp.f32 %v3303_v26  ;;  %v4586_v38 = vpop.eup %4585 }
 0x98f   :  { %4589 = vrcp.f32 %v3304_v37  ;;  %v3305_v49 = vadd.f32 1.0, %v4586_v38 }
 0x991   :  { %4591 = vrcp.f32 %v3305_v49 }
 0x998   :  { %v4588_v42 = vpop.eup %4587 }
 0x999   :  { %v3314_v43 = vmul.f32 %v4588_v42, %v4584_v40  ;;  %v4590_v48 = vpop.eup %4589 }
 0x99a   :  { %v3356_v27 = vpop.f32.mrb[100].mxu0  ;;  %v3397_v52 = vpop.f32.mrb[100].mxu1  ;;  %v3313_v51 = vmul.f32 %v4590_v48, %v6700_v10 }
 0x99b   :  { %v3404_v59 = vadd.f32 %v3356_v27, %v7644_v25  ;;  %v3406_v63 = vadd.f32 %v3397_v52, %v7645_v60  ;;  %v3358_v1 = vpop.f32.mrb[101].mxu0  ;;  %v3399_v41 = vpop.f32.mrb[101].mxu1 }
 0x99c   :  { %v3405_v56 = vadd.f32 %v3358_v1, %v7646_v47  ;;  %v3407_v31 = vadd.f32 %v3399_v41, %v7647_v57  ;;  %v3360_v17 = vpop.f32.mrb[102].mxu0  ;;  %v3401_v8 = vpop.f32.mrb[102].mxu1  ;;  %v6818_v24 = vadd.f32 %v3314_v43, %v3313_v51 }
 0x99d   :  { %v4060_v11 = vmul.f32 -1.442695, %v3404_v59  ;;  %v3361_v3 = vpop.f32.mrb[103].mxu0  ;;  %v3402_v26 = vpop.f32.mrb[103].mxu1  ;;  %v4062_v37 = vmul.f32 -1.442695, %v3406_v63 }
 0x99e   :  { %v4061_v15 = vmul.f32 -1.442695, %v3405_v56  ;;  %4593 = vtanh.f32 %v6818_v24  ;;  %v4592_v10 = vpop.eup %4591 }
 0x99f   :  { %4595 = vpow2.f32 %v4060_v11 }
 0x9a0   :  { %4597 = vpow2.f32 %v4061_v15 }
 0x9a1   :  { %4599 = vtanh.f32 %v3407_v31 }
 0x9a2   :  { %4601 = vpow2.f32 %v4062_v37 }
 0x9a8   :  { %v4594_v40 = vpop.eup %4593 }
 0x9a9   :  { %v4596_v38 = vpop.eup %4595  ;;  %v3317_v42 = vmul.f32 %v4594_v40, %v4592_v10 }
 0x9aa   :  { %v3417_v48 = vadd.f32 1.0, %v4596_v38  ;;  %v4598_v27 = vpop.eup %4597 }
 0x9ab   :  { %v3433_v43 = vpack.c.bf16 %v3317_v42, %v3317_v42  ;;  %v3418_v52 = vadd.f32 1.0, %v4598_v27  ;;  %v4600_v49 = vpop.eup %4599 }
 0x9ac   :  { %4603 = vrcp.f32 %v3417_v48 }
 0x9ad   :  { %3467 = vmatmul.mubr.bf16.vlgmr.msra.gmra.mrb[104].mxu0 %v3433_v43  ;;  %3508 = vmatmul.mubr.bf16.vlgmr.msra.gmra.mrb[104].mxu1 %v3433_v43  ;;  %4605 = vrcp.f32 %v3418_v52 }
 0x9ae   :  { %3517 = vmatpush1.bf16.msra.mxu0 %v6457_v55  ;;  %3558 = vmatpush1.bf16.msra.mxu1 %v6460_v21  ;;  %v4602_v55 = vpop.eup %4601 }
 0x9af   :  { %3518 = vmatprep.subr.bf16.mxu0 %v6463_v19  ;;  %3559 = vmatprep.subr.bf16.mxu1 %v6466_v29  ;;  %v3419_v19 = vadd.f32 1.0, %v4602_v55 }
 0x9b0   :  { %3548 = vmatprep.mubr.bf16.mxu0 %v7211_v35  ;;  %3589 = vmatprep.mubr.bf16.mxu1 %v7211_v35 }
 0x9b1   :  { %4607 = vrcp.f32 %v3419_v19  ;;  %v4066_v19 = vld [vmem:[%s6908_s7] ss:$0 sm:$0xff] }
 0x9b2   :  { %3519 = vmatpush1.bf16.msra.mxu0 %v6471_v23  ;;  %3560 = vmatpush1.bf16.msra.mxu1 %v6474_v22 }
 0x9b3   :  { %3520 = vmatprep.subr.bf16.mxu0 %v6477_v16  ;;  %3561 = vmatprep.subr.bf16.mxu1 %v6480_v7 }
 0x9b6   :  { %v4604_v51 = vpop.eup %4603  ;;  %3521 = vmatpush1.bf16.msra.mxu0 %v6483_v20  ;;  %3562 = vmatpush1.bf16.msra.mxu1 %v6486_v14  ;;  %v4355_v14 = vld [vmem:[#allocation12] sm:$0xff]  }
 0x9b7   :  { %v3428_v21 = vmul.f32 %v4604_v51, %v4600_v49  ;;  %3522 = vmatprep.subr.bf16.mxu0 %v6489_v18  ;;  %3563 = vmatprep.subr.bf16.mxu1 %v6492_v28  ;;  %v4606_v35 = vpop.eup %4605  ;;  %v5017_v18 = vmov 0.0   ;;  %v4356_v28 = vld [vmem:[#allocation12 + $0x8] sm:$0xff]  }
 0x9b8   :  { %v3427_v29 = vmul.f32 %v4606_v35, %v6720_v30  ;;  %v4366_v30 = vld [vmem:[#allocation14 + $0x18] sm:$0xff]  }
 0x9ba   :  { %3523 = vmatpush1.bf16.msra.mxu0 %v6496_v5  ;;  %3564 = vmatpush1.bf16.msra.mxu1 %v6499_v34  ;;  %v3429_v23 = vadd.f32 %v3428_v21, %v3427_v29  ;;  %v4357_v5 = vld [vmem:[#allocation12 + $0x10] sm:$0xff]   ;;  %v4358_v34 = vld [vmem:[#allocation12 + $0x18] sm:$0xff]  }
 0x9bb   :  { %3524 = vmatprep.subr.bf16.mxu0 %v6504_v61  ;;  %3565 = vmatprep.subr.bf16.mxu1 %v6507_v33  ;;  %v4608_v22 = vpop.eup %4607  ;;  %v4359_v61 = vld [vmem:[#allocation12 + $0x20] sm:$0xff]   ;;  %v4360_v33 = vld [vmem:[#allocation12 + $0x28] sm:$0xff]  }
 0x9bc   :  { %4609 = vtanh.f32 %v3429_v23  ;;  %v4067_v23 = vld [vmem:[%s6909_s8] ss:$0 sm:$0xff] }
 0x9be   :  { %3525 = vmatpush1.bf16.msra.mxu0 %v7582_v32  ;;  %3566 = vmatpush1.bf16.msra.mxu1 %v7583_v45  ;;  %v4367_v32 = vld [vmem:[#allocation14 + $0x20] sm:$0xff]   ;;  %v4368_v45 = vld [vmem:[#allocation14 + $0x28] sm:$0xff]  }
 0x9bf   :  { %3526 = vmatprep.subr.bf16.mxu0 %v7584_v36  ;;  %3567 = vmatprep.subr.bf16.mxu1 %v7585_v50 }
 0x9c2   :  { %3527 = vmatpush1.bf16.msra.mxu0 %v7586_v4  ;;  %3568 = vmatpush1.bf16.msra.mxu1 %v7587_v9 }
 0x9c3   :  { %3528 = vmatprep.subr.bf16.mxu0 %v7588_v39  ;;  %3569 = vmatprep.subr.bf16.mxu1 %v7589_v44 }
 0x9c6   :  { %3529 = vmatpush1.bf16.msra.mxu0 %v7590_v2  ;;  %3570 = vmatpush1.bf16.msra.mxu1 %v6538_v13  ;;  %v4610_v16 = vpop.eup %4609  ;;  %v4363_v13 = vld [vmem:[#allocation14] sm:$0xff]  }
 0x9c7   :  { %3530 = vmatprep.subr.bf16.mxu0 %v6541_v53  ;;  %3571 = vmatprep.subr.bf16.mxu1 %v6544_v54  ;;  %v3431_v7 = vmul.f32 %v4610_v16, %v4608_v22  ;;  %v4362_v53 = vld [vmem:[#allocation12 + $0x38] sm:$0xff]   ;;  %v4364_v54 = vld [vmem:[#allocation14 + $0x8] sm:$0xff]  }
 0x9c9   :  { %v3432_v20 = vpack.c.bf16 %v3431_v7, %v3431_v7 }
 0x9ca   :  { %3531 = vmatpush1.bf16.msra.mxu0 %v6547_v46  ;;  %3572 = vmatpush1.bf16.msra.mxu1 %v6550_v6  ;;  %v4361_v6 = vld [vmem:[#allocation12 + $0x30] sm:$0xff]  }
 0x9cb   :  { %4104 = vmatprep.subr.bf16.mxu0 %v5017_v18  ;;  %4124 = vmatprep.subr.bf16.mxu1 %v5017_v18  ;;  %v4365_v46 = vld [vmem:[#allocation14 + $0x10] sm:$0xff]  }
 0x9cd   :  { %3549 = vmatmul.mubr.bf16.vlgmr.msra.gmra.mrb[108].mxu0 %v3432_v20  ;;  %3590 = vmatmul.mubr.bf16.vlgmr.msra.gmra.mrb[108].mxu1 %v3432_v20  ;;  %v4369_v20 = vld [vmem:[#allocation14 + $0x30] sm:$0xff]  }
 0x9ce   :  { %4105 = vmatpush3.bf16.msra.mxu0 %v4355_v14  ;;  %4120 = vmatprep.mubr.msk.bf16.mxu0 %vm5018_vm0, %v5017_v18  ;;  %v4068_v14 = vld [vmem:[%s6911_s10] ss:$0 sm:$0xff]  ;;  %s4973_s10 = scalar_lea.vmem %s3875_s16, 128 }
 0x9cf   :  { %4106 = vmatprep.subr.bf16.mxu0 %v5017_v18  ;;  %4140 = vmatprep.mubr.msk.bf16.mxu1 %vm5018_vm0, %v5017_v18  ;;  %p4974_p0 = scmp.ne.s32.totalorder %s3875_s16, %s4973_s10  ;;  %p4979_p2 = scmp.lt.s32.totalorder %s4973_s10, %s4973_s10 }
 0x9d0   :  { %4125 = vmatpush3.bf16.msra.mxu1 %v4363_v13  ;;  %v4077_v13 = vld [vmem:[%s6913_s12] ss:$0 sm:$0xff] }
 0x9d1   :  { %4126 = vmatprep.subr.bf16.mxu1 %v5017_v18  ;;  %p4980_p3 = por %p4979_p2, %p4978_p1 }
 0x9d2   :  { %4107 = vmatpush3.bf16.msra.mxu0 %v4356_v28 }
 0x9d3   :  { %4108 = vmatprep.subr.bf16.mxu0 %v5017_v18  ;;  %p4981_p4 = pnand %p4980_p3, %p4974_p0 }
 0x9d4   :  { %4127 = vmatpush3.bf16.msra.mxu1 %v4364_v54 }
 0x9d5   :  { %4128 = vmatprep.subr.bf16.mxu1 %v5017_v18 }
 0x9d6   :  { %4109 = vmatpush3.bf16.msra.mxu0 %v4357_v5 }
 0x9d7   :  { %4110 = vmatprep.subr.bf16.mxu0 %v5017_v18 }
 0x9d8   :  { %4129 = vmatpush3.bf16.msra.mxu1 %v4365_v46 }
 0x9d9   :  { %4130 = vmatprep.subr.bf16.mxu1 %v5017_v18 }
 0x9da   :  { %4111 = vmatpush3.bf16.msra.mxu0 %v4358_v34 }
 0x9db   :  { %4112 = vmatprep.subr.bf16.mxu0 %v5017_v18 }
 0x9dc   :  { %4131 = vmatpush3.bf16.msra.mxu1 %v4366_v30 }
 0x9dd   :  { %4132 = vmatprep.subr.bf16.mxu1 %v5017_v18 }
 0x9de   :  { %4113 = vmatpush3.bf16.msra.mxu0 %v4359_v61 }
 0x9df   :  { %4114 = vmatprep.subr.bf16.mxu0 %v5017_v18 }
 0x9e0   :  { %4133 = vmatpush3.bf16.msra.mxu1 %v4367_v32 }
 0x9e1   :  { %4134 = vmatprep.subr.bf16.mxu1 %v5017_v18 }
 0x9e2   :  { %4115 = vmatpush3.bf16.msra.mxu0 %v4360_v33 }
 0x9e3   :  { %4116 = vmatprep.subr.bf16.mxu0 %v5017_v18 }
 0x9e4   :  { %4135 = vmatpush3.bf16.msra.mxu1 %v4368_v45 }
 0x9e5   :  { %4136 = vmatprep.subr.bf16.mxu1 %v5017_v18 }
 0x9e6   :  { %4117 = vmatpush3.bf16.msra.mxu0 %v4361_v6 }
 0x9e7   :  { %4118 = vmatprep.subr.bf16.mxu0 %v5017_v18 }
 0x9e8   :  { %4137 = vmatpush3.bf16.msra.mxu1 %v4369_v20 }
 0x9e9   :  { %4138 = vmatprep.subr.bf16.mxu1 %v5017_v18 }
 0x9ea   :  { %4119 = vmatpush3.bf16.msra.mxu0 %v4362_v53 }
 0xa80   :  { %v3468_v36 = vpop.f32.mrb[104].mxu0  ;;  %v3509_v50 = vpop.f32.mrb[104].mxu1 }
 0xa81   :  { %v3470_v4 = vpop.f32.mrb[105].mxu0  ;;  %v3511_v9 = vpop.f32.mrb[105].mxu1 }
 0xa82   :  { %v3472_v39 = vpop.f32.mrb[106].mxu0  ;;  %v3513_v44 = vpop.f32.mrb[106].mxu1 }
 0xa83   :  { %v3473_v2 = vpop.f32.mrb[107].mxu0  ;;  %v3514_v25 = vpop.f32.mrb[107].mxu1 }
 0xaa0   :  { %v3550_v59 = vpop.f32.mrb[108].mxu0  ;;  %v3591_v60 = vpop.f32.mrb[108].mxu1 }
 0xaa1   :  { %v3551_v63 = vadd.f32 %v3550_v59, %v3468_v36  ;;  %v3592_v1 = vadd.f32 %v3591_v60, %v3509_v50  ;;  %v3552_v41 = vpop.f32.mrb[109].mxu0  ;;  %v3593_v47 = vpop.f32.mrb[109].mxu1 }
 0xaa2   :  { %v3553_v56 = vadd.f32 %v3552_v41, %v3470_v4  ;;  %v3594_v57 = vadd.f32 %v3593_v47, %v3511_v9  ;;  %v3554_v31 = vpop.f32.mrb[110].mxu0  ;;  %v3595_v17 = vpop.f32.mrb[110].mxu1 }
 0xaa3   :  { %v3598_v8 = vadd.f32 %v3551_v63, %v5692_v62  ;;  %v3555_v11 = vpop.f32.mrb[111].mxu0  ;;  %v3596_v3 = vpop.f32.mrb[111].mxu1  ;;  %v3600_v37 = vadd.f32 %v3592_v1, %v7529_v12 }
 0xaa4   :  { %v3599_v26 = vadd.f32 %v3553_v56, %v5696_v0  ;;  %v3601_v40 = vadd.f32 %v3594_v57, %v7643_v58 }
 0xaa5   :  { %v4063_v15 = vmul.f32 -1.442695, %v3598_v8  ;;  %v4065_v38 = vmul.f32 -1.442695, %v3600_v37 }
 0xaa6   :  { %v4064_v10 = vmul.f32 -1.442695, %v3599_v26 }
 0xaa7   :  { %4611 = vpow2.f32 %v4063_v15 }
 0xaa8   :  { %4613 = vpow2.f32 %v4064_v10 }
 0xaa9   :  { %4615 = vtanh.f32 %v3601_v40 }
 0xaaa   :  { %4617 = vpow2.f32 %v4065_v38 }
 0xab1   :  { %v4612_v42 = vpop.eup %4611 }
 0xab2   :  { %v3611_v48 = vadd.f32 1.0, %v4612_v42  ;;  %v4614_v27 = vpop.eup %4613 }
 0xab3   :  { %v3612_v62 = vadd.f32 1.0, %v4614_v27  ;;  %v4616_v43 = vpop.eup %4615 }
 0xab4   :  { %4619 = vrcp.f32 %v3611_v48  ;;  %v4618_v52 = vpop.eup %4617 }
 0xab5   :  { %4621 = vrcp.f32 %v3612_v62  ;;  %v3613_v51 = vadd.f32 1.0, %v4618_v52 }
 0xab7   :  { %4623 = vrcp.f32 %v3613_v51 }
 0xabe   :  { %v4620_v0 = vpop.eup %4619 }
 0xabf   :  { %v3622_v49 = vmul.f32 %v4620_v0, %v4616_v43  ;;  %v4622_v55 = vpop.eup %4621 }
 0xac0   :  { %v3621_v21 = vmul.f32 %v4622_v55, %v6818_v24  ;;  %v4370_v24 = vld [vmem:[#allocation14 + $0x38] sm:$0xff]  }
 0xac1   :  { %v4624_v58 = vpop.eup %4623  ;;  %4139 = vmatpush3.bf16.msra.mxu1 %v4370_v24 }
 0xac2   :  { %v3623_v12 = vadd.f32 %v3622_v49, %v3621_v21 }
 0xac4   :  { %4625 = vtanh.f32 %v3623_v12 }
 0xace   :  { %v4626_v35 = vpop.eup %4625 }
 0xacf   :  { %v3625_v29 = vmul.f32 %v4626_v35, %v4624_v58 }
 0xad1   :  { %v3633_v22 = vmul.f32 %v4066_v19, %v3625_v29 }
 0xad3   :  { %v3641_v16 = vadd.f32 %v4067_v23, %v3633_v22 }
 0xad5   :  { %v3642_v7 = vpack.c.bf16 %v3641_v16, %v3641_v16 }
 0xad7   :  { %4121 = vmatmul.mubr.bf16.vlgmr.msra.gmra.mrb[112].mxu0 %v3642_v7 }
 0xbaa   :  { %v3748_v28 = vpop.f32.mrb[112].mxu0 }
 0xbab   :  { %v3749_v5 = vadd.f32 %v4068_v14, %v3748_v28  ;;  %v4122_v34 = vpop.f32.mrb[113].mxu0 }
 0xbac   :  { %v3751_v61 = vpop.f32.mrb[114].mxu0 }
 0xbad   :  { %v3754_v33 = vmax.f32 %v3749_v5, 0.0  ;;  %v4123_v6 = vpop.f32.mrb[115].mxu0 }
 0xbaf   :  { %v3755_v53 = vpack.c.bf16 %v3754_v33, %v3754_v33 }
 0xbb1   :  { %4141 = vmatmul.mubr.bf16.vlgmr.msra.gmra.mrb[112].mxu1 %v3755_v53 }
 0xc84   :  { %v3861_v18 = vpop.f32.mrb[112].mxu1 }
 0xc85   :  { %v3862_v54 = vadd.f32 %v4077_v13, %v3861_v18  ;;  %v4142_v46 = vpop.f32.mrb[113].mxu1 }
 0xc86   :  { %v3864_v30 = vpop.f32.mrb[114].mxu1 }
 0xc87   :  { %3867 = vst [vmem:[#allocation15] sm:$0xff] %v3862_v54  ;;  %v4143_v32 = vpop.f32.mrb[115].mxu1 }
 0xc88   :  { %4984 = shalt.err (!%p4981_p4)
}
 0xc89   :  { %s4985_s12 = scalar_lea.hbm %s6914_s13, 128 }
 0xc8a   :  { %p4986_p5 = scmp.ne.s32.totalorder %s6914_s13, %s4985_s12  ;;  %p4989_p6 = scmp.lt.u32.totalorder %s4985_s12, %s6914_s13 }
 0xc8c   :  { %p4991_p7 = pnand %p4989_p6, %p4986_p5 }
 0xc8e   :  { %4994 = shalt.err (!%p4991_p7)
}
 0xc8f   :  { %3877 = dma.vmem_to_hbm [thread:$0]  %s3875_s16, 128, %s6914_s13, [#allocation5]  }
 0xc90   :  { %5003 = dma.done.wait [#allocation5], 128  }
 0xc91   :  { %5004 = vsyncadd [#allocation5], 4294967168 }
 0xc92   :  { %3881 = vsyncpa [#allocation4], 1 }
 0xc93   :  { %3882 = vsyncpa [#allocation7], 1 }
 0xc94   :  { %3883 = vsyncpa [#allocation10], 1 }
 0xc95   :  { %3884 = vsyncpa [#allocation13], 1 }
 0xc96   :  { %3885 = vsyncpa [#allocation5], 1 }

</bundles_post_ra>
